<compile_context>
chip_gen: v6e
topology: v6e:2x2x1
jax: 0.10.0
libtpu: 0.0.40
codegen_flags: <defaults>
</compile_context>

<pallas_src>
from typing import NamedTuple

import jax
import jax.numpy as jnp
from jax.experimental import pallas as pl
from jax.experimental.pallas import tpu as pltpu

_LANE = 128
# W1 (bf16) at or below this stays fully VMEM-resident (fused path, no K streaming).
_W1_RESIDENT_BYTES = 8 * 1024 * 1024


def _round_up(x, m):
    return pl.cdiv(x, m) * m


# --------------------------------------------------------------------------- #
# Kernels
# --------------------------------------------------------------------------- #
def _qnet_fused_kernel(x_ref, w1_ref, b1_ref, w2_ref, b2_ref, w3_ref, b3_ref, o_ref):
    """grid = (batch_tiles,); W1 fully VMEM-resident, no accumulator scratch."""
    # Layer 1: Linear(in, 1024) + ReLU.  Dropout(p=0.3) -> identity (eval mode).
    h1 = jnp.dot(x_ref[...], w1_ref[...], preferred_element_type=jnp.float32)
    h1 = jnp.maximum(h1 + b1_ref[...], 0.0)
    # Layer 2: Linear(1024, 512) + ReLU.  Dropout(p=0.3) -> identity (eval mode).
    h2 = jnp.dot(h1.astype(jnp.bfloat16), w2_ref[...], preferred_element_type=jnp.float32)
    h2 = jnp.maximum(h2 + b2_ref[...], 0.0)
    # Layer 3: Linear(512, action_dim padded to 128 lanes).
    out = jnp.dot(h2.astype(jnp.bfloat16), w3_ref[...], preferred_element_type=jnp.float32)
    o_ref[...] = (out + b3_ref[...]).astype(o_ref.dtype)


def _qnet_streamed_kernel(x_ref, w1_ref, b1_ref, w2_ref, b2_ref, w3_ref, b3_ref,
                          o_ref, h1_acc):
    """grid = (batch_tiles [parallel], k_tiles [arbitrary]); W1 streamed over K."""
    k = pl.program_id(1)

    @pl.when(k == 0)
    def _():
        h1_acc[...] = jnp.zeros_like(h1_acc)

    # Layer-1 partial product for this K tile (bf16 inputs, f32 MXU accumulation).
    h1_acc[...] += jnp.dot(x_ref[...], w1_ref[...], preferred_element_type=jnp.float32)

    @pl.when(k == pl.num_programs(1) - 1)
    def _():
        # Finish layer 1: bias (f32) + ReLU.  Dropout(p=0.3) -> identity (eval mode).
        h1 = jnp.maximum(h1_acc[...] + b1_ref[...], 0.0)
        # Layer 2 (+ eval-mode dropout identity).
        h2 = jnp.dot(h1.astype(jnp.bfloat16), w2_ref[...],
                     preferred_element_type=jnp.float32)
        h2 = jnp.maximum(h2 + b2_ref[...], 0.0)
        # Layer 3.
        out = jnp.dot(h2.astype(jnp.bfloat16), w3_ref[...],
                      preferred_element_type=jnp.float32) + b3_ref[...]
        o_ref[...] = out.astype(o_ref.dtype)


# --------------------------------------------------------------------------- #
# One-time parameter preparation (kept OUT of the per-call forward path)
# --------------------------------------------------------------------------- #
class PreparedParams(NamedTuple):
    w1: jax.Array      # (k_pad, 1024)   bf16, K zero-padded to a multiple of tk
    b1: jax.Array      # (1, 1024)       f32
    w2: jax.Array      # (1024, 512)     bf16
    b2: jax.Array      # (1, 512)        f32
    w3: jax.Array      # (512, act_pad)  bf16, padded to a multiple of 128 lanes
    b3: jax.Array      # (1, act_pad)    f32
    in_dim: int
    act_dim: int
    tk: int            # K tile (== k_pad on the fused path)
    streamed: bool


def prepare_params(params, *, tk_stream=2048):
    """One-time f32->bf16 cast + padding of the weights (call once, reuse per forward)."""
    w1, b1, w2, b2, w3, b3 = params
    in_dim, h1 = w1.shape
    h2 = w2.shape[1]
    act_dim = w3.shape[1]

    streamed = in_dim * h1 * 2 > _W1_RESIDENT_BYTES
    tk = int(tk_stream) if streamed else int(_round_up(in_dim, _LANE))
    k_pad = int(_round_up(in_dim, tk))
    act_pad = int(_round_up(act_dim, _LANE))

    w1_bf = jnp.pad(w1.astype(jnp.bfloat16), ((0, k_pad - in_dim), (0, 0)))
    w2_bf = w2.astype(jnp.bfloat16)
    w3_bf = jnp.pad(w3.astype(jnp.bfloat16), ((0, 0), (0, act_pad - act_dim)))
    b1_f = jnp.reshape(b1, (1, h1)).astype(jnp.float32)
    b2_f = jnp.reshape(b2, (1, h2)).astype(jnp.float32)
    b3_f = jnp.pad(jnp.reshape(b3, (1, act_dim)).astype(jnp.float32),
                   ((0, 0), (0, act_pad - act_dim)))
    return PreparedParams(w1_bf, b1_f, w2_bf, b2_f, w3_bf, b3_f,
                          int(in_dim), int(act_dim), tk, bool(streamed))


# --------------------------------------------------------------------------- #
# Forward
# --------------------------------------------------------------------------- #
def qnetwork_forward(x, prep: PreparedParams, *, tb_max=512):
    """x: (B, C, H, W) float32 (or already (B, in_dim)). Returns (B, action_dim) f32."""
    B = x.shape[0]
    x_flat = jnp.reshape(x, (B, -1)).astype(jnp.bfloat16)   # nn.Flatten (row-major NCHW)
    assert x_flat.shape[1] == prep.in_dim, "input feature size mismatch"

    k_pad, h1 = prep.w1.shape
    h2 = prep.w2.shape[1]
    act_pad = prep.w3.shape[1]

    # Pad the flattened-K dim (zeros are inert; W1 rows are already zero-padded).
    if k_pad != prep.in_dim:
        x_flat = jnp.pad(x_flat, ((0, 0), (0, k_pad - prep.in_dim)))

    # Batch tiling: minimize n_b (W1 re-streams once per batch tile on the streamed
    # path) and keep tiles >= 16 rows so bf16 vregs use dense sublanes and the f32
    # output stores are unmasked.  Padded rows are garbage (ReLU of bias) and are
    # sliced off before returning.
    tb = int(min(_round_up(max(B, 16), 16), tb_max))
    b_pad = int(_round_up(B, tb))
    if b_pad != B:
        x_flat = jnp.pad(x_flat, ((0, b_pad - B), (0, 0)))
    n_b = b_pad // tb

    if not prep.streamed:
        # Fused path: W1 fully VMEM-resident, single grid axis over batch tiles.
        kernel = _qnet_fused_kernel
        grid = (n_b,)
        in_specs = [
            pl.BlockSpec((tb, k_pad), lambda i: (i, 0)),          # x
            pl.BlockSpec((k_pad, h1), lambda i: (0, 0)),          # W1 (resident)
            pl.BlockSpec((1, h1), lambda i: (0, 0)),              # b1
            pl.BlockSpec((h1, h2), lambda i: (0, 0)),             # W2 (resident)
            pl.BlockSpec((1, h2), lambda i: (0, 0)),              # b2
            pl.BlockSpec((h2, act_pad), lambda i: (0, 0)),        # W3 (resident)
            pl.BlockSpec((1, act_pad), lambda i: (0, 0)),         # b3
        ]
        out_specs = pl.BlockSpec((tb, act_pad), lambda i: (i, 0))
        scratch_shapes = []
        dim_semantics = ("parallel",)
    else:
        # Streamed path (large Flatten inputs): W1 K-tiled, f32 VMEM accumulator,
        # 3-deep buffering on the streamed operands to hide DMA latency.
        kernel = _qnet_streamed_kernel
        tk = prep.tk
        n_k = k_pad // tk
        grid = (n_b, n_k)
        in_specs = [
            pl.BlockSpec((tb, tk), lambda i, k: (i, k),
                         pipeline_mode=pl.Buffered(3)),           # x  (streamed over K)
            pl.BlockSpec((tk, h1), lambda i, k: (k, 0),
                         pipeline_mode=pl.Buffered(3)),           # W1 (streamed over K)
            pl.BlockSpec((1, h1), lambda i, k: (0, 0)),           # b1
            pl.BlockSpec((h1, h2), lambda i, k: (0, 0)),          # W2 (resident)
            pl.BlockSpec((1, h2), lambda i, k: (0, 0)),           # b2
            pl.BlockSpec((h2, act_pad), lambda i, k: (0, 0)),     # W3 (resident)
            pl.BlockSpec((1, act_pad), lambda i, k: (0, 0)),      # b3
        ]
        out_specs = pl.BlockSpec((tb, act_pad), lambda i, k: (i, 0))
        scratch_shapes = [pltpu.VMEM((tb, h1), jnp.float32)]
        dim_semantics = ("parallel", "arbitrary")

    flops = 2 * b_pad * (k_pad * h1 + h1 * h2 + h2 * act_pad)
    w1_reads = n_b if prep.streamed else 1   # W1 re-streamed per batch tile only when K-tiled
    bytes_accessed = (
        x_flat.size * 2                                   # bf16 activations
        + prep.w1.size * 2 * w1_reads                     # bf16 W1 stream(s)
        + (prep.w2.size + prep.w3.size) * 2               # bf16 resident weights
        + (prep.b1.size + prep.b2.size + prep.b3.size) * 4  # f32 biases
        + b_pad * act_pad * 4                             # f32 output
    )

    out = pl.pallas_call(
        kernel,
        out_shape=jax.ShapeDtypeStruct((b_pad, act_pad), jnp.float32),
        grid=grid,
        in_specs=in_specs,
        out_specs=out_specs,
        scratch_shapes=scratch_shapes,
        compiler_params=pltpu.CompilerParams(dimension_semantics=dim_semantics),
        cost_estimate=pl.CostEstimate(flops=flops, transcendentals=0,
                                      bytes_accessed=bytes_accessed),
    )(x_flat, prep.w1, prep.b1, prep.w2, prep.b2, prep.w3, prep.b3)

    return out[:B, :prep.act_dim]


# --------------------------------------------------------------------------- #
# PyTorch-equivalent initialization
# --------------------------------------------------------------------------- #
def init_params(key, input_dim, action_dim):
    """nn.Linear default init: U(-1/sqrt(fan_in), 1/sqrt(fan_in)).
    Weights stored transposed relative to PyTorch: (in_features, out_features), f32."""
    dims = [(input_dim, 1024), (1024, 512), (512, action_dim)]
    params = []
    for (fan_in, fan_out) in dims:
        key, kw, kb = jax.random.split(key, 3)
        bound = 1.0 / (fan_in ** 0.5)
        w = jax.random.uniform(kw, (fan_in, fan_out), jnp.float32, -bound, bound)
        b = jax.random.uniform(kb, (1, fan_out), jnp.float32, -bound, bound)
        params += [w, b]
    return tuple(params)


if __name__ == "__main__":
    key = jax.random.PRNGKey(0)
    key, kx = jax.random.split(key)

    # Example input: batch=2, channels=4, spatial=16x16 -> input_dim = 4*16*16 = 1024
    B, C, H, W = 2, 4, 16, 16
    input_dim = C * H * W
    action_dim = 8

    x = jax.random.normal(kx, (B, C, H, W), jnp.float32)
    raw_params = init_params(key, input_dim, action_dim)

    # One-time weight prep (bf16 cast + padding) -- NOT part of the per-call path.
    prep = prepare_params(raw_params)

    out = jax.block_until_ready(qnetwork_forward(x, prep))

    # Pure-JAX reference with the same bf16-weight / f32-accumulate numerics.
    w1, b1, w2, b2, w3, b3 = raw_params
    xf = jnp.reshape(x, (B, -1)).astype(jnp.bfloat16)
    r = jnp.maximum(
        jnp.dot(xf, w1.astype(jnp.bfloat16), preferred_element_type=jnp.float32) + b1, 0.0)
    r = jnp.maximum(
        jnp.dot(r.astype(jnp.bfloat16), w2.astype(jnp.bfloat16),
                preferred_element_type=jnp.float32) + b2, 0.0)
    ref = jnp.dot(r.astype(jnp.bfloat16), w3.astype(jnp.bfloat16),
                  preferred_element_type=jnp.float32) + b3

    assert out.shape == (B, action_dim)
    assert jnp.allclose(out, ref, atol=1e-2, rtol=1e-2), float(jnp.max(jnp.abs(out - ref)))

    print("KERNEL_OK")
</pallas_src>

<mosaic_0001>
module attributes {stable_mosaic.version = 11 : i64} {
  func.func @_qnet_fused_kernel(%arg0: i32, %arg1: memref<16x1024xbf16, #tpu.memory_space<vmem>>, %arg2: memref<1024x1024xbf16, #tpu.memory_space<vmem>>, %arg3: memref<1x1024xf32, #tpu.memory_space<vmem>>, %arg4: memref<1024x512xbf16, #tpu.memory_space<vmem>>, %arg5: memref<1x512xf32, #tpu.memory_space<vmem>>, %arg6: memref<512x128xbf16, #tpu.memory_space<vmem>>, %arg7: memref<1x128xf32, #tpu.memory_space<vmem>>, %arg8: memref<16x128xf32, #tpu.memory_space<vmem>>) attributes {dimension_semantics = [#tpu.dimension_semantics<parallel>], iteration_bounds = array<i64: 1>, scalar_prefetch = 0 : i64, scratch_operands = 0 : i64, tpu.core_type = #tpu.core_type<tc>, window_params = [{transform_indices = @transform_0, window_bounds = array<i64: 16, 1024>}, {pipeline_mode = #tpu.pipeline_mode<synchronous>, transform_indices = @transform_1, window_bounds = array<i64: 1024, 1024>}, {pipeline_mode = #tpu.pipeline_mode<synchronous>, transform_indices = @transform_2, window_bounds = array<i64: 1, 1024>}, {pipeline_mode = #tpu.pipeline_mode<synchronous>, transform_indices = @transform_3, window_bounds = array<i64: 1024, 512>}, {pipeline_mode = #tpu.pipeline_mode<synchronous>, transform_indices = @transform_4, window_bounds = array<i64: 1, 512>}, {pipeline_mode = #tpu.pipeline_mode<synchronous>, transform_indices = @transform_5, window_bounds = array<i64: 512, 128>}, {pipeline_mode = #tpu.pipeline_mode<synchronous>, transform_indices = @transform_6, window_bounds = array<i64: 1, 128>}, {transform_indices = @transform_7, window_bounds = array<i64: 16, 128>}]} {
    %c0 = arith.constant 0 : index
    %c0_0 = arith.constant 0 : index
    %0 = vector.load %arg1[%c0, %c0_0] : memref<16x1024xbf16, #tpu.memory_space<vmem>>, vector<16x1024xbf16>
    %c0_1 = arith.constant 0 : index
    %c0_2 = arith.constant 0 : index
    %1 = vector.load %arg2[%c0_1, %c0_2] : memref<1024x1024xbf16, #tpu.memory_space<vmem>>, vector<1024x1024xbf16>
    %cst = arith.constant dense<0.000000e+00> : vector<16x1024xf32>
    %2 = tpu.matmul %0, %1, %cst {dimension_numbers = #tpu.dot_dimension_numbers<[1], [0], [0], [1], [0, 0, 1, 1], [], []>} : vector<16x1024xbf16>, vector<1024x1024xbf16>, vector<16x1024xf32> -> vector<16x1024xf32>
    %c0_3 = arith.constant 0 : index
    %c0_4 = arith.constant 0 : index
    %3 = vector.load %arg3[%c0_3, %c0_4] : memref<1x1024xf32, #tpu.memory_space<vmem>>, vector<1x1024xf32>
    %4 = vector.broadcast %3 : vector<1x1024xf32> to vector<16x1024xf32>
    %5 = arith.addf %2, %4 : vector<16x1024xf32>
    %cst_5 = arith.constant 0.000000e+00 : f32
    %6 = vector.broadcast %cst_5 : f32 to vector<16x1024xf32>
    %7 = arith.maximumf %5, %6 : vector<16x1024xf32>
    %8 = arith.truncf %7 : vector<16x1024xf32> to vector<16x1024xbf16>
    %c0_6 = arith.constant 0 : index
    %c0_7 = arith.constant 0 : index
    %9 = vector.load %arg4[%c0_6, %c0_7] : memref<1024x512xbf16, #tpu.memory_space<vmem>>, vector<1024x512xbf16>
    %cst_8 = arith.constant dense<0.000000e+00> : vector<16x512xf32>
    %10 = tpu.matmul %8, %9, %cst_8 {dimension_numbers = #tpu.dot_dimension_numbers<[1], [0], [0], [1], [0, 0, 1, 1], [], []>} : vector<16x1024xbf16>, vector<1024x512xbf16>, vector<16x512xf32> -> vector<16x512xf32>
    %c0_9 = arith.constant 0 : index
    %c0_10 = arith.constant 0 : index
    %11 = vector.load %arg5[%c0_9, %c0_10] : memref<1x512xf32, #tpu.memory_space<vmem>>, vector<1x512xf32>
    %12 = vector.broadcast %11 : vector<1x512xf32> to vector<16x512xf32>
    %13 = arith.addf %10, %12 : vector<16x512xf32>
    %cst_11 = arith.constant 0.000000e+00 : f32
    %14 = vector.broadcast %cst_11 : f32 to vector<16x512xf32>
    %15 = arith.maximumf %13, %14 : vector<16x512xf32>
    %16 = arith.truncf %15 : vector<16x512xf32> to vector<16x512xbf16>
    %c0_12 = arith.constant 0 : index
    %c0_13 = arith.constant 0 : index
    %17 = vector.load %arg6[%c0_12, %c0_13] : memref<512x128xbf16, #tpu.memory_space<vmem>>, vector<512x128xbf16>
    %cst_14 = arith.constant dense<0.000000e+00> : vector<16x128xf32>
    %18 = tpu.matmul %16, %17, %cst_14 {dimension_numbers = #tpu.dot_dimension_numbers<[1], [0], [0], [1], [0, 0, 1, 1], [], []>} : vector<16x512xbf16>, vector<512x128xbf16>, vector<16x128xf32> -> vector<16x128xf32>
    %c0_15 = arith.constant 0 : index
    %c0_16 = arith.constant 0 : index
    %19 = vector.load %arg7[%c0_15, %c0_16] : memref<1x128xf32, #tpu.memory_space<vmem>>, vector<1x128xf32>
    %20 = vector.broadcast %19 : vector<1x128xf32> to vector<16x128xf32>
    %21 = arith.addf %18, %20 : vector<16x128xf32>
    %c0_17 = arith.constant 0 : index
    %c0_18 = arith.constant 0 : index
    %22 = vector.load %arg8[%c0_17, %c0_18] : memref<16x128xf32, #tpu.memory_space<vmem>>, vector<16x128xf32>
    tpu.vector_store %arg8[%c0_17, %c0_18], %21 {strides = array<i32>} : memref<16x128xf32, #tpu.memory_space<vmem>>, vector<16x128xf32>,
    return
  }
  func.func @transform_0(%arg0: i32) -> (i32, i32) {
    %c0_i32 = arith.constant 0 : i32
    %c0_i32_0 = arith.constant 0 : i32
    return %arg0, %c0_i32 : i32, i32
  }
  func.func @transform_1(%arg0: i32) -> (i32, i32) {
    %c0_i32 = arith.constant 0 : i32
    %c0_i32_0 = arith.constant 0 : i32
    %c0_i32_1 = arith.constant 0 : i32
    return %c0_i32, %c0_i32_0 : i32, i32
  }
  func.func @transform_2(%arg0: i32) -> (i32, i32) {
    %c0_i32 = arith.constant 0 : i32
    %c0_i32_0 = arith.constant 0 : i32
    %c0_i32_1 = arith.constant 0 : i32
    return %c0_i32, %c0_i32_0 : i32, i32
  }
  func.func @transform_3(%arg0: i32) -> (i32, i32) {
    %c0_i32 = arith.constant 0 : i32
    %c0_i32_0 = arith.constant 0 : i32
    %c0_i32_1 = arith.constant 0 : i32
    return %c0_i32, %c0_i32_0 : i32, i32
  }
  func.func @transform_4(%arg0: i32) -> (i32, i32) {
    %c0_i32 = arith.constant 0 : i32
    %c0_i32_0 = arith.constant 0 : i32
    %c0_i32_1 = arith.constant 0 : i32
    return %c0_i32, %c0_i32_0 : i32, i32
  }
  func.func @transform_5(%arg0: i32) -> (i32, i32) {
    %c0_i32 = arith.constant 0 : i32
    %c0_i32_0 = arith.constant 0 : i32
    %c0_i32_1 = arith.constant 0 : i32
    return %c0_i32, %c0_i32_0 : i32, i32
  }
  func.func @transform_6(%arg0: i32) -> (i32, i32) {
    %c0_i32 = arith.constant 0 : i32
    %c0_i32_0 = arith.constant 0 : i32
    %c0_i32_1 = arith.constant 0 : i32
    return %c0_i32, %c0_i32_0 : i32, i32
  }
  func.func @transform_7(%arg0: i32) -> (i32, i32) {
    %c0_i32 = arith.constant 0 : i32
    %c0_i32_0 = arith.constant 0 : i32
    return %arg0, %c0_i32 : i32, i32
  }
}

</mosaic_0001>

<bundles_post_ra>
// kernel: tpu_custom_call.1
= control target key start
LH: loop header
LB: loop body
LE: loop exit
PB: predicated region body
PF: predicated region fallthrough
CT: control target
= control target key end

     0   :  { %12 = vsyncpa [#allocation3], 0  ;;  %s8042_s0 = inlined_call_operand.hbm [shape: bf16[16,1024], index: 0, kind: input, shape index: {}]   ;;  %s8043_s1 = inlined_call_operand.hbm [shape: bf16[1024,1024], index: 1, kind: input, shape index: {}]   ;;  %s8044_s2 = inlined_call_operand.hbm [shape: f32[1,1024], index: 2, kind: input, shape index: {}]   ;;  %s8045_s3 = inlined_call_operand.hbm [shape: bf16[1024,512], index: 3, kind: input, shape index: {}]   ;;  %s8046_s4 = inlined_call_operand.hbm [shape: f32[1,512], index: 4, kind: input, shape index: {}]   ;;  %s8047_s5 = inlined_call_operand.hbm [shape: bf16[512,128], index: 5, kind: input, shape index: {}]   ;;  %s8048_s6 = inlined_call_operand.hbm [shape: f32[1,128], index: 6, kind: input, shape index: {}]   ;;  %s8049_s7 = inlined_call_operand.hbm [shape: f32[16,128], index: 7, kind: output, shape index: {}]  }
   0x1   :  { %13 = vsyncpa [#allocation6], 0 }
   0x2   :  { %14 = vsyncpa [#allocation9], 0 }
   0x3   :  { %15 = vsyncpa [#allocation12], 0 }
   0x4   :  { %16 = vsyncpa [#allocation4], 0  ;;  %s7728_s24 = smov [#allocation5]   ;;  %s7729_s26 = smov [#allocation8]  }
   0x5   :  { %s34_s25 = sshll.u32 %s7728_s24, 4  ;;  %s56_s27 = sshll.u32 %s7729_s26, 4  ;;  %s35_s25 = int_to_ptr.vmem [resolvable:$true] %s34_s25  ;;  %s57_s27 = int_to_ptr.vmem [resolvable:$true] %s56_s27 }
   0x6   :  { %s7566_s28 = scalar_lea.vmem %s35_s25, 65536  ;;  %p7571_p1 = scmp.lt.s32.totalorder %s35_s25, %s35_s25 }
   0x7   :  { %p7567_p0 = scmp.ne.s32.totalorder %s35_s25, %s7566_s28  ;;  %p7572_p2 = scmp.lt.s32.totalorder %s7566_s28, %s7566_s28 }
   0x9   :  { %p7573_p3 = por %p7572_p2, %p7571_p1 }
   0xb   :  { %p7574_p4 = pnand %p7573_p3, %p7567_p0 }
   0xd   :  { %7577 = shalt.err (!%p7574_p4)
}
   0xe   :  { %s7730_s29 = smov 512   ;;  %s7731_s30 = smov 32  }
   0xf   :  { %40 = dma.hbm_to_vmem [thread:$0]  %s8043_s1, 65536, %s35_s25, [#allocation6], %s7730_s29, %s7730_s29, %s7731_s30  }
  0x10   :  { %s7586_s10 = scalar_lea.vmem %s57_s27, 32768  ;;  %p7591_p6 = scmp.lt.s32.totalorder %s57_s27, %s57_s27 }
  0x11   :  { %p7587_p5 = scmp.ne.s32.totalorder %s57_s27, %s7586_s10  ;;  %p7592_p7 = scmp.lt.s32.totalorder %s7586_s10, %s7586_s10 }
  0x13   :  { %p7593_p8 = por %p7592_p7, %p7591_p6 }
  0x15   :  { %p7594_p9 = pnand %p7593_p8, %p7587_p5 }
  0x17   :  { %7597 = shalt.err (!%p7594_p9)
}
  0x18   :  { %s7732_s11 = smov 256   ;;  %s7733_s12 = smov 16  }
  0x19   :  { %62 = dma.hbm_to_vmem [thread:$0]  %s8045_s3, 32768, %s57_s27, [#allocation9], %s7732_s11, %s7732_s11, %s7733_s12  }
  0x1a   :  { %s7734_s15 = smov [#allocation11]  }
  0x1b   :  { %s78_s16 = sshll.u32 %s7734_s15, 4  ;;  %s79_s16 = int_to_ptr.vmem [resolvable:$true] %s78_s16 }
  0x1c   :  { %s7606_s17 = scalar_lea.vmem %s79_s16, 4096  ;;  %p7611_p11 = scmp.lt.s32.totalorder %s79_s16, %s79_s16 }
  0x1d   :  { %p7607_p10 = scmp.ne.s32.totalorder %s79_s16, %s7606_s17  ;;  %p7612_p12 = scmp.lt.s32.totalorder %s7606_s17, %s7606_s17 }
  0x1f   :  { %p7613_p13 = por %p7612_p12, %p7611_p11 }
  0x21   :  { %p7614_p0 = pnand %p7613_p13, %p7607_p10 }
  0x23   :  { %7617 = shalt.err (!%p7614_p0)
}
  0x24   :  { %s7735_s1 = smov 64   ;;  %s7736_s18 = smov 4  }
  0x25   :  { %84 = dma.hbm_to_vmem [thread:$0]  %s8047_s5, 4096, %s79_s16, [#allocation12], %s7735_s1, %s7735_s1, %s7736_s18  }
  0x26   :  { %s7737_s21 = smov [#allocation2]   ;;  %s7738_s3 = smov [#allocation7]  }
  0x27   :  { %s22_s22 = sshll.u32 %s7737_s21, 4  ;;  %s47_s23 = sshll.u32 %s7738_s3, 4  ;;  %s23_s22 = int_to_ptr.vmem [resolvable:$true] %s22_s22  ;;  %s48_s23 = int_to_ptr.vmem [resolvable:$true] %s47_s23 }
  0x28   :  { %s7626_s24 = scalar_lea.vmem %s23_s22, 1024  ;;  %p7631_p2 = scmp.lt.s32.totalorder %s23_s22, %s23_s22 }
  0x29   :  { %p7627_p1 = scmp.ne.s32.totalorder %s23_s22, %s7626_s24  ;;  %p7632_p3 = scmp.lt.s32.totalorder %s7626_s24, %s7626_s24 }
  0x2b   :  { %p7633_p4 = por %p7632_p3, %p7631_p2 }
  0x2d   :  { %p7634_p5 = pnand %p7633_p4, %p7627_p1 }
  0x2f   :  { %7637 = shalt.err (!%p7634_p5)
}
  0x30   :  { %28 = dma.hbm_to_vmem [thread:$0]  %s8042_s0, 1024, %s23_s22, [#allocation3], %s7730_s29, %s7730_s29, %s7731_s30  }
  0x31   :  { %s7646_s5 = scalar_lea.vmem %s48_s23, 128  ;;  %p7651_p7 = scmp.lt.s32.totalorder %s48_s23, %s48_s23 }
  0x32   :  { %p7647_p6 = scmp.ne.s32.totalorder %s48_s23, %s7646_s5  ;;  %p7652_p8 = scmp.lt.s32.totalorder %s7646_s5, %s7646_s5 }
  0x34   :  { %p7653_p9 = por %p7652_p8, %p7651_p7 }
  0x36   :  { %p7654_p10 = pnand %p7653_p9, %p7647_p6 }
  0x38   :  { %7657 = shalt.err (!%p7654_p10)
}
  0x39   :  { %50 = dma.hbm_to_vmem [thread:$0]  %s8044_s2, 128, %s48_s23, [#allocation6]  }
  0x3a   :  { %s7739_s8 = smov [#allocation10]   ;;  %s7740_s10 = smov [#allocation13]  }
  0x3b   :  { %s69_s9 = sshll.u32 %s7739_s8, 4  ;;  %s91_s11 = sshll.u32 %s7740_s10, 4  ;;  %s70_s9 = int_to_ptr.vmem [resolvable:$true] %s69_s9  ;;  %s92_s11 = int_to_ptr.vmem [resolvable:$true] %s91_s11 }
  0x3c   :  { %s7666_s12 = scalar_lea.vmem %s70_s9, 64  ;;  %p7671_p12 = scmp.lt.s32.totalorder %s70_s9, %s70_s9 }
  0x3d   :  { %p7667_p11 = scmp.ne.s32.totalorder %s70_s9, %s7666_s12  ;;  %p7672_p13 = scmp.lt.s32.totalorder %s7666_s12, %s7666_s12 }
  0x3f   :  { %p7673_p0 = por %p7672_p13, %p7671_p12 }
  0x41   :  { %p7674_p1 = pnand %p7673_p0, %p7667_p11 }
  0x43   :  { %7677 = shalt.err (!%p7674_p1)
}
  0x44   :  { %72 = dma.hbm_to_vmem [thread:$0]  %s8046_s4, 64, %s70_s9, [#allocation9]  }
  0x45   :  { %s7686_s30 = scalar_lea.vmem %s92_s11, 16  ;;  %s7690_s2 = scalar_lea.vmem %s92_s11, 32 }
  0x46   :  { %p7687_p2 = scmp.ne.s32.totalorder %s92_s11, %s7686_s30  ;;  %p7691_p3 = scmp.lt.s32.totalorder %s92_s11, %s92_s11 }
  0x47   :  { %p7692_p4 = scmp.lt.s32.totalorder %s7690_s2, %s7686_s30 }
  0x49   :  { %p7693_p5 = por %p7692_p4, %p7691_p3 }
  0x4b   :  { %p7694_p6 = pnand %p7693_p5, %p7687_p2 }
  0x4d   :  { %7697 = shalt.err (!%p7694_p6)
}
  0x4e   :  { %94 = dma.hbm_to_vmem [thread:$0]  %s8048_s6, 16, %s92_s11, [#allocation12]  }
  0x4f   :  { %7718 = dma.done.wait [#allocation3], 1024  }
  0x50   :  { %7719 = vsyncadd [#allocation3], 4294966272 }
  0x51   :  { %7720 = dma.done.wait [#allocation6], 65664  }
  0x52   :  { %7721 = vsyncadd [#allocation6], 4294901632 }
  0x53   :  { %7722 = dma.done.wait [#allocation9], 32832  }
  0x54   :  { %7723 = vsyncadd [#allocation9], 4294934464 }
  0x55   :  { %7724 = dma.done.wait [#allocation12], 4112  }
  0x56   :  { %7725 = vsyncadd [#allocation12], 4294963184  ;;  %v181_v0 = vld [vmem:[#allocation5 + $0x1c0] sm:$0xff]  ;;  %v7819_v59 = vld [vmem:[#allocation2 + $0x8] sm:$0xff]  ;;  %s7741_s4 = smov [#allocation14]  }
  0x57   :  { %v185_v1 = vld [vmem:[#allocation5 + $0x1e0] sm:$0xff]  ;;  %v7821_v60 = vld [vmem:[#allocation2 + $0x28] sm:$0xff]  ;;  %s6257_s6 = sshll.u32 %s7741_s4, 4  ;;  %s6258_s6 = int_to_ptr.vmem [resolvable:$true] %s6257_s6 }
  0x58   :  { %v309_v2 = vld [vmem:[#allocation5 + $0x5c0] sm:$0xff]  ;;  %v6337_v3 = vcombine.high %v181_v0, %v185_v1  ;;  %v6336_v5 = vcombine.low %v181_v0, %v185_v1  ;;  %v7825_v63 = vcombine.high %v7819_v59, %v7821_v60  ;;  %s7698_s15 = scalar_lea.vmem %s6258_s6, 256  ;;  %p7703_p8 = scmp.lt.s32.totalorder %s6258_s6, %s6258_s6 }
  0x59   :  { %v313_v4 = vld [vmem:[#allocation5 + $0x5e0] sm:$0xff]  ;;  %p7699_p7 = scmp.ne.s32.totalorder %s6258_s6, %s7698_s15  ;;  %p7704_p9 = scmp.lt.s32.totalorder %s7698_s15, %s7698_s15 }
  0x5a   :  { %v173_v6 = vld [vmem:[#allocation5 + $0x180] sm:$0xff]  ;;  %v6465_v8 = vcombine.high %v309_v2, %v313_v4  ;;  %v6464_v9 = vcombine.low %v309_v2, %v313_v4  ;;  %3279 = vmatprep.subr.bf16.mxu0 %v6337_v3  ;;  %3354 = vmatprep.mubr.bf16.mxu1 %v7825_v63 }
  0x5b   :  { %v177_v7 = vld [vmem:[#allocation5 + $0x1a0] sm:$0xff]  ;;  %3280 = vmatpush1.bf16.msra.mxu0 %v6336_v5  ;;  %p7705_p10 = por %p7704_p9, %p7703_p8 }
  0x5c   :  { %v6329_v10 = vcombine.high %v173_v6, %v177_v7  ;;  %v301_v11 = vld [vmem:[#allocation5 + $0x580] sm:$0xff]  ;;  %3322 = vmatprep.subr.bf16.mxu1 %v6465_v8  ;;  %v6328_v18 = vcombine.low %v173_v6, %v177_v7 }
  0x5d   :  { %v305_v12 = vld [vmem:[#allocation5 + $0x5a0] sm:$0xff]  ;;  %3323 = vmatpush1.bf16.msra.mxu1 %v6464_v9  ;;  %p7706_p11 = pnand %p7705_p10, %p7699_p7 }
  0x5e   :  { %v165_v13 = vld [vmem:[#allocation5 + $0x140] sm:$0xff]  ;;  %v6457_v14 = vcombine.high %v301_v11, %v305_v12  ;;  %3281 = vmatprep.subr.bf16.mxu0 %v6329_v10  ;;  %v6456_v19 = vcombine.low %v301_v11, %v305_v12 }
  0x5f   :  { %v169_v15 = vld [vmem:[#allocation5 + $0x160] sm:$0xff]  ;;  %3282 = vmatpush1.bf16.msra.mxu0 %v6328_v18 }
  0x60   :  { %v293_v16 = vld [vmem:[#allocation5 + $0x540] sm:$0xff]  ;;  %v6321_v20 = vcombine.high %v165_v13, %v169_v15  ;;  %3324 = vmatprep.subr.bf16.mxu1 %v6457_v14  ;;  %v6320_v26 = vcombine.low %v165_v13, %v169_v15 }
  0x61   :  { %v297_v17 = vld [vmem:[#allocation5 + $0x560] sm:$0xff]  ;;  %3325 = vmatpush1.bf16.msra.mxu1 %v6456_v19 }
  0x62   :  { %v6449_v21 = vcombine.high %v293_v16, %v297_v17  ;;  %v157_v22 = vld [vmem:[#allocation5 + $0x100] sm:$0xff]  ;;  %3283 = vmatprep.subr.bf16.mxu0 %v6321_v20  ;;  %v6448_v27 = vcombine.low %v293_v16, %v297_v17 }
  0x63   :  { %v161_v23 = vld [vmem:[#allocation5 + $0x120] sm:$0xff]  ;;  %3284 = vmatpush1.bf16.msra.mxu0 %v6320_v26 }
  0x64   :  { %v285_v24 = vld [vmem:[#allocation5 + $0x500] sm:$0xff]  ;;  %v6313_v28 = vcombine.high %v157_v22, %v161_v23  ;;  %3326 = vmatprep.subr.bf16.mxu1 %v6449_v21  ;;  %v6312_v34 = vcombine.low %v157_v22, %v161_v23 }
  0x65   :  { %v289_v25 = vld [vmem:[#allocation5 + $0x520] sm:$0xff]  ;;  %3327 = vmatpush1.bf16.msra.mxu1 %v6448_v27 }
  0x66   :  { %v6441_v29 = vcombine.high %v285_v24, %v289_v25  ;;  %v149_v30 = vld [vmem:[#allocation5 + $0xc0] sm:$0xff]  ;;  %3285 = vmatprep.subr.bf16.mxu0 %v6313_v28  ;;  %v6440_v35 = vcombine.low %v285_v24, %v289_v25 }
  0x67   :  { %v153_v31 = vld [vmem:[#allocation5 + $0xe0] sm:$0xff]  ;;  %3286 = vmatpush1.bf16.msra.mxu0 %v6312_v34 }
  0x68   :  { %v277_v32 = vld [vmem:[#allocation5 + $0x4c0] sm:$0xff]  ;;  %v6305_v36 = vcombine.high %v149_v30, %v153_v31  ;;  %3328 = vmatprep.subr.bf16.mxu1 %v6441_v29  ;;  %v6304_v42 = vcombine.low %v149_v30, %v153_v31 }
  0x69   :  { %v281_v33 = vld [vmem:[#allocation5 + $0x4e0] sm:$0xff]  ;;  %3329 = vmatpush1.bf16.msra.mxu1 %v6440_v35 }
  0x6a   :  { %v6433_v37 = vcombine.high %v277_v32, %v281_v33  ;;  %v141_v38 = vld [vmem:[#allocation5 + $0x80] sm:$0xff]  ;;  %3287 = vmatprep.subr.bf16.mxu0 %v6305_v36  ;;  %v6432_v43 = vcombine.low %v277_v32, %v281_v33 }
  0x6b   :  { %v145_v39 = vld [vmem:[#allocation5 + $0xa0] sm:$0xff]  ;;  %3288 = vmatpush1.bf16.msra.mxu0 %v6304_v42 }
  0x6c   :  { %v269_v40 = vld [vmem:[#allocation5 + $0x480] sm:$0xff]  ;;  %v6297_v44 = vcombine.high %v141_v38, %v145_v39  ;;  %3330 = vmatprep.subr.bf16.mxu1 %v6433_v37  ;;  %v6296_v50 = vcombine.low %v141_v38, %v145_v39 }
  0x6d   :  { %v273_v41 = vld [vmem:[#allocation5 + $0x4a0] sm:$0xff]  ;;  %3331 = vmatpush1.bf16.msra.mxu1 %v6432_v43 }
  0x6e   :  { %v6425_v45 = vcombine.high %v269_v40, %v273_v41  ;;  %v133_v46 = vld [vmem:[#allocation5 + $0x40] sm:$0xff]  ;;  %3289 = vmatprep.subr.bf16.mxu0 %v6297_v44  ;;  %v6424_v51 = vcombine.low %v269_v40, %v273_v41 }
  0x6f   :  { %v137_v47 = vld [vmem:[#allocation5 + $0x60] sm:$0xff]  ;;  %3290 = vmatpush1.bf16.msra.mxu0 %v6296_v50 }
  0x70   :  { %v261_v48 = vld [vmem:[#allocation5 + $0x440] sm:$0xff]  ;;  %v6289_v52 = vcombine.high %v133_v46, %v137_v47  ;;  %3332 = vmatprep.subr.bf16.mxu1 %v6425_v45  ;;  %v6288_v0 = vcombine.low %v133_v46, %v137_v47 }
  0x71   :  { %v265_v49 = vld [vmem:[#allocation5 + $0x460] sm:$0xff]  ;;  %3333 = vmatpush1.bf16.msra.mxu1 %v6424_v51 }
  0x72   :  { %v125_v53 = vld [vmem:[#allocation5] sm:$0xff]  ;;  %v6417_v56 = vcombine.high %v261_v48, %v265_v49  ;;  %3291 = vmatprep.subr.bf16.mxu0 %v6289_v52  ;;  %v6416_v1 = vcombine.low %v261_v48, %v265_v49 }
  0x73   :  { %v7811_v54 = vld [vmem:[#allocation2] sm:$0xff]  ;;  %3292 = vmatpush1.bf16.msra.mxu0 %v6288_v0 }
  0x74   :  { %v7813_v55 = vld [vmem:[#allocation2 + $0x20] sm:$0xff]  ;;  %3334 = vmatprep.subr.bf16.mxu1 %v6417_v56 }
  0x75   :  { %v129_v57 = vld [vmem:[#allocation5 + $0x20] sm:$0xff]  ;;  %v7817_v58 = vcombine.high %v7811_v54, %v7813_v55  ;;  %3335 = vmatpush1.bf16.msra.mxu1 %v6416_v1 }
  0x76   :  { %v253_v61 = vld [vmem:[#allocation5 + $0x400] sm:$0xff]  ;;  %v6281_v2 = vcombine.high %v125_v53, %v129_v57  ;;  %v6280_v8 = vcombine.low %v125_v53, %v129_v57 }
  0x77   :  { %v257_v62 = vld [vmem:[#allocation5 + $0x420] sm:$0xff]  ;;  %3311 = vmatprep.mubr.bf16.mxu0 %v7817_v58 }
  0x78   :  { %v6409_v3 = vcombine.high %v253_v61, %v257_v62  ;;  %v245_v4 = vld [vmem:[#allocation5 + $0x3c0] sm:$0xff]  ;;  %3293 = vmatprep.subr.bf16.mxu0 %v6281_v2  ;;  %v6408_v9 = vcombine.low %v253_v61, %v257_v62 }
  0x79   :  { %v249_v5 = vld [vmem:[#allocation5 + $0x3e0] sm:$0xff]  ;;  %3294 = vmatpush1.bf16.msra.mxu0 %v6280_v8 }
  0x7a   :  { %v373_v6 = vld [vmem:[#allocation5 + $0x7c0] sm:$0xff]  ;;  %v6401_v10 = vcombine.high %v245_v4, %v249_v5  ;;  %3336 = vmatprep.subr.bf16.mxu1 %v6409_v3  ;;  %v6400_v16 = vcombine.low %v245_v4, %v249_v5 }
  0x7b   :  { %v377_v7 = vld [vmem:[#allocation5 + $0x7e0] sm:$0xff]  ;;  %3337 = vmatpush1.bf16.msra.mxu1 %v6408_v9 }
  0x7c   :  { %v6529_v11 = vcombine.high %v373_v6, %v377_v7  ;;  %v237_v12 = vld [vmem:[#allocation5 + $0x380] sm:$0xff]  ;;  %3295 = vmatprep.subr.bf16.mxu0 %v6401_v10  ;;  %v6528_v17 = vcombine.low %v373_v6, %v377_v7 }
  0x7d   :  { %v241_v13 = vld [vmem:[#allocation5 + $0x3a0] sm:$0xff]  ;;  %3296 = vmatpush2.bf16.msra.mxu0 %v6400_v16 }
  0x7e   :  { %v365_v14 = vld [vmem:[#allocation5 + $0x780] sm:$0xff]  ;;  %v6393_v18 = vcombine.high %v237_v12, %v241_v13  ;;  %3338 = vmatprep.subr.bf16.mxu1 %v6529_v11  ;;  %v6392_v24 = vcombine.low %v237_v12, %v241_v13 }
  0x7f   :  { %v369_v15 = vld [vmem:[#allocation5 + $0x7a0] sm:$0xff]  ;;  %3339 = vmatpush2.bf16.msra.mxu1 %v6528_v17 }
  0x80   :  { %v6521_v19 = vcombine.high %v365_v14, %v369_v15  ;;  %v229_v20 = vld [vmem:[#allocation5 + $0x340] sm:$0xff]  ;;  %3297 = vmatprep.subr.bf16.mxu0 %v6393_v18  ;;  %v6520_v25 = vcombine.low %v365_v14, %v369_v15 }
  0x81   :  { %v233_v21 = vld [vmem:[#allocation5 + $0x360] sm:$0xff]  ;;  %3298 = vmatpush2.bf16.msra.mxu0 %v6392_v24  ;;  %v7835_v24 = vld [vmem:[#allocation2 + $0x30] sm:$0xff] }
  0x82   :  { %v357_v22 = vld [vmem:[#allocation5 + $0x740] sm:$0xff]  ;;  %v6385_v26 = vcombine.high %v229_v20, %v233_v21  ;;  %3340 = vmatprep.subr.bf16.mxu1 %v6521_v19  ;;  %v6384_v32 = vcombine.low %v229_v20, %v233_v21  ;;  %v7831_v21 = vcombine.low %v7811_v54, %v7813_v55 }
  0x83   :  { %v361_v23 = vld [vmem:[#allocation5 + $0x760] sm:$0xff]  ;;  %3341 = vmatpush2.bf16.msra.mxu1 %v6520_v25  ;;  %v7839_v25 = vcombine.low %v7819_v59, %v7821_v60 }
  0x84   :  { %v6513_v27 = vcombine.high %v357_v22, %v361_v23  ;;  %v221_v28 = vld [vmem:[#allocation5 + $0x300] sm:$0xff]  ;;  %3299 = vmatprep.subr.bf16.mxu0 %v6385_v26  ;;  %v6512_v33 = vcombine.low %v357_v22, %v361_v23  ;;  %v7833_v23 = vld [vmem:[#allocation2 + $0x10] sm:$0xff] }
  0x85   :  { %v225_v29 = vld [vmem:[#allocation5 + $0x320] sm:$0xff]  ;;  %3300 = vmatpush2.bf16.msra.mxu0 %v6384_v32  ;;  %v7847_v32 = vcombine.high %v7833_v23, %v7835_v24 }
  0x86   :  { %v349_v30 = vld [vmem:[#allocation5 + $0x700] sm:$0xff]  ;;  %v6377_v34 = vcombine.high %v221_v28, %v225_v29  ;;  %3342 = vmatprep.subr.bf16.mxu1 %v6513_v27  ;;  %v6376_v40 = vcombine.low %v221_v28, %v225_v29  ;;  %v7841_v27 = vld [vmem:[#allocation2 + $0x18] sm:$0xff] }
  0x87   :  { %v353_v31 = vld [vmem:[#allocation5 + $0x720] sm:$0xff]  ;;  %3343 = vmatpush2.bf16.msra.mxu1 %v6512_v33  ;;  %v7843_v28 = vld [vmem:[#allocation2 + $0x38] sm:$0xff] }
  0x88   :  { %v6505_v35 = vcombine.high %v349_v30, %v353_v31  ;;  %v213_v36 = vld [vmem:[#allocation5 + $0x2c0] sm:$0xff]  ;;  %3301 = vmatprep.subr.bf16.mxu0 %v6377_v34  ;;  %v6504_v41 = vcombine.low %v349_v30, %v353_v31  ;;  %v7852_v33 = vcombine.high %v7841_v27, %v7843_v28 }
  0x89   :  { %v217_v37 = vld [vmem:[#allocation5 + $0x2e0] sm:$0xff]  ;;  %3302 = vmatpush2.bf16.msra.mxu0 %v6376_v40 }
  0x8a   :  { %v341_v38 = vld [vmem:[#allocation5 + $0x6c0] sm:$0xff]  ;;  %v6369_v42 = vcombine.high %v213_v36, %v217_v37  ;;  %3344 = vmatprep.subr.bf16.mxu1 %v6505_v35  ;;  %v6368_v48 = vcombine.low %v213_v36, %v217_v37 }
  0x8b   :  { %v345_v39 = vld [vmem:[#allocation5 + $0x6e0] sm:$0xff]  ;;  %3345 = vmatpush2.bf16.msra.mxu1 %v6504_v41 }
  0x8c   :  { %v6497_v43 = vcombine.high %v341_v38, %v345_v39  ;;  %v205_v44 = vld [vmem:[#allocation5 + $0x280] sm:$0xff]  ;;  %3303 = vmatprep.subr.bf16.mxu0 %v6369_v42  ;;  %v6496_v49 = vcombine.low %v341_v38, %v345_v39 }
  0x8d   :  { %v209_v45 = vld [vmem:[#allocation5 + $0x2a0] sm:$0xff]  ;;  %3304 = vmatpush2.bf16.msra.mxu0 %v6368_v48 }
  0x8e   :  { %v333_v46 = vld [vmem:[#allocation5 + $0x680] sm:$0xff]  ;;  %v6361_v50 = vcombine.high %v205_v44, %v209_v45  ;;  %3346 = vmatprep.subr.bf16.mxu1 %v6497_v43  ;;  %v6360_v61 = vcombine.low %v205_v44, %v209_v45 }
  0x8f   :  { %v337_v47 = vld [vmem:[#allocation5 + $0x6a0] sm:$0xff]  ;;  %3347 = vmatpush2.bf16.msra.mxu1 %v6496_v49 }
  0x90   :  { %v6489_v51 = vcombine.high %v333_v46, %v337_v47  ;;  %v197_v52 = vld [vmem:[#allocation5 + $0x240] sm:$0xff]  ;;  %3305 = vmatprep.subr.bf16.mxu0 %v6361_v50  ;;  %v6488_v62 = vcombine.low %v333_v46, %v337_v47 }
  0x91   :  { %v201_v53 = vld [vmem:[#allocation5 + $0x260] sm:$0xff]  ;;  %3306 = vmatpush2.bf16.msra.mxu0 %v6360_v61 }
  0x92   :  { %v325_v56 = vld [vmem:[#allocation5 + $0x640] sm:$0xff]  ;;  %v6353_v0 = vcombine.high %v197_v52, %v201_v53  ;;  %3348 = vmatprep.subr.bf16.mxu1 %v6489_v51  ;;  %v6352_v6 = vcombine.low %v197_v52, %v201_v53 }
  0x93   :  { %v329_v57 = vld [vmem:[#allocation5 + $0x660] sm:$0xff]  ;;  %3349 = vmatpush2.bf16.msra.mxu1 %v6488_v62 }
  0x94   :  { %v6481_v1 = vcombine.high %v325_v56, %v329_v57  ;;  %v189_v2 = vld [vmem:[#allocation5 + $0x200] sm:$0xff]  ;;  %3307 = vmatprep.subr.bf16.mxu0 %v6353_v0  ;;  %v6480_v7 = vcombine.low %v325_v56, %v329_v57 }
  0x95   :  { %v193_v3 = vld [vmem:[#allocation5 + $0x220] sm:$0xff]  ;;  %3308 = vmatpush2.bf16.msra.mxu0 %v6352_v6 }
  0x96   :  { %v317_v4 = vld [vmem:[#allocation5 + $0x600] sm:$0xff]  ;;  %v6345_v8 = vcombine.high %v189_v2, %v193_v3  ;;  %3350 = vmatprep.subr.bf16.mxu1 %v6481_v1  ;;  %v6344_v14 = vcombine.low %v189_v2, %v193_v3 }
  0x97   :  { %v321_v5 = vld [vmem:[#allocation5 + $0x620] sm:$0xff]  ;;  %3351 = vmatpush2.bf16.msra.mxu1 %v6480_v7 }
  0x98   :  { %v6473_v9 = vcombine.high %v317_v4, %v321_v5  ;;  %v437_v10 = vld [vmem:[#allocation5 + $0x9c0] sm:$0xff]  ;;  %3309 = vmatprep.subr.bf16.mxu0 %v6345_v8  ;;  %v6472_v15 = vcombine.low %v317_v4, %v321_v5 }
  0x99   :  { %v441_v11 = vld [vmem:[#allocation5 + $0x9e0] sm:$0xff]  ;;  %3310 = vmatpush2.bf16.msra.mxu0 %v6344_v14 }
  0x9a   :  { %v565_v12 = vld [vmem:[#allocation5 + $0xdc0] sm:$0xff]  ;;  %v6593_v16 = vcombine.high %v437_v10, %v441_v11  ;;  %3352 = vmatprep.subr.bf16.mxu1 %v6473_v9  ;;  %v6592_v26 = vcombine.low %v437_v10, %v441_v11 }
  0x9b   :  { %v569_v13 = vld [vmem:[#allocation5 + $0xde0] sm:$0xff]  ;;  %3353 = vmatpush2.bf16.msra.mxu1 %v6472_v15 }
  0x9c   :  { %v6721_v17 = vcombine.high %v565_v12, %v569_v13  ;;  %v429_v18 = vld [vmem:[#allocation5 + $0x980] sm:$0xff]  ;;  %3365 = vmatprep.subr.bf16.mxu0 %v6593_v16  ;;  %v6720_v29 = vcombine.low %v565_v12, %v569_v13  ;;  %3312 = vmatmul.mubr.bf16.vlgmr.msra.gmra.mxu0 %v7831_v21 }
  0x9d   :  { %v433_v19 = vld [vmem:[#allocation5 + $0x9a0] sm:$0xff]  ;;  %3366 = vmatpush1.bf16.msra.mxu0 %v6592_v26  ;;  %3397 = vmatprep.mubr.bf16.mxu0 %v7847_v32 }
  0x9e   :  { %v557_v20 = vld [vmem:[#allocation5 + $0xd80] sm:$0xff]  ;;  %v6585_v54 = vcombine.high %v429_v18, %v433_v19  ;;  %3408 = vmatprep.subr.bf16.mxu1 %v6721_v17  ;;  %3355 = vmatmul.mubr.bf16.vlgmr.msra.gmra.mxu1 %v7839_v25  ;;  %v6584_v34 = vcombine.low %v429_v18, %v433_v19 }
  0x9f   :  { %v561_v22 = vld [vmem:[#allocation5 + $0xda0] sm:$0xff]  ;;  %3409 = vmatpush1.bf16.msra.mxu1 %v6720_v29  ;;  %3440 = vmatprep.mubr.bf16.mxu1 %v7852_v33 }
  0xa0   :  { %v6713_v55 = vcombine.high %v557_v20, %v561_v22  ;;  %v421_v30 = vld [vmem:[#allocation5 + $0x940] sm:$0xff]  ;;  %3367 = vmatprep.subr.bf16.mxu0 %v6585_v54  ;;  %v6712_v35 = vcombine.low %v557_v20, %v561_v22 }
  0xa1   :  { %v425_v31 = vld [vmem:[#allocation5 + $0x960] sm:$0xff]  ;;  %3368 = vmatpush1.bf16.msra.mxu0 %v6584_v34 }
  0xa2   :  { %v549_v59 = vld [vmem:[#allocation5 + $0xd40] sm:$0xff]  ;;  %v6577_v36 = vcombine.high %v421_v30, %v425_v31  ;;  %3410 = vmatprep.subr.bf16.mxu1 %v6713_v55  ;;  %v6576_v42 = vcombine.low %v421_v30, %v425_v31 }
  0xa3   :  { %v553_v60 = vld [vmem:[#allocation5 + $0xd60] sm:$0xff]  ;;  %3411 = vmatpush1.bf16.msra.mxu1 %v6712_v35 }
  0xa4   :  { %v413_v37 = vld [vmem:[#allocation5 + $0x900] sm:$0xff]  ;;  %v6705_v40 = vcombine.high %v549_v59, %v553_v60  ;;  %3369 = vmatprep.subr.bf16.mxu0 %v6577_v36  ;;  %v6704_v43 = vcombine.low %v549_v59, %v553_v60 }
  0xa5   :  { %v417_v38 = vld [vmem:[#allocation5 + $0x920] sm:$0xff]  ;;  %3370 = vmatpush1.bf16.msra.mxu0 %v6576_v42 }
  0xa6   :  { %v541_v39 = vld [vmem:[#allocation5 + $0xd00] sm:$0xff]  ;;  %v6569_v44 = vcombine.high %v413_v37, %v417_v38  ;;  %3412 = vmatprep.subr.bf16.mxu1 %v6705_v40  ;;  %v6568_v50 = vcombine.low %v413_v37, %v417_v38 }
  0xa7   :  { %v545_v41 = vld [vmem:[#allocation5 + $0xd20] sm:$0xff]  ;;  %3413 = vmatpush1.bf16.msra.mxu1 %v6704_v43 }
  0xa8   :  { %v405_v45 = vld [vmem:[#allocation5 + $0x8c0] sm:$0xff]  ;;  %v6697_v48 = vcombine.high %v541_v39, %v545_v41  ;;  %3371 = vmatprep.subr.bf16.mxu0 %v6569_v44  ;;  %v6696_v51 = vcombine.low %v541_v39, %v545_v41 }
  0xa9   :  { %v409_v46 = vld [vmem:[#allocation5 + $0x8e0] sm:$0xff]  ;;  %3372 = vmatpush1.bf16.msra.mxu0 %v6568_v50 }
  0xaa   :  { %v533_v47 = vld [vmem:[#allocation5 + $0xcc0] sm:$0xff]  ;;  %v6561_v52 = vcombine.high %v405_v45, %v409_v46  ;;  %3414 = vmatprep.subr.bf16.mxu1 %v6697_v48  ;;  %v6560_v0 = vcombine.low %v405_v45, %v409_v46 }
  0xab   :  { %v537_v49 = vld [vmem:[#allocation5 + $0xce0] sm:$0xff]  ;;  %3415 = vmatpush1.bf16.msra.mxu1 %v6696_v51 }
  0xac   :  { %v397_v53 = vld [vmem:[#allocation5 + $0x880] sm:$0xff]  ;;  %v6689_v61 = vcombine.high %v533_v47, %v537_v49  ;;  %3373 = vmatprep.subr.bf16.mxu0 %v6561_v52  ;;  %v6688_v1 = vcombine.low %v533_v47, %v537_v49 }
  0xad   :  { %v401_v56 = vld [vmem:[#allocation5 + $0x8a0] sm:$0xff]  ;;  %3374 = vmatpush1.bf16.msra.mxu0 %v6560_v0 }
  0xae   :  { %v525_v57 = vld [vmem:[#allocation5 + $0xc80] sm:$0xff]  ;;  %v6553_v2 = vcombine.high %v397_v53, %v401_v56  ;;  %3416 = vmatprep.subr.bf16.mxu1 %v6689_v61  ;;  %v6552_v8 = vcombine.low %v397_v53, %v401_v56 }
  0xaf   :  { %v529_v62 = vld [vmem:[#allocation5 + $0xca0] sm:$0xff]  ;;  %3417 = vmatpush1.bf16.msra.mxu1 %v6688_v1 }
  0xb0   :  { %v389_v3 = vld [vmem:[#allocation5 + $0x840] sm:$0xff]  ;;  %v6681_v6 = vcombine.high %v525_v57, %v529_v62  ;;  %3375 = vmatprep.subr.bf16.mxu0 %v6553_v2  ;;  %v6680_v9 = vcombine.low %v525_v57, %v529_v62 }
  0xb1   :  { %v393_v4 = vld [vmem:[#allocation5 + $0x860] sm:$0xff]  ;;  %3376 = vmatpush1.bf16.msra.mxu0 %v6552_v8 }
  0xb2   :  { %v517_v5 = vld [vmem:[#allocation5 + $0xc40] sm:$0xff]  ;;  %v6545_v10 = vcombine.high %v389_v3, %v393_v4  ;;  %3418 = vmatprep.subr.bf16.mxu1 %v6681_v6  ;;  %v6544_v16 = vcombine.low %v389_v3, %v393_v4 }
  0xb3   :  { %v521_v7 = vld [vmem:[#allocation5 + $0xc60] sm:$0xff]  ;;  %3419 = vmatpush1.bf16.msra.mxu1 %v6680_v9 }
  0xb4   :  { %v381_v11 = vld [vmem:[#allocation5 + $0x800] sm:$0xff]  ;;  %v6673_v14 = vcombine.high %v517_v5, %v521_v7  ;;  %3377 = vmatprep.subr.bf16.mxu0 %v6545_v10  ;;  %v6672_v17 = vcombine.low %v517_v5, %v521_v7 }
  0xb5   :  { %v385_v12 = vld [vmem:[#allocation5 + $0x820] sm:$0xff]  ;;  %3378 = vmatpush1.bf16.msra.mxu0 %v6544_v16 }
  0xb6   :  { %v509_v13 = vld [vmem:[#allocation5 + $0xc00] sm:$0xff]  ;;  %v6537_v18 = vcombine.high %v381_v11, %v385_v12  ;;  %3420 = vmatprep.subr.bf16.mxu1 %v6673_v14  ;;  %v6536_v54 = vcombine.low %v381_v11, %v385_v12 }
  0xb7   :  { %v513_v15 = vld [vmem:[#allocation5 + $0xc20] sm:$0xff]  ;;  %3421 = vmatpush1.bf16.msra.mxu1 %v6672_v17 }
  0xb8   :  { %v501_v19 = vld [vmem:[#allocation5 + $0xbc0] sm:$0xff]  ;;  %v6665_v26 = vcombine.high %v509_v13, %v513_v15  ;;  %3379 = vmatprep.subr.bf16.mxu0 %v6537_v18  ;;  %v6664_v55 = vcombine.low %v509_v13, %v513_v15 }
  0xb9   :  { %v505_v20 = vld [vmem:[#allocation5 + $0xbe0] sm:$0xff]  ;;  %3380 = vmatpush1.bf16.msra.mxu0 %v6536_v54 }
  0xba   :  { %v629_v22 = vld [vmem:[#allocation5 + $0xfc0] sm:$0xff]  ;;  %v6657_v30 = vcombine.high %v501_v19, %v505_v20  ;;  %3422 = vmatprep.subr.bf16.mxu1 %v6665_v26  ;;  %v6656_v36 = vcombine.low %v501_v19, %v505_v20 }
  0xbb   :  { %v633_v29 = vld [vmem:[#allocation5 + $0xfe0] sm:$0xff]  ;;  %3423 = vmatpush1.bf16.msra.mxu1 %v6664_v55 }
  0xbc   :  { %v493_v31 = vld [vmem:[#allocation5 + $0xb80] sm:$0xff]  ;;  %v6785_v34 = vcombine.high %v629_v22, %v633_v29  ;;  %3381 = vmatprep.subr.bf16.mxu0 %v6657_v30  ;;  %v6784_v37 = vcombine.low %v629_v22, %v633_v29 }
  0xbd   :  { %v497_v59 = vld [vmem:[#allocation5 + $0xba0] sm:$0xff]  ;;  %3382 = vmatpush2.bf16.msra.mxu0 %v6656_v36 }
  0xbe   :  { %v621_v60 = vld [vmem:[#allocation5 + $0xf80] sm:$0xff]  ;;  %v6649_v38 = vcombine.high %v493_v31, %v497_v59  ;;  %3424 = vmatprep.subr.bf16.mxu1 %v6785_v34  ;;  %v6648_v44 = vcombine.low %v493_v31, %v497_v59  ;;  %v186_v34 = vld [vmem:[#allocation5 + $0x1e8] sm:$0xff] }
  0xbf   :  { %v625_v35 = vld [vmem:[#allocation5 + $0xfa0] sm:$0xff]  ;;  %3425 = vmatpush2.bf16.msra.mxu1 %v6784_v37  ;;  %v314_v37 = vld [vmem:[#allocation5 + $0x5e8] sm:$0xff] }
  0xc0   :  { %v485_v39 = vld [vmem:[#allocation5 + $0xb40] sm:$0xff]  ;;  %v6777_v42 = vcombine.high %v621_v60, %v625_v35  ;;  %3383 = vmatprep.subr.bf16.mxu0 %v6649_v38  ;;  %v6776_v45 = vcombine.low %v621_v60, %v625_v35  ;;  %v182_v60 = vld [vmem:[#allocation5 + $0x1c8] sm:$0xff] }
  0xc1   :  { %v489_v40 = vld [vmem:[#allocation5 + $0xb60] sm:$0xff]  ;;  %3384 = vmatpush2.bf16.msra.mxu0 %v6648_v44  ;;  %v310_v35 = vld [vmem:[#allocation5 + $0x5c8] sm:$0xff] }
  0xc2   :  { %v613_v41 = vld [vmem:[#allocation5 + $0xf40] sm:$0xff]  ;;  %v6641_v46 = vcombine.high %v485_v39, %v489_v40  ;;  %3426 = vmatprep.subr.bf16.mxu1 %v6777_v42  ;;  %v6640_v52 = vcombine.low %v485_v39, %v489_v40  ;;  %v6339_v40 = vcombine.high %v182_v60, %v186_v34  ;;  %v178_v42 = vld [vmem:[#allocation5 + $0x1a8] sm:$0xff]  ;;  %v6467_v44 = vcombine.high %v310_v35, %v314_v37 }
  0xc3   :  { %v617_v43 = vld [vmem:[#allocation5 + $0xf60] sm:$0xff]  ;;  %3427 = vmatpush2.bf16.msra.mxu1 %v6776_v45  ;;  %v306_v45 = vld [vmem:[#allocation5 + $0x5a8] sm:$0xff] }
  0xc4   :  { %v477_v47 = vld [vmem:[#allocation5 + $0xb00] sm:$0xff]  ;;  %v6769_v50 = vcombine.high %v613_v41, %v617_v43  ;;  %3385 = vmatprep.subr.bf16.mxu0 %v6641_v46  ;;  %v6768_v53 = vcombine.low %v613_v41, %v617_v43  ;;  %v174_v41 = vld [vmem:[#allocation5 + $0x188] sm:$0xff]  ;;  %v7859_v46 = vcombine.low %v7833_v23, %v7835_v24 }
  0xc5   :  { %v481_v48 = vld [vmem:[#allocation5 + $0xb20] sm:$0xff]  ;;  %3386 = vmatpush2.bf16.msra.mxu0 %v6640_v52  ;;  %v302_v43 = vld [vmem:[#allocation5 + $0x588] sm:$0xff]  ;;  %v6330_v23 = vcombine.low %v174_v41, %v178_v42 }
  0xc6   :  { %v605_v49 = vld [vmem:[#allocation5 + $0xf00] sm:$0xff]  ;;  %v6633_v56 = vcombine.high %v477_v47, %v481_v48  ;;  %3428 = vmatprep.subr.bf16.mxu1 %v6769_v50  ;;  %v6632_v2 = vcombine.low %v477_v47, %v481_v48  ;;  %v7863_v47 = vcombine.low %v7841_v27, %v7843_v28  ;;  %v6338_v48 = vcombine.low %v182_v60, %v186_v34  ;;  %v170_v52 = vld [vmem:[#allocation5 + $0x168] sm:$0xff] }
  0xc7   :  { %v609_v51 = vld [vmem:[#allocation5 + $0xf20] sm:$0xff]  ;;  %3429 = vmatpush2.bf16.msra.mxu1 %v6768_v53  ;;  %v6331_v50 = vcombine.high %v174_v41, %v178_v42  ;;  %v6459_v53 = vcombine.high %v302_v43, %v306_v45  ;;  %v6458_v24 = vcombine.low %v302_v43, %v306_v45  ;;  %v158_v28 = vld [vmem:[#allocation5 + $0x108] sm:$0xff] }
  0xc8   :  { %v469_v57 = vld [vmem:[#allocation5 + $0xac0] sm:$0xff]  ;;  %v6761_v0 = vcombine.high %v605_v49, %v609_v51  ;;  %3387 = vmatprep.subr.bf16.mxu0 %v6633_v56  ;;  %v6760_v3 = vcombine.low %v605_v49, %v609_v51  ;;  %v6466_v49 = vcombine.low %v310_v35, %v314_v37  ;;  %v166_v51 = vld [vmem:[#allocation5 + $0x148] sm:$0xff] }
  0xc9   :  { %v473_v61 = vld [vmem:[#allocation5 + $0xae0] sm:$0xff]  ;;  %3388 = vmatpush2.bf16.msra.mxu0 %v6632_v2  ;;  %v294_v56 = vld [vmem:[#allocation5 + $0x548] sm:$0xff]  ;;  %v6323_v27 = vcombine.high %v166_v51, %v170_v52  ;;  %v6322_v2 = vcombine.low %v166_v51, %v170_v52 }
  0xca   :  { %v597_v62 = vld [vmem:[#allocation5 + $0xec0] sm:$0xff]  ;;  %v6625_v4 = vcombine.high %v469_v57, %v473_v61  ;;  %3430 = vmatprep.subr.bf16.mxu1 %v6761_v0  ;;  %v6624_v10 = vcombine.low %v469_v57, %v473_v61  ;;  %v298_v57 = vld [vmem:[#allocation5 + $0x568] sm:$0xff] }
  0xcb   :  { %v601_v1 = vld [vmem:[#allocation5 + $0xee0] sm:$0xff]  ;;  %3431 = vmatpush2.bf16.msra.mxu1 %v6760_v3  ;;  %v162_v61 = vld [vmem:[#allocation5 + $0x128] sm:$0xff]  ;;  %v6451_v0 = vcombine.high %v294_v56, %v298_v57  ;;  %v6450_v3 = vcombine.low %v294_v56, %v298_v57 }
  0xcc   :  { %v461_v5 = vld [vmem:[#allocation5 + $0xa80] sm:$0xff]  ;;  %v6753_v8 = vcombine.high %v597_v62, %v601_v1  ;;  %3389 = vmatprep.subr.bf16.mxu0 %v6625_v4  ;;  %v6752_v11 = vcombine.low %v597_v62, %v601_v1  ;;  %v286_v62 = vld [vmem:[#allocation5 + $0x508] sm:$0xff]  ;;  %v6315_v4 = vcombine.high %v158_v28, %v162_v61 }
  0xcd   :  { %v465_v6 = vld [vmem:[#allocation5 + $0xaa0] sm:$0xff]  ;;  %3390 = vmatpush2.bf16.msra.mxu0 %v6624_v10  ;;  %v290_v1 = vld [vmem:[#allocation5 + $0x528] sm:$0xff]  ;;  %v6314_v10 = vcombine.low %v158_v28, %v162_v61 }
  0xce   :  { %v589_v7 = vld [vmem:[#allocation5 + $0xe80] sm:$0xff]  ;;  %v6617_v12 = vcombine.high %v461_v5, %v465_v6  ;;  %3432 = vmatprep.subr.bf16.mxu1 %v6753_v8  ;;  %v6616_v18 = vcombine.low %v461_v5, %v465_v6  ;;  %v150_v5 = vld [vmem:[#allocation5 + $0xc8] sm:$0xff]  ;;  %v6443_v8 = vcombine.high %v286_v62, %v290_v1 }
  0xcf   :  { %v593_v9 = vld [vmem:[#allocation5 + $0xea0] sm:$0xff]  ;;  %3433 = vmatpush2.bf16.msra.mxu1 %v6752_v11  ;;  %v154_v6 = vld [vmem:[#allocation5 + $0xe8] sm:$0xff]  ;;  %v6442_v11 = vcombine.low %v286_v62, %v290_v1 }
  0xd0   :  { %v453_v13 = vld [vmem:[#allocation5 + $0xa40] sm:$0xff]  ;;  %v6745_v16 = vcombine.high %v589_v7, %v593_v9  ;;  %3391 = vmatprep.subr.bf16.mxu0 %v6617_v12  ;;  %v6744_v19 = vcombine.low %v589_v7, %v593_v9  ;;  %v278_v7 = vld [vmem:[#allocation5 + $0x4c8] sm:$0xff]  ;;  %v6307_v12 = vcombine.high %v150_v5, %v154_v6 }
  0xd1   :  { %v457_v14 = vld [vmem:[#allocation5 + $0xa60] sm:$0xff]  ;;  %3392 = vmatpush2.bf16.msra.mxu0 %v6616_v18  ;;  %v282_v9 = vld [vmem:[#allocation5 + $0x4e8] sm:$0xff]  ;;  %v6306_v18 = vcombine.low %v150_v5, %v154_v6 }
  0xd2   :  { %v581_v15 = vld [vmem:[#allocation5 + $0xe40] sm:$0xff]  ;;  %v6609_v20 = vcombine.high %v453_v13, %v457_v14  ;;  %3434 = vmatprep.subr.bf16.mxu1 %v6745_v16  ;;  %v6608_v30 = vcombine.low %v453_v13, %v457_v14  ;;  %v142_v13 = vld [vmem:[#allocation5 + $0x88] sm:$0xff]  ;;  %v6435_v16 = vcombine.high %v278_v7, %v282_v9 }
  0xd3   :  { %v585_v17 = vld [vmem:[#allocation5 + $0xe60] sm:$0xff]  ;;  %3435 = vmatpush2.bf16.msra.mxu1 %v6744_v19  ;;  %v146_v14 = vld [vmem:[#allocation5 + $0xa8] sm:$0xff]  ;;  %v6434_v19 = vcombine.low %v278_v7, %v282_v9 }
  0xd4   :  { %v445_v22 = vld [vmem:[#allocation5 + $0xa00] sm:$0xff]  ;;  %v6737_v54 = vcombine.high %v581_v15, %v585_v17  ;;  %3393 = vmatprep.subr.bf16.mxu0 %v6609_v20  ;;  %v6736_v31 = vcombine.low %v581_v15, %v585_v17  ;;  %v270_v15 = vld [vmem:[#allocation5 + $0x488] sm:$0xff]  ;;  %v6299_v20 = vcombine.high %v142_v13, %v146_v14 }
  0xd5   :  { %v449_v26 = vld [vmem:[#allocation5 + $0xa20] sm:$0xff]  ;;  %3394 = vmatpush2.bf16.msra.mxu0 %v6608_v30  ;;  %v274_v17 = vld [vmem:[#allocation5 + $0x4a8] sm:$0xff]  ;;  %v6298_v30 = vcombine.low %v142_v13, %v146_v14 }
  0xd6   :  { %v573_v29 = vld [vmem:[#allocation5 + $0xe00] sm:$0xff]  ;;  %v6601_v59 = vcombine.high %v445_v22, %v449_v26  ;;  %3436 = vmatprep.subr.bf16.mxu1 %v6737_v54  ;;  %v6600_v38 = vcombine.low %v445_v22, %v449_v26  ;;  %v134_v22 = vld [vmem:[#allocation5 + $0x48] sm:$0xff]  ;;  %v6427_v54 = vcombine.high %v270_v15, %v274_v17 }
  0xd7   :  { %v577_v55 = vld [vmem:[#allocation5 + $0xe20] sm:$0xff]  ;;  %3437 = vmatpush2.bf16.msra.mxu1 %v6736_v31  ;;  %v138_v26 = vld [vmem:[#allocation5 + $0x68] sm:$0xff]  ;;  %v6426_v31 = vcombine.low %v270_v15, %v274_v17 }
  0xd8   :  { %v6729_v36 = vcombine.high %v573_v29, %v577_v55  ;;  %3395 = vmatprep.subr.bf16.mxu0 %v6601_v59  ;;  %v6728_v39 = vcombine.low %v573_v29, %v577_v55  ;;  %v262_v29 = vld [vmem:[#allocation5 + $0x448] sm:$0xff]  ;;  %v6291_v59 = vcombine.high %v134_v22, %v138_v26 }
  0xd9   :  { %3396 = vmatpush2.bf16.msra.mxu0 %v6600_v38  ;;  %v266_v55 = vld [vmem:[#allocation5 + $0x468] sm:$0xff]  ;;  %v6290_v38 = vcombine.low %v134_v22, %v138_v26 }
  0xda   :  { %3438 = vmatprep.subr.bf16.mxu1 %v6729_v36  ;;  %3451 = vmatprep.subr.bf16.mxu0 %v6339_v40  ;;  %v126_v60 = vld [vmem:[#allocation5 + $0x8] sm:$0xff]  ;;  %v6419_v36 = vcombine.high %v262_v29, %v266_v55 }
  0xdb   :  { %3439 = vmatpush2.bf16.msra.mxu1 %v6728_v39  ;;  %v130_v34 = vld [vmem:[#allocation5 + $0x28] sm:$0xff]  ;;  %v6418_v39 = vcombine.low %v262_v29, %v266_v55 }
  0xdc   :  { %3494 = vmatprep.subr.bf16.mxu1 %v6467_v44  ;;  %3398 = vmatmul.mubr.bf16.vlgmr.msra.gmra.mxu0 %v7859_v46  ;;  %v254_v35 = vld [vmem:[#allocation5 + $0x408] sm:$0xff]  ;;  %v6283_v40 = vcombine.high %v126_v60, %v130_v34 }
  0xdd   :  { %3452 = vmatpush1.bf16.msra.mxu0 %v6338_v48  ;;  %3483 = vmatprep.mubr.bf16.mxu0 %v7817_v58  ;;  %v258_v37 = vld [vmem:[#allocation5 + $0x428] sm:$0xff]  ;;  %v6282_v48 = vcombine.low %v126_v60, %v130_v34 }
  0xde   :  { %3441 = vmatmul.mubr.bf16.vlgmr.msra.gmra.mxu1 %v7863_v47  ;;  %3453 = vmatprep.subr.bf16.mxu0 %v6331_v50  ;;  %v246_v41 = vld [vmem:[#allocation5 + $0x3c8] sm:$0xff]  ;;  %v6411_v44 = vcombine.high %v254_v35, %v258_v37 }
  0xdf   :  { %3495 = vmatpush1.bf16.msra.mxu1 %v6466_v49  ;;  %3526 = vmatprep.mubr.bf16.mxu1 %v7825_v63  ;;  %v250_v42 = vld [vmem:[#allocation5 + $0x3e8] sm:$0xff]  ;;  %v6410_v49 = vcombine.low %v254_v35, %v258_v37 }
  0xe0   :  { %3496 = vmatprep.subr.bf16.mxu1 %v6459_v53  ;;  %v374_v43 = vld [vmem:[#allocation5 + $0x7c8] sm:$0xff]  ;;  %v6403_v50 = vcombine.high %v246_v41, %v250_v42 }
  0xe1   :  { %3454 = vmatpush1.bf16.msra.mxu0 %v6330_v23  ;;  %v378_v45 = vld [vmem:[#allocation5 + $0x7e8] sm:$0xff]  ;;  %v6402_v23 = vcombine.low %v246_v41, %v250_v42 }
  0xe2   :  { %3455 = vmatprep.subr.bf16.mxu0 %v6323_v27  ;;  %v238_v51 = vld [vmem:[#allocation5 + $0x388] sm:$0xff]  ;;  %v6531_v56 = vcombine.high %v374_v43, %v378_v45 }
  0xe3   :  { %3497 = vmatpush1.bf16.msra.mxu1 %v6458_v24  ;;  %v242_v52 = vld [vmem:[#allocation5 + $0x3a8] sm:$0xff]  ;;  %v6530_v24 = vcombine.low %v374_v43, %v378_v45 }
  0xe4   :  { %3498 = vmatprep.subr.bf16.mxu1 %v6451_v0  ;;  %v366_v53 = vld [vmem:[#allocation5 + $0x788] sm:$0xff]  ;;  %v6395_v27 = vcombine.high %v238_v51, %v242_v52 }
  0xe5   :  { %3456 = vmatpush1.bf16.msra.mxu0 %v6322_v2  ;;  %v370_v57 = vld [vmem:[#allocation5 + $0x7a8] sm:$0xff]  ;;  %v6394_v2 = vcombine.low %v238_v51, %v242_v52 }
  0xe6   :  { %3457 = vmatprep.subr.bf16.mxu0 %v6315_v4  ;;  %v230_v28 = vld [vmem:[#allocation5 + $0x348] sm:$0xff]  ;;  %v6523_v0 = vcombine.high %v366_v53, %v370_v57 }
  0xe7   :  { %3499 = vmatpush1.bf16.msra.mxu1 %v6450_v3  ;;  %v234_v61 = vld [vmem:[#allocation5 + $0x368] sm:$0xff]  ;;  %v6522_v3 = vcombine.low %v366_v53, %v370_v57 }
  0xe8   :  { %3500 = vmatprep.subr.bf16.mxu1 %v6443_v8  ;;  %v358_v62 = vld [vmem:[#allocation5 + $0x748] sm:$0xff]  ;;  %v6387_v4 = vcombine.high %v230_v28, %v234_v61 }
  0xe9   :  { %3458 = vmatpush1.bf16.msra.mxu0 %v6314_v10  ;;  %v362_v1 = vld [vmem:[#allocation5 + $0x768] sm:$0xff]  ;;  %v6386_v10 = vcombine.low %v230_v28, %v234_v61 }
  0xea   :  { %3459 = vmatprep.subr.bf16.mxu0 %v6307_v12  ;;  %v222_v5 = vld [vmem:[#allocation5 + $0x308] sm:$0xff]  ;;  %v6515_v8 = vcombine.high %v358_v62, %v362_v1 }
  0xeb   :  { %3501 = vmatpush1.bf16.msra.mxu1 %v6442_v11  ;;  %v226_v6 = vld [vmem:[#allocation5 + $0x328] sm:$0xff]  ;;  %v6514_v11 = vcombine.low %v358_v62, %v362_v1 }
  0xec   :  { %3502 = vmatprep.subr.bf16.mxu1 %v6435_v16  ;;  %v350_v7 = vld [vmem:[#allocation5 + $0x708] sm:$0xff]  ;;  %v6379_v12 = vcombine.high %v222_v5, %v226_v6 }
  0xed   :  { %3460 = vmatpush1.bf16.msra.mxu0 %v6306_v18  ;;  %v354_v9 = vld [vmem:[#allocation5 + $0x728] sm:$0xff]  ;;  %v6378_v18 = vcombine.low %v222_v5, %v226_v6 }
  0xee   :  { %3461 = vmatprep.subr.bf16.mxu0 %v6299_v20  ;;  %v214_v13 = vld [vmem:[#allocation5 + $0x2c8] sm:$0xff]  ;;  %v6507_v16 = vcombine.high %v350_v7, %v354_v9 }
  0xef   :  { %3503 = vmatpush1.bf16.msra.mxu1 %v6434_v19  ;;  %v218_v14 = vld [vmem:[#allocation5 + $0x2e8] sm:$0xff]  ;;  %v6506_v19 = vcombine.low %v350_v7, %v354_v9 }
  0xf0   :  { %3504 = vmatprep.subr.bf16.mxu1 %v6427_v54  ;;  %v342_v15 = vld [vmem:[#allocation5 + $0x6c8] sm:$0xff]  ;;  %v6371_v20 = vcombine.high %v214_v13, %v218_v14 }
  0xf1   :  { %3462 = vmatpush1.bf16.msra.mxu0 %v6298_v30  ;;  %v346_v17 = vld [vmem:[#allocation5 + $0x6e8] sm:$0xff]  ;;  %v6370_v30 = vcombine.low %v214_v13, %v218_v14 }
  0xf2   :  { %3463 = vmatprep.subr.bf16.mxu0 %v6291_v59  ;;  %v206_v22 = vld [vmem:[#allocation5 + $0x288] sm:$0xff]  ;;  %v6499_v54 = vcombine.high %v342_v15, %v346_v17 }
  0xf3   :  { %3505 = vmatpush1.bf16.msra.mxu1 %v6426_v31  ;;  %v210_v26 = vld [vmem:[#allocation5 + $0x2a8] sm:$0xff]  ;;  %v6498_v31 = vcombine.low %v342_v15, %v346_v17 }
  0xf4   :  { %3506 = vmatprep.subr.bf16.mxu1 %v6419_v36  ;;  %v334_v29 = vld [vmem:[#allocation5 + $0x688] sm:$0xff]  ;;  %v6363_v59 = vcombine.high %v206_v22, %v210_v26 }
  0xf5   :  { %3464 = vmatpush1.bf16.msra.mxu0 %v6290_v38  ;;  %v338_v55 = vld [vmem:[#allocation5 + $0x6a8] sm:$0xff]  ;;  %v6362_v38 = vcombine.low %v206_v22, %v210_v26 }
  0xf6   :  { %3465 = vmatprep.subr.bf16.mxu0 %v6283_v40  ;;  %v198_v60 = vld [vmem:[#allocation5 + $0x248] sm:$0xff]  ;;  %v6491_v36 = vcombine.high %v334_v29, %v338_v55 }
  0xf7   :  { %3507 = vmatpush1.bf16.msra.mxu1 %v6418_v39  ;;  %v202_v34 = vld [vmem:[#allocation5 + $0x268] sm:$0xff]  ;;  %v6490_v39 = vcombine.low %v334_v29, %v338_v55 }
  0xf8   :  { %3508 = vmatprep.subr.bf16.mxu1 %v6411_v44  ;;  %v326_v35 = vld [vmem:[#allocation5 + $0x648] sm:$0xff]  ;;  %v6355_v40 = vcombine.high %v198_v60, %v202_v34 }
  0xf9   :  { %3466 = vmatpush1.bf16.msra.mxu0 %v6282_v48  ;;  %v330_v37 = vld [vmem:[#allocation5 + $0x668] sm:$0xff]  ;;  %v6354_v48 = vcombine.low %v198_v60, %v202_v34 }
  0xfa   :  { %3467 = vmatprep.subr.bf16.mxu0 %v6403_v50  ;;  %v190_v41 = vld [vmem:[#allocation5 + $0x208] sm:$0xff]  ;;  %v6483_v44 = vcombine.high %v326_v35, %v330_v37 }
  0xfb   :  { %3509 = vmatpush1.bf16.msra.mxu1 %v6410_v49  ;;  %v194_v42 = vld [vmem:[#allocation5 + $0x228] sm:$0xff]  ;;  %v6482_v49 = vcombine.low %v326_v35, %v330_v37 }
  0xfc   :  { %3510 = vmatprep.subr.bf16.mxu1 %v6531_v56  ;;  %v318_v43 = vld [vmem:[#allocation5 + $0x608] sm:$0xff]  ;;  %v6347_v50 = vcombine.high %v190_v41, %v194_v42 }
  0xfd   :  { %3468 = vmatpush2.bf16.msra.mxu0 %v6402_v23  ;;  %v322_v45 = vld [vmem:[#allocation5 + $0x628] sm:$0xff]  ;;  %v6346_v23 = vcombine.low %v190_v41, %v194_v42 }
  0xfe   :  { %3469 = vmatprep.subr.bf16.mxu0 %v6395_v27  ;;  %v438_v51 = vld [vmem:[#allocation5 + $0x9c8] sm:$0xff]  ;;  %v6475_v56 = vcombine.high %v318_v43, %v322_v45 }
  0xff   :  { %3511 = vmatpush2.bf16.msra.mxu1 %v6530_v24  ;;  %v442_v52 = vld [vmem:[#allocation5 + $0x9e8] sm:$0xff]  ;;  %v6474_v24 = vcombine.low %v318_v43, %v322_v45 }
 0x100   :  { %3512 = vmatprep.subr.bf16.mxu1 %v6523_v0  ;;  %v566_v53 = vld [vmem:[#allocation5 + $0xdc8] sm:$0xff]  ;;  %v6595_v27 = vcombine.high %v438_v51, %v442_v52 }
 0x101   :  { %3470 = vmatpush2.bf16.msra.mxu0 %v6394_v2  ;;  %v570_v57 = vld [vmem:[#allocation5 + $0xde8] sm:$0xff]  ;;  %v6594_v2 = vcombine.low %v438_v51, %v442_v52 }
 0x102   :  { %3471 = vmatprep.subr.bf16.mxu0 %v6387_v4  ;;  %v430_v28 = vld [vmem:[#allocation5 + $0x988] sm:$0xff]  ;;  %v6723_v0 = vcombine.high %v566_v53, %v570_v57 }
 0x103   :  { %3513 = vmatpush2.bf16.msra.mxu1 %v6522_v3  ;;  %v434_v61 = vld [vmem:[#allocation5 + $0x9a8] sm:$0xff]  ;;  %v6722_v3 = vcombine.low %v566_v53, %v570_v57 }
 0x104   :  { %3514 = vmatprep.subr.bf16.mxu1 %v6515_v8  ;;  %v558_v62 = vld [vmem:[#allocation5 + $0xd88] sm:$0xff]  ;;  %v6587_v4 = vcombine.high %v430_v28, %v434_v61 }
 0x105   :  { %3472 = vmatpush2.bf16.msra.mxu0 %v6386_v10  ;;  %v562_v1 = vld [vmem:[#allocation5 + $0xda8] sm:$0xff]  ;;  %v6586_v10 = vcombine.low %v430_v28, %v434_v61 }
 0x106   :  { %3473 = vmatprep.subr.bf16.mxu0 %v6379_v12  ;;  %v422_v5 = vld [vmem:[#allocation5 + $0x948] sm:$0xff]  ;;  %v6715_v8 = vcombine.high %v558_v62, %v562_v1 }
 0x107   :  { %3515 = vmatpush2.bf16.msra.mxu1 %v6514_v11  ;;  %v426_v6 = vld [vmem:[#allocation5 + $0x968] sm:$0xff]  ;;  %v6714_v11 = vcombine.low %v558_v62, %v562_v1 }
 0x108   :  { %3516 = vmatprep.subr.bf16.mxu1 %v6507_v16  ;;  %v550_v7 = vld [vmem:[#allocation5 + $0xd48] sm:$0xff]  ;;  %v6579_v12 = vcombine.high %v422_v5, %v426_v6 }
 0x109   :  { %3474 = vmatpush2.bf16.msra.mxu0 %v6378_v18  ;;  %v554_v9 = vld [vmem:[#allocation5 + $0xd68] sm:$0xff]  ;;  %v6578_v18 = vcombine.low %v422_v5, %v426_v6 }
 0x10a   :  { %3475 = vmatprep.subr.bf16.mxu0 %v6371_v20  ;;  %v414_v13 = vld [vmem:[#allocation5 + $0x908] sm:$0xff]  ;;  %v6707_v16 = vcombine.high %v550_v7, %v554_v9 }
 0x10b   :  { %3517 = vmatpush2.bf16.msra.mxu1 %v6506_v19  ;;  %v418_v14 = vld [vmem:[#allocation5 + $0x928] sm:$0xff]  ;;  %v6706_v19 = vcombine.low %v550_v7, %v554_v9 }
 0x10c   :  { %3518 = vmatprep.subr.bf16.mxu1 %v6499_v54  ;;  %v542_v15 = vld [vmem:[#allocation5 + $0xd08] sm:$0xff]  ;;  %v6571_v20 = vcombine.high %v414_v13, %v418_v14 }
 0x10d   :  { %3476 = vmatpush2.bf16.msra.mxu0 %v6370_v30  ;;  %v546_v17 = vld [vmem:[#allocation5 + $0xd28] sm:$0xff]  ;;  %v6570_v30 = vcombine.low %v414_v13, %v418_v14 }
 0x10e   :  { %3477 = vmatprep.subr.bf16.mxu0 %v6363_v59  ;;  %v406_v22 = vld [vmem:[#allocation5 + $0x8c8] sm:$0xff]  ;;  %v6699_v54 = vcombine.high %v542_v15, %v546_v17 }
 0x10f   :  { %3519 = vmatpush2.bf16.msra.mxu1 %v6498_v31  ;;  %v410_v26 = vld [vmem:[#allocation5 + $0x8e8] sm:$0xff]  ;;  %v6698_v31 = vcombine.low %v542_v15, %v546_v17 }
 0x110   :  { %3520 = vmatprep.subr.bf16.mxu1 %v6491_v36  ;;  %v534_v29 = vld [vmem:[#allocation5 + $0xcc8] sm:$0xff]  ;;  %v6563_v59 = vcombine.high %v406_v22, %v410_v26 }
 0x111   :  { %3478 = vmatpush2.bf16.msra.mxu0 %v6362_v38  ;;  %v538_v55 = vld [vmem:[#allocation5 + $0xce8] sm:$0xff]  ;;  %v6562_v38 = vcombine.low %v406_v22, %v410_v26 }
 0x112   :  { %3479 = vmatprep.subr.bf16.mxu0 %v6355_v40  ;;  %v398_v60 = vld [vmem:[#allocation5 + $0x888] sm:$0xff]  ;;  %v6691_v36 = vcombine.high %v534_v29, %v538_v55 }
 0x113   :  { %3521 = vmatpush2.bf16.msra.mxu1 %v6490_v39  ;;  %v402_v34 = vld [vmem:[#allocation5 + $0x8a8] sm:$0xff]  ;;  %v6690_v39 = vcombine.low %v534_v29, %v538_v55 }
 0x114   :  { %3522 = vmatprep.subr.bf16.mxu1 %v6483_v44  ;;  %v526_v35 = vld [vmem:[#allocation5 + $0xc88] sm:$0xff]  ;;  %v6555_v40 = vcombine.high %v398_v60, %v402_v34 }
 0x115   :  { %3480 = vmatpush2.bf16.msra.mxu0 %v6354_v48  ;;  %v530_v37 = vld [vmem:[#allocation5 + $0xca8] sm:$0xff]  ;;  %v6554_v48 = vcombine.low %v398_v60, %v402_v34 }
 0x116   :  { %3481 = vmatprep.subr.bf16.mxu0 %v6347_v50  ;;  %v390_v41 = vld [vmem:[#allocation5 + $0x848] sm:$0xff]  ;;  %v6683_v44 = vcombine.high %v526_v35, %v530_v37 }
 0x117   :  { %3523 = vmatpush2.bf16.msra.mxu1 %v6482_v49  ;;  %v394_v42 = vld [vmem:[#allocation5 + $0x868] sm:$0xff]  ;;  %v6682_v49 = vcombine.low %v526_v35, %v530_v37 }
 0x118   :  { %3524 = vmatprep.subr.bf16.mxu1 %v6475_v56  ;;  %v518_v43 = vld [vmem:[#allocation5 + $0xc48] sm:$0xff]  ;;  %v6547_v50 = vcombine.high %v390_v41, %v394_v42 }
 0x119   :  { %3482 = vmatpush2.bf16.msra.mxu0 %v6346_v23  ;;  %v522_v45 = vld [vmem:[#allocation5 + $0xc68] sm:$0xff]  ;;  %v6546_v23 = vcombine.low %v390_v41, %v394_v42 }
 0x11a   :  { %3537 = vmatprep.subr.bf16.mxu0 %v6595_v27  ;;  %v382_v51 = vld [vmem:[#allocation5 + $0x808] sm:$0xff]  ;;  %v6675_v56 = vcombine.high %v518_v43, %v522_v45 }
 0x11b   :  { %3525 = vmatpush2.bf16.msra.mxu1 %v6474_v24  ;;  %v386_v52 = vld [vmem:[#allocation5 + $0x828] sm:$0xff]  ;;  %v6674_v24 = vcombine.low %v518_v43, %v522_v45 }
 0x11c   :  { %3580 = vmatprep.subr.bf16.mxu1 %v6723_v0  ;;  %3484 = vmatmul.mubr.bf16.vlgmr.msra.gmra.mxu0 %v7831_v21  ;;  %v510_v53 = vld [vmem:[#allocation5 + $0xc08] sm:$0xff]  ;;  %v6539_v27 = vcombine.high %v382_v51, %v386_v52 }
 0x11d   :  { %3538 = vmatpush1.bf16.msra.mxu0 %v6594_v2  ;;  %3569 = vmatprep.mubr.bf16.mxu0 %v7847_v32  ;;  %v514_v57 = vld [vmem:[#allocation5 + $0xc28] sm:$0xff]  ;;  %v6538_v2 = vcombine.low %v382_v51, %v386_v52 }
 0x11e   :  { %3527 = vmatmul.mubr.bf16.vlgmr.msra.gmra.mxu1 %v7839_v25  ;;  %3539 = vmatprep.subr.bf16.mxu0 %v6587_v4  ;;  %v502_v28 = vld [vmem:[#allocation5 + $0xbc8] sm:$0xff]  ;;  %v6667_v0 = vcombine.high %v510_v53, %v514_v57 }
 0x11f   :  { %3581 = vmatpush1.bf16.msra.mxu1 %v6722_v3  ;;  %3612 = vmatprep.mubr.bf16.mxu1 %v7852_v33  ;;  %v506_v61 = vld [vmem:[#allocation5 + $0xbe8] sm:$0xff]  ;;  %v6666_v3 = vcombine.low %v510_v53, %v514_v57 }
 0x120   :  { %3582 = vmatprep.subr.bf16.mxu1 %v6715_v8  ;;  %v630_v62 = vld [vmem:[#allocation5 + $0xfc8] sm:$0xff]  ;;  %v6659_v4 = vcombine.high %v502_v28, %v506_v61 }
 0x121   :  { %3540 = vmatpush1.bf16.msra.mxu0 %v6586_v10  ;;  %v634_v1 = vld [vmem:[#allocation5 + $0xfe8] sm:$0xff]  ;;  %v6658_v10 = vcombine.low %v502_v28, %v506_v61 }
 0x122   :  { %3541 = vmatprep.subr.bf16.mxu0 %v6579_v12  ;;  %v494_v5 = vld [vmem:[#allocation5 + $0xb88] sm:$0xff]  ;;  %v6787_v8 = vcombine.high %v630_v62, %v634_v1 }
 0x123   :  { %3583 = vmatpush1.bf16.msra.mxu1 %v6714_v11  ;;  %v498_v6 = vld [vmem:[#allocation5 + $0xba8] sm:$0xff]  ;;  %v6786_v11 = vcombine.low %v630_v62, %v634_v1 }
 0x124   :  { %3584 = vmatprep.subr.bf16.mxu1 %v6707_v16  ;;  %v622_v7 = vld [vmem:[#allocation5 + $0xf88] sm:$0xff]  ;;  %v6651_v12 = vcombine.high %v494_v5, %v498_v6 }
 0x125   :  { %3542 = vmatpush1.bf16.msra.mxu0 %v6578_v18  ;;  %v626_v9 = vld [vmem:[#allocation5 + $0xfa8] sm:$0xff]  ;;  %v6650_v18 = vcombine.low %v494_v5, %v498_v6 }
 0x126   :  { %3543 = vmatprep.subr.bf16.mxu0 %v6571_v20  ;;  %v486_v13 = vld [vmem:[#allocation5 + $0xb48] sm:$0xff]  ;;  %v6779_v16 = vcombine.high %v622_v7, %v626_v9 }
 0x127   :  { %3585 = vmatpush1.bf16.msra.mxu1 %v6706_v19  ;;  %v490_v14 = vld [vmem:[#allocation5 + $0xb68] sm:$0xff]  ;;  %v6778_v19 = vcombine.low %v622_v7, %v626_v9  ;;  %v187_v9 = vld [vmem:[#allocation5 + $0x1f0] sm:$0xff] }
 0x128   :  { %3586 = vmatprep.subr.bf16.mxu1 %v6699_v54  ;;  %v614_v15 = vld [vmem:[#allocation5 + $0xf48] sm:$0xff]  ;;  %v6643_v20 = vcombine.high %v486_v13, %v490_v14 }
 0x129   :  { %3544 = vmatpush1.bf16.msra.mxu0 %v6570_v30  ;;  %v618_v17 = vld [vmem:[#allocation5 + $0xf68] sm:$0xff]  ;;  %v6642_v30 = vcombine.low %v486_v13, %v490_v14 }
 0x12a   :  { %3545 = vmatprep.subr.bf16.mxu0 %v6563_v59  ;;  %v6771_v22 = vcombine.high %v614_v15, %v618_v17  ;;  %v478_v26 = vld [vmem:[#allocation5 + $0xb08] sm:$0xff] }
 0x12b   :  { %3587 = vmatpush1.bf16.msra.mxu1 %v6698_v31  ;;  %v482_v29 = vld [vmem:[#allocation5 + $0xb28] sm:$0xff]  ;;  %v6770_v31 = vcombine.low %v614_v15, %v618_v17  ;;  %v7876_v15 = vld [vmem:[#allocation7] sm:$0xff] }
 0x12c   :  { %3588 = vmatprep.subr.bf16.mxu1 %v6691_v36  ;;  %v606_v54 = vld [vmem:[#allocation5 + $0xf08] sm:$0xff]  ;;  %v6635_v59 = vcombine.high %v478_v26, %v482_v29 }
 0x12d   :  { %3546 = vmatpush1.bf16.msra.mxu0 %v6562_v38  ;;  %v610_v55 = vld [vmem:[#allocation5 + $0xf28] sm:$0xff]  ;;  %v6634_v38 = vcombine.low %v478_v26, %v482_v29 }
 0x12e   :  { %3547 = vmatprep.subr.bf16.mxu0 %v6555_v40  ;;  %v6763_v60 = vcombine.high %v606_v54, %v610_v55  ;;  %v470_v34 = vld [vmem:[#allocation5 + $0xac8] sm:$0xff] }
 0x12f   :  { %3589 = vmatpush1.bf16.msra.mxu1 %v6690_v39  ;;  %v474_v35 = vld [vmem:[#allocation5 + $0xae8] sm:$0xff]  ;;  %v6762_v39 = vcombine.low %v606_v54, %v610_v55 }
 0x130   :  { %3590 = vmatprep.subr.bf16.mxu1 %v6683_v44  ;;  %v598_v36 = vld [vmem:[#allocation5 + $0xec8] sm:$0xff]  ;;  %v6627_v40 = vcombine.high %v470_v34, %v474_v35 }
 0x131   :  { %3548 = vmatpush1.bf16.msra.mxu0 %v6554_v48  ;;  %v602_v37 = vld [vmem:[#allocation5 + $0xee8] sm:$0xff]  ;;  %v6626_v48 = vcombine.low %v470_v34, %v474_v35  ;;  %v295_v34 = vld [vmem:[#allocation5 + $0x550] sm:$0xff] }
 0x132   :  { %3549 = vmatprep.subr.bf16.mxu0 %v6547_v50  ;;  %v6755_v41 = vcombine.high %v598_v36, %v602_v37  ;;  %v462_v42 = vld [vmem:[#allocation5 + $0xa88] sm:$0xff]  ;;  %v299_v35 = vld [vmem:[#allocation5 + $0x570] sm:$0xff] }
 0x133   :  { %3591 = vmatpush1.bf16.msra.mxu1 %v6682_v49  ;;  %v466_v43 = vld [vmem:[#allocation5 + $0xaa8] sm:$0xff]  ;;  %v6754_v49 = vcombine.low %v598_v36, %v602_v37 }
 0x134   :  { %3592 = vmatprep.subr.bf16.mxu1 %v6675_v56  ;;  %v590_v44 = vld [vmem:[#allocation5 + $0xe88] sm:$0xff]  ;;  %v6619_v50 = vcombine.high %v462_v42, %v466_v43 }
 0x135   :  { %3550 = vmatpush1.bf16.msra.mxu0 %v6546_v23  ;;  %v594_v45 = vld [vmem:[#allocation5 + $0xea8] sm:$0xff]  ;;  %v6618_v23 = vcombine.low %v462_v42, %v466_v43 }
 0x136   :  { %3551 = vmatprep.subr.bf16.mxu0 %v6539_v27  ;;  %v6747_v51 = vcombine.high %v590_v44, %v594_v45  ;;  %v454_v52 = vld [vmem:[#allocation5 + $0xa48] sm:$0xff]  ;;  %v6746_v27 = vcombine.low %v590_v44, %v594_v45  ;;  %v6453_v44 = vcombine.high %v295_v34, %v299_v35  ;;  %v159_v45 = vld [vmem:[#allocation5 + $0x110] sm:$0xff] }
 0x137   :  { %3593 = vmatpush1.bf16.msra.mxu1 %v6674_v24  ;;  %v458_v53 = vld [vmem:[#allocation5 + $0xa68] sm:$0xff]  ;;  %v639_v24 = vlaneseq }
 0x138   :  { %3594 = vmatprep.subr.bf16.mxu1 %v6667_v0  ;;  %v582_v56 = vld [vmem:[#allocation5 + $0xe48] sm:$0xff]  ;;  %v6611_v28 = vcombine.high %v454_v52, %v458_v53 }
 0x139   :  { %3552 = vmatpush1.bf16.msra.mxu0 %v6538_v2  ;;  %v586_v57 = vld [vmem:[#allocation5 + $0xe68] sm:$0xff] }
 0x13a   :  { %3553 = vmatprep.subr.bf16.mxu0 %v6659_v4  ;;  %v6739_v61 = vcombine.high %v582_v56, %v586_v57  ;;  %v446_v62 = vld [vmem:[#allocation5 + $0xa08] sm:$0xff]  ;;  %v7873_v4 = vshrl.u32 %v639_v24, 7  ;;  %v6738_v5 = vcombine.low %v582_v56, %v586_v57  ;;  %v6452_v57 = vcombine.low %v295_v34, %v299_v35 }
 0x13b   :  { %3595 = vmatpush1.bf16.msra.mxu1 %v6666_v3  ;;  %v450_v0 = vld [vmem:[#allocation5 + $0xa28] sm:$0xff]  ;;  %v6610_v3 = vcombine.low %v454_v52, %v458_v53 }
 0x13c   :  { %3596 = vmatprep.subr.bf16.mxu1 %v6787_v8  ;;  %v574_v1 = vld [vmem:[#allocation5 + $0xe08] sm:$0xff]  ;;  %v6603_v6 = vcombine.high %v446_v62, %v450_v0  ;;  %v183_v8 = vld [vmem:[#allocation5 + $0x1d0] sm:$0xff]  ;;  %v641_v13 = vsub.s32 0, %v7873_v4 }
 0x13d   :  { %3554 = vmatpush2.bf16.msra.mxu0 %v6658_v10  ;;  %v578_v2 = vld [vmem:[#allocation5 + $0xe28] sm:$0xff]  ;;  %v311_v10 = vld [vmem:[#allocation5 + $0x5d0] sm:$0xff]  ;;  %v6340_v29 = vcombine.low %v183_v8, %v187_v9 }
 0x13e   :  { %3555 = vmatprep.subr.bf16.mxu0 %v6651_v12  ;;  %v6731_v7 = vcombine.high %v574_v1, %v578_v2  ;;  %v6602_v12 = vcombine.low %v446_v62, %v450_v0  ;;  %v6730_v14 = vcombine.low %v574_v1, %v578_v2  ;;  %v642_v26 = vrot.slane %v7876_v15, %v641_v13  ;;  %v279_v62 = vld [vmem:[#allocation5 + $0x4d0] sm:$0xff] }
 0x13f   :  { %3597 = vmatpush2.bf16.msra.mxu1 %v6786_v11  ;;  %v315_v11 = vld [vmem:[#allocation5 + $0x5f0] sm:$0xff] }
 0x140   :  { %3598 = vmatprep.subr.bf16.mxu1 %v6779_v16  ;;  %v6341_v16 = vcombine.high %v183_v8, %v187_v9  ;;  %v6469_v17 = vcombine.high %v311_v10, %v315_v11  ;;  %v6468_v54 = vcombine.low %v311_v10, %v315_v11  ;;  %v283_v0 = vld [vmem:[#allocation5 + $0x4f0] sm:$0xff] }
 0x141   :  { %3556 = vmatpush2.bf16.msra.mxu0 %v6650_v18  ;;  %v175_v18 = vld [vmem:[#allocation5 + $0x190] sm:$0xff]  ;;  %v6436_v11 = vcombine.low %v279_v62, %v283_v0 }
 0x142   :  { %3557 = vmatprep.subr.bf16.mxu0 %v6643_v20  ;;  %v303_v20 = vld [vmem:[#allocation5 + $0x590] sm:$0xff] }
 0x143   :  { %3599 = vmatpush2.bf16.msra.mxu1 %v6778_v19  ;;  %v179_v19 = vld [vmem:[#allocation5 + $0x1b0] sm:$0xff] }
 0x144   :  { %3600 = vmatprep.subr.bf16.mxu1 %v6771_v22  ;;  %v307_v22 = vld [vmem:[#allocation5 + $0x5b0] sm:$0xff]  ;;  %v6333_v55 = vcombine.high %v175_v18, %v179_v19 }
 0x145   :  { %3558 = vmatpush2.bf16.msra.mxu0 %v6642_v30  ;;  %v6461_v30 = vcombine.high %v303_v20, %v307_v22  ;;  %v271_v8 = vld [vmem:[#allocation5 + $0x490] sm:$0xff] }
 0x146   :  { %3559 = vmatprep.subr.bf16.mxu0 %v6635_v59  ;;  %v171_v59 = vld [vmem:[#allocation5 + $0x170] sm:$0xff] }
 0x147   :  { %3601 = vmatpush2.bf16.msra.mxu1 %v6770_v31  ;;  %v167_v31 = vld [vmem:[#allocation5 + $0x150] sm:$0xff] }
 0x148   :  { %3602 = vmatprep.subr.bf16.mxu1 %v6763_v60  ;;  %v6324_v53 = vcombine.low %v167_v31, %v171_v59  ;;  %v275_v9 = vld [vmem:[#allocation5 + $0x4b0] sm:$0xff] }
 0x149   :  { %3560 = vmatpush2.bf16.msra.mxu0 %v6634_v38  ;;  %v6332_v38 = vcombine.low %v175_v18, %v179_v19  ;;  %v263_v18 = vld [vmem:[#allocation5 + $0x450] sm:$0xff] }
 0x14a   :  { %3561 = vmatprep.subr.bf16.mxu0 %v6627_v40  ;;  %v6460_v40 = vcombine.low %v303_v20, %v307_v22  ;;  %v267_v19 = vld [vmem:[#allocation5 + $0x470] sm:$0xff]  ;;  %v6428_v22 = vcombine.low %v271_v8, %v275_v9 }
 0x14b   :  { %3603 = vmatpush2.bf16.msra.mxu1 %v6762_v39 }
 0x14c   :  { %3604 = vmatprep.subr.bf16.mxu1 %v6755_v41  ;;  %v6325_v41 = vcombine.high %v167_v31, %v171_v59  ;;  %v259_v31 = vld [vmem:[#allocation5 + $0x430] sm:$0xff] }
 0x14d   :  { %3562 = vmatpush2.bf16.msra.mxu0 %v6626_v48  ;;  %v163_v48 = vld [vmem:[#allocation5 + $0x130] sm:$0xff] }
 0x14e   :  { %3563 = vmatprep.subr.bf16.mxu0 %v6619_v50  ;;  %v287_v50 = vld [vmem:[#allocation5 + $0x510] sm:$0xff]  ;;  %v6316_v1 = vcombine.low %v159_v45, %v163_v48 }
 0x14f   :  { %3605 = vmatpush2.bf16.msra.mxu1 %v6754_v49 }
 0x150   :  { %3606 = vmatprep.subr.bf16.mxu1 %v6747_v51  ;;  %v291_v51 = vld [vmem:[#allocation5 + $0x530] sm:$0xff] }
 0x151   :  { %3564 = vmatpush2.bf16.msra.mxu0 %v6618_v23  ;;  %v6317_v23 = vcombine.high %v159_v45, %v163_v48  ;;  %v6444_v2 = vcombine.low %v287_v50, %v291_v51 }
 0x152   :  { %3565 = vmatprep.subr.bf16.mxu0 %v6611_v28  ;;  %v151_v28 = vld [vmem:[#allocation5 + $0xd0] sm:$0xff] }
 0x153   :  { %3607 = vmatpush2.bf16.msra.mxu1 %v6746_v27  ;;  %v6445_v27 = vcombine.high %v287_v50, %v291_v51  ;;  %v243_v50 = vld [vmem:[#allocation5 + $0x3b0] sm:$0xff] }
 0x154   :  { %3608 = vmatprep.subr.bf16.mxu1 %v6739_v61  ;;  %v155_v61 = vld [vmem:[#allocation5 + $0xf0] sm:$0xff] }
 0x155   :  { %3566 = vmatpush2.bf16.msra.mxu0 %v6610_v3  ;;  %v6309_v3 = vcombine.high %v151_v28, %v155_v61  ;;  %v6308_v10 = vcombine.low %v151_v28, %v155_v61  ;;  %v367_v51 = vld [vmem:[#allocation5 + $0x790] sm:$0xff] }
 0x156   :  { %3567 = vmatprep.subr.bf16.mxu0 %v6603_v6  ;;  %v143_v6 = vld [vmem:[#allocation5 + $0x90] sm:$0xff] }
 0x157   :  { %3609 = vmatpush2.bf16.msra.mxu1 %v6738_v5  ;;  %v6437_v5 = vcombine.high %v279_v62, %v283_v0  ;;  %v235_v28 = vld [vmem:[#allocation5 + $0x370] sm:$0xff] }
 0x158   :  { %3610 = vmatprep.subr.bf16.mxu1 %v6731_v7  ;;  %v147_v7 = vld [vmem:[#allocation5 + $0xb0] sm:$0xff] }
 0x159   :  { %3568 = vmatpush2.bf16.msra.mxu0 %v6602_v12  ;;  %v6301_v12 = vcombine.high %v143_v6, %v147_v7  ;;  %v6300_v20 = vcombine.low %v143_v6, %v147_v7  ;;  %v359_v61 = vld [vmem:[#allocation5 + $0x750] sm:$0xff] }
 0x15a   :  { %3623 = vmatprep.subr.bf16.mxu0 %v6341_v16  ;;  %v135_v16 = vld [vmem:[#allocation5 + $0x50] sm:$0xff] }
 0x15b   :  { %3611 = vmatpush2.bf16.msra.mxu1 %v6730_v14  ;;  %v6429_v14 = vcombine.high %v271_v8, %v275_v9  ;;  %v363_v62 = vld [vmem:[#allocation5 + $0x770] sm:$0xff] }
 0x15c   :  { %3666 = vmatprep.subr.bf16.mxu1 %v6469_v17  ;;  %v3313_v60 = vpop.f32.mrf.mxu0  ;;  %3570 = vmatmul.mubr.bf16.vlgmr.msra.gmra.mxu0 %v7859_v46  ;;  %v139_v17 = vld [vmem:[#allocation5 + $0x70] sm:$0xff] }
 0x15d   :  { %v3314_v36 = vadd.f32 %v3313_v60, %v642_v26  ;;  %3624 = vmatpush1.bf16.msra.mxu0 %v6340_v29  ;;  %3655 = vmatprep.mubr.bf16.mxu0 %v7817_v58  ;;  %v6421_v29 = vcombine.high %v263_v18, %v267_v19  ;;  %v6292_v59 = vcombine.low %v135_v16, %v139_v17  ;;  %v227_v6 = vld [vmem:[#allocation5 + $0x330] sm:$0xff] }
 0x15e   :  { %v3356_v37 = vpop.f32.mrf.mxu1  ;;  %3613 = vmatmul.mubr.bf16.vlgmr.msra.gmra.mxu1 %v7863_v47  ;;  %v7883_v39 = vpop.f32.mrf.mxu0  ;;  %3625 = vmatprep.subr.bf16.mxu0 %v6333_v55  ;;  %v131_v55 = vld [vmem:[#allocation5 + $0x30] sm:$0xff]  ;;  %v6420_v60 = vcombine.low %v263_v18, %v267_v19 }
 0x15f   :  { %3667 = vmatpush1.bf16.msra.mxu1 %v6468_v54  ;;  %v7885_v42 = vadd.f32 %v3356_v37, %v3314_v36  ;;  %3698 = vmatprep.mubr.bf16.mxu1 %v7825_v63  ;;  %v127_v54 = vld [vmem:[#allocation5 + $0x10] sm:$0xff] }
 0x160   :  { %v7887_v43 = vpop.f32.mrf.mxu1  ;;  %3668 = vmatprep.subr.bf16.mxu1 %v6461_v30  ;;  %v3317_v49 = vpop.f32.mrf.mxu0  ;;  %v255_v30 = vld [vmem:[#allocation5 + $0x410] sm:$0xff]  ;;  %v6285_v34 = vcombine.high %v127_v54, %v131_v55 }
 0x161   :  { %v3318_v52 = vadd.f32 %v3317_v49, %v642_v26  ;;  %3626 = vmatpush1.bf16.msra.mxu0 %v6332_v38  ;;  %v6293_v26 = vcombine.high %v135_v16, %v139_v17  ;;  %v6413_v35 = vcombine.high %v255_v30, %v259_v31  ;;  %v247_v36 = vld [vmem:[#allocation5 + $0x3d0] sm:$0xff] }
 0x162   :  { %v3360_v56 = vpop.f32.mrf.mxu1  ;;  %3627 = vmatprep.subr.bf16.mxu0 %v6325_v41  ;;  %v251_v37 = vld [vmem:[#allocation5 + $0x3f0] sm:$0xff]  ;;  %v6284_v41 = vcombine.low %v127_v54, %v131_v55 }
 0x163   :  { %3669 = vmatpush1.bf16.msra.mxu1 %v6460_v40  ;;  %v7891_v24 = vadd.f32 %v3360_v56, %v3318_v52  ;;  %v375_v38 = vld [vmem:[#allocation5 + $0x7d0] sm:$0xff]  ;;  %v6405_v45 = vcombine.high %v247_v36, %v251_v37 }
 0x164   :  { %3670 = vmatprep.subr.bf16.mxu1 %v6453_v44  ;;  %v379_v40 = vld [vmem:[#allocation5 + $0x7f0] sm:$0xff]  ;;  %v6412_v44 = vcombine.low %v255_v30, %v259_v31 }
 0x165   :  { %3628 = vmatpush1.bf16.msra.mxu0 %v6324_v53  ;;  %v6533_v48 = vcombine.high %v375_v38, %v379_v40  ;;  %v239_v49 = vld [vmem:[#allocation5 + $0x390] sm:$0xff]  ;;  %v6404_v53 = vcombine.low %v247_v36, %v251_v37  ;;  %v6532_v56 = vcombine.low %v375_v38, %v379_v40 }
 0x166   :  { %3629 = vmatprep.subr.bf16.mxu0 %v6317_v23  ;;  %v371_v52 = vld [vmem:[#allocation5 + $0x7b0] sm:$0xff]  ;;  %v6396_v0 = vcombine.low %v239_v49, %v243_v50 }
 0x167   :  { %3671 = vmatpush1.bf16.msra.mxu1 %v6452_v57  ;;  %v6397_v57 = vcombine.high %v239_v49, %v243_v50  ;;  %v6525_v23 = vcombine.high %v367_v51, %v371_v52  ;;  %v351_v7 = vld [vmem:[#allocation5 + $0x710] sm:$0xff] }
 0x168   :  { %3672 = vmatprep.subr.bf16.mxu1 %v6445_v27  ;;  %v231_v27 = vld [vmem:[#allocation5 + $0x350] sm:$0xff] }
 0x169   :  { %3630 = vmatpush1.bf16.msra.mxu0 %v6316_v1  ;;  %v6524_v1 = vcombine.low %v367_v51, %v371_v52  ;;  %v355_v8 = vld [vmem:[#allocation5 + $0x730] sm:$0xff]  ;;  %v6388_v9 = vcombine.low %v231_v27, %v235_v28 }
 0x16a   :  { %3631 = vmatprep.subr.bf16.mxu0 %v6309_v3  ;;  %v6517_v3 = vcombine.high %v359_v61, %v363_v62  ;;  %v219_v16 = vld [vmem:[#allocation5 + $0x2f0] sm:$0xff] }
 0x16b   :  { %3673 = vmatpush1.bf16.msra.mxu1 %v6444_v2  ;;  %v6389_v2 = vcombine.high %v231_v27, %v235_v28  ;;  %v343_v17 = vld [vmem:[#allocation5 + $0x6d0] sm:$0xff] }
 0x16c   :  { %3674 = vmatprep.subr.bf16.mxu1 %v6437_v5  ;;  %v223_v5 = vld [vmem:[#allocation5 + $0x310] sm:$0xff] }
 0x16d   :  { %3632 = vmatpush1.bf16.msra.mxu0 %v6308_v10  ;;  %v6516_v10 = vcombine.low %v359_v61, %v363_v62  ;;  %v347_v18 = vld [vmem:[#allocation5 + $0x6f0] sm:$0xff]  ;;  %v6380_v19 = vcombine.low %v223_v5, %v227_v6 }
 0x16e   :  { %3633 = vmatprep.subr.bf16.mxu0 %v6301_v12  ;;  %v6509_v12 = vcombine.high %v351_v7, %v355_v8  ;;  %v211_v54 = vld [vmem:[#allocation5 + $0x2b0] sm:$0xff] }
 0x16f   :  { %3675 = vmatpush1.bf16.msra.mxu1 %v6436_v11  ;;  %v6381_v11 = vcombine.high %v223_v5, %v227_v6  ;;  %v335_v55 = vld [vmem:[#allocation5 + $0x690] sm:$0xff] }
 0x170   :  { %3676 = vmatprep.subr.bf16.mxu1 %v6429_v14  ;;  %v215_v14 = vld [vmem:[#allocation5 + $0x2d0] sm:$0xff] }
 0x171   :  { %3634 = vmatpush1.bf16.msra.mxu0 %v6300_v20  ;;  %v6508_v20 = vcombine.low %v351_v7, %v355_v8  ;;  %v339_v30 = vld [vmem:[#allocation5 + $0x6b0] sm:$0xff]  ;;  %v6372_v31 = vcombine.low %v215_v14, %v219_v16 }
 0x172   :  { %3635 = vmatprep.subr.bf16.mxu0 %v6293_v26  ;;  %v6501_v26 = vcombine.high %v343_v17, %v347_v18  ;;  %v203_v36 = vld [vmem:[#allocation5 + $0x270] sm:$0xff] }
 0x173   :  { %3677 = vmatpush1.bf16.msra.mxu1 %v6428_v22  ;;  %v6373_v22 = vcombine.high %v215_v14, %v219_v16  ;;  %v327_v37 = vld [vmem:[#allocation5 + $0x650] sm:$0xff] }
 0x174   :  { %3678 = vmatprep.subr.bf16.mxu1 %v6421_v29  ;;  %v207_v29 = vld [vmem:[#allocation5 + $0x290] sm:$0xff] }
 0x175   :  { %3636 = vmatpush1.bf16.msra.mxu0 %v6292_v59  ;;  %v6500_v59 = vcombine.low %v343_v17, %v347_v18  ;;  %v331_v38 = vld [vmem:[#allocation5 + $0x670] sm:$0xff]  ;;  %v6364_v40 = vcombine.low %v207_v29, %v211_v54 }
 0x176   :  { %3637 = vmatprep.subr.bf16.mxu0 %v6285_v34  ;;  %v6493_v34 = vcombine.high %v335_v55, %v339_v30  ;;  %v195_v49 = vld [vmem:[#allocation5 + $0x230] sm:$0xff] }
 0x177   :  { %3679 = vmatpush1.bf16.msra.mxu1 %v6420_v60  ;;  %v6365_v60 = vcombine.high %v207_v29, %v211_v54  ;;  %v319_v50 = vld [vmem:[#allocation5 + $0x610] sm:$0xff] }
 0x178   :  { %3680 = vmatprep.subr.bf16.mxu1 %v6413_v35  ;;  %v199_v35 = vld [vmem:[#allocation5 + $0x250] sm:$0xff] }
 0x179   :  { %3638 = vmatpush1.bf16.msra.mxu0 %v6284_v41  ;;  %v6492_v41 = vcombine.low %v335_v55, %v339_v30  ;;  %v323_v51 = vld [vmem:[#allocation5 + $0x630] sm:$0xff]  ;;  %v6356_v52 = vcombine.low %v199_v35, %v203_v36 }
 0x17a   :  { %3639 = vmatprep.subr.bf16.mxu0 %v6405_v45  ;;  %v6485_v45 = vcombine.high %v327_v37, %v331_v38  ;;  %v443_v27 = vld [vmem:[#allocation5 + $0x9f0] sm:$0xff] }
 0x17b   :  { %3681 = vmatpush1.bf16.msra.mxu1 %v6412_v44  ;;  %v6357_v44 = vcombine.high %v199_v35, %v203_v36  ;;  %v567_v28 = vld [vmem:[#allocation5 + $0xdd0] sm:$0xff] }
 0x17c   :  { %3682 = vmatprep.subr.bf16.mxu1 %v6533_v48  ;;  %v191_v48 = vld [vmem:[#allocation5 + $0x210] sm:$0xff] }
 0x17d   :  { %3640 = vmatpush2.bf16.msra.mxu0 %v6404_v53  ;;  %v6484_v53 = vcombine.low %v327_v37, %v331_v38  ;;  %v571_v61 = vld [vmem:[#allocation5 + $0xdf0] sm:$0xff]  ;;  %v6348_v62 = vcombine.low %v191_v48, %v195_v49 }
 0x17e   :  { %3641 = vmatprep.subr.bf16.mxu0 %v6397_v57  ;;  %v6477_v57 = vcombine.high %v319_v50, %v323_v51  ;;  %v435_v5 = vld [vmem:[#allocation5 + $0x9b0] sm:$0xff] }
 0x17f   :  { %3683 = vmatpush2.bf16.msra.mxu1 %v6532_v56  ;;  %v6349_v56 = vcombine.high %v191_v48, %v195_v49  ;;  %v559_v6 = vld [vmem:[#allocation5 + $0xd90] sm:$0xff] }
 0x180   :  { %3684 = vmatprep.subr.bf16.mxu1 %v6525_v23  ;;  %v439_v23 = vld [vmem:[#allocation5 + $0x9d0] sm:$0xff] }
 0x181   :  { %3642 = vmatpush2.bf16.msra.mxu0 %v6396_v0  ;;  %v6476_v0 = vcombine.low %v319_v50, %v323_v51  ;;  %v563_v7 = vld [vmem:[#allocation5 + $0xdb0] sm:$0xff]  ;;  %v6596_v8 = vcombine.low %v439_v23, %v443_v27 }
 0x182   :  { %3643 = vmatprep.subr.bf16.mxu0 %v6389_v2  ;;  %v6725_v2 = vcombine.high %v567_v28, %v571_v61  ;;  %v6717_v14 = vcombine.high %v559_v6, %v563_v7  ;;  %v423_v16 = vld [vmem:[#allocation5 + $0x950] sm:$0xff]  ;;  %v6716_v55 = vcombine.low %v559_v6, %v563_v7 }
 0x183   :  { %3685 = vmatpush2.bf16.msra.mxu1 %v6524_v1  ;;  %v6597_v1 = vcombine.high %v439_v23, %v443_v27  ;;  %v427_v17 = vld [vmem:[#allocation5 + $0x970] sm:$0xff] }
 0x184   :  { %3686 = vmatprep.subr.bf16.mxu1 %v6517_v3  ;;  %v431_v3 = vld [vmem:[#allocation5 + $0x990] sm:$0xff]  ;;  %v6581_v30 = vcombine.high %v423_v16, %v427_v17 }
 0x185   :  { %3644 = vmatpush2.bf16.msra.mxu0 %v6388_v9  ;;  %v7893_v9 = vpop.f32.mrf.mxu0  ;;  %v6588_v29 = vcombine.low %v431_v3, %v435_v5  ;;  %v419_v35 = vld [vmem:[#allocation5 + $0x930] sm:$0xff] }
 0x186   :  { %3645 = vmatprep.subr.bf16.mxu0 %v6381_v11  ;;  %v6589_v11 = vcombine.high %v431_v3, %v435_v5  ;;  %v543_v36 = vld [vmem:[#allocation5 + $0xd10] sm:$0xff] }
 0x187   :  { %3687 = vmatpush2.bf16.msra.mxu1 %v6516_v10  ;;  %v6724_v10 = vcombine.low %v567_v28, %v571_v61  ;;  %v547_v37 = vld [vmem:[#allocation5 + $0xd30] sm:$0xff] }
 0x188   :  { %3688 = vmatprep.subr.bf16.mxu1 %v6509_v12  ;;  %v7895_v12 = vpop.f32.mrf.mxu1  ;;  %v6701_v49 = vcombine.high %v543_v36, %v547_v37  ;;  %v407_v50 = vld [vmem:[#allocation5 + $0x8d0] sm:$0xff] }
 0x189   :  { %3646 = vmatpush2.bf16.msra.mxu0 %v6380_v19  ;;  %v551_v19 = vld [vmem:[#allocation5 + $0xd50] sm:$0xff] }
 0x18a   :  { %3647 = vmatprep.subr.bf16.mxu0 %v6373_v22  ;;  %v411_v51 = vld [vmem:[#allocation5 + $0x8f0] sm:$0xff] }
 0x18b   :  { %3689 = vmatpush2.bf16.msra.mxu1 %v6508_v20  ;;  %v555_v20 = vld [vmem:[#allocation5 + $0xd70] sm:$0xff]  ;;  %v6565_v27 = vcombine.high %v407_v50, %v411_v51  ;;  %v6564_v3 = vcombine.low %v407_v50, %v411_v51 }
 0x18c   :  { %3690 = vmatprep.subr.bf16.mxu1 %v6501_v26 }
 0x18d   :  { %3648 = vmatpush2.bf16.msra.mxu0 %v6372_v31 }
 0x18e   :  { %3649 = vmatprep.subr.bf16.mxu0 %v6365_v60  ;;  %v6709_v60 = vcombine.high %v551_v19, %v555_v20 }
 0x18f   :  { %3691 = vmatpush2.bf16.msra.mxu1 %v6500_v59 }
 0x190   :  { %3692 = vmatprep.subr.bf16.mxu1 %v6493_v34  ;;  %v415_v34 = vld [vmem:[#allocation5 + $0x910] sm:$0xff] }
 0x191   :  { %3650 = vmatpush2.bf16.msra.mxu0 %v6364_v40  ;;  %v6580_v40 = vcombine.low %v423_v16, %v427_v17  ;;  %v6572_v23 = vcombine.low %v415_v34, %v419_v35 }
 0x192   :  { %3651 = vmatprep.subr.bf16.mxu0 %v6357_v44  ;;  %v6708_v44 = vcombine.low %v551_v19, %v555_v20  ;;  %v383_v20 = vld [vmem:[#allocation5 + $0x810] sm:$0xff] }
 0x193   :  { %3693 = vmatpush2.bf16.msra.mxu1 %v6492_v41 }
 0x194   :  { %3694 = vmatprep.subr.bf16.mxu1 %v6485_v45  ;;  %v6573_v45 = vcombine.high %v415_v34, %v419_v35  ;;  %v503_v34 = vld [vmem:[#allocation5 + $0xbd0] sm:$0xff] }
 0x195   :  { %3652 = vmatpush2.bf16.msra.mxu0 %v6356_v52  ;;  %v535_v52 = vld [vmem:[#allocation5 + $0xcd0] sm:$0xff] }
 0x196   :  { %3653 = vmatprep.subr.bf16.mxu0 %v6349_v56  ;;  %v507_v35 = vld [vmem:[#allocation5 + $0xbf0] sm:$0xff] }
 0x197   :  { %3695 = vmatpush2.bf16.msra.mxu1 %v6484_v53  ;;  %v539_v53 = vld [vmem:[#allocation5 + $0xcf0] sm:$0xff]  ;;  %v6660_v50 = vcombine.low %v503_v34, %v507_v35 }
 0x198   :  { %3696 = vmatprep.subr.bf16.mxu1 %v6477_v57  ;;  %v6693_v61 = vcombine.high %v535_v52, %v539_v53  ;;  %v6692_v5 = vcombine.low %v535_v52, %v539_v53 }
 0x199   :  { %3654 = vmatpush2.bf16.msra.mxu0 %v6348_v62  ;;  %v399_v62 = vld [vmem:[#allocation5 + $0x890] sm:$0xff] }
 0x19a   :  { %3709 = vmatprep.subr.bf16.mxu0 %v6597_v1  ;;  %v527_v1 = vld [vmem:[#allocation5 + $0xc90] sm:$0xff] }
 0x19b   :  { %3697 = vmatpush2.bf16.msra.mxu1 %v6476_v0  ;;  %v403_v0 = vld [vmem:[#allocation5 + $0x8b0] sm:$0xff] }
 0x19c   :  { %3752 = vmatprep.subr.bf16.mxu1 %v6725_v2  ;;  %v3399_v18 = vpop.f32.mrf.mxu0  ;;  %3656 = vmatmul.mubr.bf16.vlgmr.msra.gmra.mxu0 %v7831_v21  ;;  %v531_v2 = vld [vmem:[#allocation5 + $0xcb0] sm:$0xff]  ;;  %v6557_v6 = vcombine.high %v399_v62, %v403_v0  ;;  %v6556_v16 = vcombine.low %v399_v62, %v403_v0 }
 0x19d   :  { %v3400_v22 = vadd.f32 %v3399_v18, %v7885_v42  ;;  %3710 = vmatpush1.bf16.msra.mxu0 %v6596_v8  ;;  %3741 = vmatprep.mubr.bf16.mxu0 %v7847_v32  ;;  %v6685_v7 = vcombine.high %v527_v1, %v531_v2  ;;  %v391_v8 = vld [vmem:[#allocation5 + $0x850] sm:$0xff]  ;;  %v6684_v17 = vcombine.low %v527_v1, %v531_v2 }
 0x19e   :  { %v3442_v26 = vpop.f32.mrf.mxu1  ;;  %3699 = vmatmul.mubr.bf16.vlgmr.msra.gmra.mxu1 %v7839_v25  ;;  %v7900_v54 = vpop.f32.mrf.mxu0  ;;  %3711 = vmatprep.subr.bf16.mxu0 %v6589_v11  ;;  %v519_v11 = vld [vmem:[#allocation5 + $0xc50] sm:$0xff] }
 0x19f   :  { %3753 = vmatpush1.bf16.msra.mxu1 %v6724_v10  ;;  %v3443_v31 = vadd.f32 %v3442_v26, %v3400_v22  ;;  %3784 = vmatprep.mubr.bf16.mxu1 %v7852_v33  ;;  %v395_v10 = vld [vmem:[#allocation5 + $0x870] sm:$0xff] }
 0x1a0   :  { %v7902_v59 = vpop.f32.mrf.mxu1  ;;  %3754 = vmatprep.subr.bf16.mxu1 %v6717_v14  ;;  %v3403_v42 = vpop.f32.mrf.mxu0  ;;  %v523_v14 = vld [vmem:[#allocation5 + $0xc70] sm:$0xff]  ;;  %v6549_v18 = vcombine.high %v391_v8, %v395_v10 }
 0x1a1   :  { %v3404_v38 = vadd.f32 %v3403_v42, %v7891_v24  ;;  %3712 = vmatpush1.bf16.msra.mxu0 %v6588_v29  ;;  %v3967_v56 = vmax.f32 %v3443_v31, 0.0  ;;  %v6700_v24 = vcombine.low %v543_v36, %v547_v37  ;;  %v6677_v19 = vcombine.high %v519_v11, %v523_v14  ;;  %v387_v22 = vld [vmem:[#allocation5 + $0x830] sm:$0xff] }
 0x1a2   :  { %v3446_v41 = vpop.f32.mrf.mxu1  ;;  %3713 = vmatprep.subr.bf16.mxu0 %v6581_v30  ;;  %v511_v26 = vld [vmem:[#allocation5 + $0xc10] sm:$0xff]  ;;  %v6676_v30 = vcombine.low %v519_v11, %v523_v14  ;;  %v6541_v31 = vcombine.high %v383_v20, %v387_v22  ;;  %v6540_v37 = vcombine.low %v383_v20, %v387_v22 }
 0x1a3   :  { %3755 = vmatpush1.bf16.msra.mxu1 %v6716_v55  ;;  %v3447_v48 = vadd.f32 %v3446_v41, %v3404_v38  ;;  %v515_v29 = vld [vmem:[#allocation5 + $0xc30] sm:$0xff]  ;;  %v6548_v55 = vcombine.low %v391_v8, %v395_v10 }
 0x1a4   :  { %3756 = vmatprep.subr.bf16.mxu1 %v6709_v60  ;;  %v6669_v60 = vcombine.high %v511_v26, %v515_v29  ;;  %v631_v42 = vld [vmem:[#allocation5 + $0xfd0] sm:$0xff]  ;;  %v6668_v38 = vcombine.low %v511_v26, %v515_v29 }
 0x1a5   :  { %v3975_v57 = vmax.f32 %v3447_v48, 0.0  ;;  %3714 = vmatpush1.bf16.msra.mxu0 %v6580_v40  ;;  %v635_v36 = vld [vmem:[#allocation5 + $0xff0] sm:$0xff]  ;;  %v6661_v40 = vcombine.high %v503_v34, %v507_v35 }
 0x1a6   :  { %3715 = vmatprep.subr.bf16.mxu0 %v6573_v45  ;;  %v6789_v41 = vcombine.high %v631_v42, %v635_v36  ;;  %v499_v45 = vld [vmem:[#allocation5 + $0xbb0] sm:$0xff]  ;;  %v6788_v51 = vcombine.low %v631_v42, %v635_v36 }
 0x1a7   :  { %3757 = vmatpush1.bf16.msra.mxu1 %v6708_v44  ;;  %v7907_v28 = vpack.c.bf16 %v3975_v57, %v3967_v56  ;;  %v495_v44 = vld [vmem:[#allocation5 + $0xb90] sm:$0xff] }
 0x1a8   :  { %3758 = vmatprep.subr.bf16.mxu1 %v6701_v49  ;;  %v623_v48 = vld [vmem:[#allocation5 + $0xf90] sm:$0xff]  ;;  %v6653_v52 = vcombine.high %v495_v44, %v499_v45 }
 0x1a9   :  { %3716 = vmatpush1.bf16.msra.mxu0 %v6572_v23  ;;  %v627_v49 = vld [vmem:[#allocation5 + $0xfb0] sm:$0xff] }
 0x1aa   :  { %3717 = vmatprep.subr.bf16.mxu0 %v6565_v27  ;;  %v6781_v53 = vcombine.high %v623_v48, %v627_v49  ;;  %v487_v56 = vld [vmem:[#allocation5 + $0xb50] sm:$0xff]  ;;  %v6652_v27 = vcombine.low %v495_v44, %v499_v45 }
 0x1ab   :  { %3759 = vmatpush1.bf16.msra.mxu1 %v6700_v24  ;;  %v491_v57 = vld [vmem:[#allocation5 + $0xb70] sm:$0xff] }
 0x1ac   :  { %3760 = vmatprep.subr.bf16.mxu1 %v6693_v61  ;;  %v615_v23 = vld [vmem:[#allocation5 + $0xf50] sm:$0xff]  ;;  %v6780_v61 = vcombine.low %v623_v48, %v627_v49  ;;  %v6645_v62 = vcombine.high %v487_v56, %v491_v57 }
 0x1ad   :  { %3718 = vmatpush1.bf16.msra.mxu0 %v6564_v3  ;;  %v619_v24 = vld [vmem:[#allocation5 + $0xf70] sm:$0xff] }
 0x1ae   :  { %3719 = vmatprep.subr.bf16.mxu0 %v6557_v6  ;;  %v6773_v0 = vcombine.high %v615_v23, %v619_v24  ;;  %v479_v1 = vld [vmem:[#allocation5 + $0xb10] sm:$0xff]  ;;  %v6644_v6 = vcombine.low %v487_v56, %v491_v57 }
 0x1af   :  { %3761 = vmatpush1.bf16.msra.mxu1 %v6692_v5  ;;  %v483_v2 = vld [vmem:[#allocation5 + $0xb30] sm:$0xff] }
 0x1b0   :  { %3762 = vmatprep.subr.bf16.mxu1 %v6685_v7  ;;  %v607_v3 = vld [vmem:[#allocation5 + $0xf10] sm:$0xff]  ;;  %v6772_v7 = vcombine.low %v615_v23, %v619_v24  ;;  %v6637_v8 = vcombine.high %v479_v1, %v483_v2  ;;  %v184_v23 = vld [vmem:[#allocation5 + $0x1d8] sm:$0xff] }
 0x1b1   :  { %3720 = vmatpush1.bf16.msra.mxu0 %v6556_v16  ;;  %v611_v5 = vld [vmem:[#allocation5 + $0xf30] sm:$0xff]  ;;  %v188_v24 = vld [vmem:[#allocation5 + $0x1f8] sm:$0xff] }
 0x1b2   :  { %3721 = vmatprep.subr.bf16.mxu0 %v6549_v18  ;;  %v6765_v10 = vcombine.high %v607_v3, %v611_v5  ;;  %v471_v11 = vld [vmem:[#allocation5 + $0xad0] sm:$0xff]  ;;  %v6636_v18 = vcombine.low %v479_v1, %v483_v2  ;;  %v6343_v2 = vcombine.high %v184_v23, %v188_v24 }
 0x1b3   :  { %3763 = vmatpush1.bf16.msra.mxu1 %v6684_v17  ;;  %v475_v14 = vld [vmem:[#allocation5 + $0xaf0] sm:$0xff] }
 0x1b4   :  { %3764 = vmatprep.subr.bf16.mxu1 %v6677_v19  ;;  %v599_v16 = vld [vmem:[#allocation5 + $0xed0] sm:$0xff]  ;;  %v6764_v19 = vcombine.low %v607_v3, %v611_v5  ;;  %v6629_v20 = vcombine.high %v471_v11, %v475_v14  ;;  %v176_v5 = vld [vmem:[#allocation5 + $0x198] sm:$0xff] }
 0x1b5   :  { %3722 = vmatpush1.bf16.msra.mxu0 %v6548_v55  ;;  %v603_v17 = vld [vmem:[#allocation5 + $0xef0] sm:$0xff] }
 0x1b6   :  { %3723 = vmatprep.subr.bf16.mxu0 %v6541_v31  ;;  %v6757_v22 = vcombine.high %v599_v16, %v603_v17  ;;  %v463_v26 = vld [vmem:[#allocation5 + $0xa90] sm:$0xff]  ;;  %v6628_v31 = vcombine.low %v471_v11, %v475_v14  ;;  %v6342_v11 = vcombine.low %v184_v23, %v188_v24  ;;  %v7913_v14 = vpop.f32.mrf.mxu0  ;;  %v156_v23 = vld [vmem:[#allocation5 + $0xf8] sm:$0xff] }
 0x1b7   :  { %3765 = vmatpush1.bf16.msra.mxu1 %v6676_v30  ;;  %v467_v29 = vld [vmem:[#allocation5 + $0xab0] sm:$0xff]  ;;  %v284_v24 = vld [vmem:[#allocation5 + $0x4f8] sm:$0xff] }
 0x1b8   :  { %3766 = vmatprep.subr.bf16.mxu1 %v6669_v60  ;;  %v591_v55 = vld [vmem:[#allocation5 + $0xe90] sm:$0xff]  ;;  %v6756_v60 = vcombine.low %v599_v16, %v603_v17  ;;  %v6621_v34 = vcombine.high %v463_v26, %v467_v29 }
 0x1b9   :  { %3724 = vmatpush1.bf16.msra.mxu0 %v6540_v37  ;;  %v595_v30 = vld [vmem:[#allocation5 + $0xeb0] sm:$0xff] }
 0x1ba   :  { %3725 = vmatprep.subr.bf16.mxu0 %v6661_v40  ;;  %v6749_v35 = vcombine.high %v591_v55, %v595_v30  ;;  %v455_v42 = vld [vmem:[#allocation5 + $0xa50] sm:$0xff]  ;;  %v6620_v40 = vcombine.low %v463_v26, %v467_v29  ;;  %v296_v29 = vld [vmem:[#allocation5 + $0x558] sm:$0xff] }
 0x1bb   :  { %3767 = vmatpush1.bf16.msra.mxu1 %v6668_v38  ;;  %v459_v36 = vld [vmem:[#allocation5 + $0xa70] sm:$0xff] }
 0x1bc   :  { %3768 = vmatprep.subr.bf16.mxu1 %v6789_v41  ;;  %v583_v37 = vld [vmem:[#allocation5 + $0xe50] sm:$0xff]  ;;  %v6748_v41 = vcombine.low %v591_v55, %v595_v30  ;;  %v6613_v44 = vcombine.high %v455_v42, %v459_v36  ;;  %v300_v55 = vld [vmem:[#allocation5 + $0x578] sm:$0xff] }
 0x1bd   :  { %3726 = vmatpush2.bf16.msra.mxu0 %v6660_v50  ;;  %v587_v38 = vld [vmem:[#allocation5 + $0xe70] sm:$0xff] }
 0x1be   :  { %3727 = vmatprep.subr.bf16.mxu0 %v6653_v52  ;;  %v6741_v45 = vcombine.high %v583_v37, %v587_v38  ;;  %v447_v48 = vld [vmem:[#allocation5 + $0xa10] sm:$0xff]  ;;  %v6612_v52 = vcombine.low %v455_v42, %v459_v36 }
 0x1bf   :  { %3769 = vmatpush2.bf16.msra.mxu1 %v6788_v51  ;;  %v451_v49 = vld [vmem:[#allocation5 + $0xa30] sm:$0xff] }
 0x1c0   :  { %3770 = vmatprep.subr.bf16.mxu1 %v6781_v53  ;;  %v575_v50 = vld [vmem:[#allocation5 + $0xe10] sm:$0xff]  ;;  %v6740_v53 = vcombine.low %v583_v37, %v587_v38  ;;  %v6605_v56 = vcombine.high %v447_v48, %v451_v49  ;;  %v6455_v37 = vcombine.high %v296_v29, %v300_v55  ;;  %v160_v38 = vld [vmem:[#allocation5 + $0x118] sm:$0xff] }
 0x1c1   :  { %3728 = vmatpush2.bf16.msra.mxu0 %v6652_v27  ;;  %v579_v51 = vld [vmem:[#allocation5 + $0xe30] sm:$0xff]  ;;  %v312_v27 = vld [vmem:[#allocation5 + $0x5d8] sm:$0xff] }
 0x1c2   :  { %3729 = vmatprep.subr.bf16.mxu0 %v6645_v62  ;;  %v6733_v57 = vcombine.high %v575_v50, %v579_v51  ;;  %v6604_v62 = vcombine.low %v447_v48, %v451_v49  ;;  %v6732_v1 = vcombine.low %v575_v50, %v579_v51  ;;  %v6454_v51 = vcombine.low %v296_v29, %v300_v55  ;;  %v128_v55 = vld [vmem:[#allocation5 + $0x18] sm:$0xff] }
 0x1c3   :  { %3771 = vmatpush2.bf16.msra.mxu1 %v6780_v61  ;;  %v316_v61 = vld [vmem:[#allocation5 + $0x5f8] sm:$0xff] }
 0x1c4   :  { %3772 = vmatprep.subr.bf16.mxu1 %v6773_v0  ;;  %v649_v0 = vsub.s32 2, %v7873_v4  ;;  %v6471_v3 = vcombine.high %v312_v27, %v316_v61  ;;  %v6470_v16 = vcombine.low %v312_v27, %v316_v61 }
 0x1c5   :  { %3730 = vmatpush2.bf16.msra.mxu0 %v6644_v6  ;;  %v180_v6 = vld [vmem:[#allocation5 + $0x1b8] sm:$0xff] }
 0x1c6   :  { %3731 = vmatprep.subr.bf16.mxu0 %v6637_v8  ;;  %v308_v8 = vld [vmem:[#allocation5 + $0x5b8] sm:$0xff]  ;;  %v6335_v17 = vcombine.high %v176_v5, %v180_v6 }
 0x1c7   :  { %3773 = vmatpush2.bf16.msra.mxu1 %v6772_v7  ;;  %v304_v7 = vld [vmem:[#allocation5 + $0x598] sm:$0xff] }
 0x1c8   :  { %3774 = vmatprep.subr.bf16.mxu1 %v6765_v10  ;;  %v650_v10 = vrot.slane %v7876_v15, %v649_v0 }
 0x1c9   :  { %3732 = vmatpush2.bf16.msra.mxu0 %v6636_v18  ;;  %v7915_v18 = vpop.f32.mrf.mxu1 }
 0x1ca   :  { %3733 = vmatprep.subr.bf16.mxu0 %v6629_v20  ;;  %v168_v20 = vld [vmem:[#allocation5 + $0x158] sm:$0xff] }
 0x1cb   :  { %3775 = vmatpush2.bf16.msra.mxu1 %v6764_v19  ;;  %v6463_v19 = vcombine.high %v304_v7, %v308_v8 }
 0x1cc   :  { %3776 = vmatprep.subr.bf16.mxu1 %v6757_v22  ;;  %v172_v22 = vld [vmem:[#allocation5 + $0x178] sm:$0xff] }
 0x1cd   :  { %3734 = vmatpush2.bf16.msra.mxu0 %v6628_v31  ;;  %v6334_v31 = vcombine.low %v176_v5, %v180_v6  ;;  %v6326_v49 = vcombine.low %v168_v20, %v172_v22  ;;  %v276_v5 = vld [vmem:[#allocation5 + $0x4b8] sm:$0xff] }
 0x1ce   :  { %3735 = vmatprep.subr.bf16.mxu0 %v6621_v34  ;;  %v6462_v34 = vcombine.low %v304_v7, %v308_v8 }
 0x1cf   :  { %3777 = vmatpush2.bf16.msra.mxu1 %v6756_v60 }
 0x1d0   :  { %3778 = vmatprep.subr.bf16.mxu1 %v6749_v35  ;;  %v6327_v35 = vcombine.high %v168_v20, %v172_v22 }
 0x1d1   :  { %3736 = vmatpush2.bf16.msra.mxu0 %v6620_v40  ;;  %v164_v40 = vld [vmem:[#allocation5 + $0x138] sm:$0xff] }
 0x1d2   :  { %3737 = vmatprep.subr.bf16.mxu0 %v6613_v44  ;;  %v288_v44 = vld [vmem:[#allocation5 + $0x518] sm:$0xff]  ;;  %v6318_v27 = vcombine.low %v160_v38, %v164_v40 }
 0x1d3   :  { %3779 = vmatpush2.bf16.msra.mxu1 %v6748_v41 }
 0x1d4   :  { %3780 = vmatprep.subr.bf16.mxu1 %v6741_v45  ;;  %v292_v45 = vld [vmem:[#allocation5 + $0x538] sm:$0xff] }
 0x1d5   :  { %3738 = vmatpush2.bf16.msra.mxu0 %v6612_v52  ;;  %v6319_v52 = vcombine.high %v160_v38, %v164_v40  ;;  %v248_v40 = vld [vmem:[#allocation5 + $0x3d8] sm:$0xff] }
 0x1d6   :  { %3739 = vmatprep.subr.bf16.mxu0 %v6605_v56  ;;  %v6447_v56 = vcombine.high %v288_v44, %v292_v45 }
 0x1d7   :  { %3781 = vmatpush2.bf16.msra.mxu1 %v6740_v53 }
 0x1d8   :  { %3782 = vmatprep.subr.bf16.mxu1 %v6733_v57  ;;  %v152_v57 = vld [vmem:[#allocation5 + $0xd8] sm:$0xff] }
 0x1d9   :  { %3740 = vmatpush2.bf16.msra.mxu0 %v6604_v62  ;;  %v6311_v61 = vcombine.high %v152_v57, %v156_v23  ;;  %v6310_v6 = vcombine.low %v152_v57, %v156_v23  ;;  %v368_v57 = vld [vmem:[#allocation5 + $0x798] sm:$0xff] }
 0x1da   :  { %3795 = vmatprep.subr.bf16.mxu0 %v6343_v2  ;;  %v148_v2 = vld [vmem:[#allocation5 + $0xb8] sm:$0xff] }
 0x1db   :  { %3783 = vmatpush2.bf16.msra.mxu1 %v6732_v1  ;;  %v144_v1 = vld [vmem:[#allocation5 + $0x98] sm:$0xff] }
 0x1dc   :  { %3838 = vmatprep.subr.bf16.mxu1 %v6471_v3  ;;  %v3485_v26 = vpop.f32.mrf.mxu0  ;;  %3742 = vmatmul.mubr.bf16.vlgmr.msra.gmra.mxu0 %v7859_v46  ;;  %v272_v3 = vld [vmem:[#allocation5 + $0x498] sm:$0xff]  ;;  %v6303_v8 = vcombine.high %v144_v1, %v148_v2  ;;  %v6302_v20 = vcombine.low %v144_v1, %v148_v2 }
 0x1dd   :  { %v3486_v30 = vadd.f32 %v3485_v26, %v650_v10  ;;  %3796 = vmatpush1.bf16.msra.mxu0 %v6342_v11  ;;  %3827 = vmatprep.mubr.bf16.mxu0 %v7817_v58  ;;  %v280_v58 = vld [vmem:[#allocation5 + $0x4d8] sm:$0xff]  ;;  %v6430_v22 = vcombine.low %v272_v3, %v276_v5 }
 0x1de   :  { %v3528_v15 = vpop.f32.mrf.mxu1  ;;  %3785 = vmatmul.mubr.bf16.vlgmr.msra.gmra.mxu1 %v7863_v47  ;;  %v7919_v60 = vpop.f32.mrf.mxu0  ;;  %3797 = vmatprep.subr.bf16.mxu0 %v6335_v17  ;;  %v6439_v62 = vcombine.high %v280_v58, %v284_v24  ;;  %v6438_v7 = vcombine.low %v280_v58, %v284_v24  ;;  %v136_v11 = vld [vmem:[#allocation5 + $0x58] sm:$0xff] }
 0x1df   :  { %3839 = vmatpush1.bf16.msra.mxu1 %v6470_v16  ;;  %v7921_v42 = vadd.f32 %v3528_v15, %v3486_v30  ;;  %3870 = vmatprep.mubr.bf16.mxu1 %v7825_v63  ;;  %v6446_v63 = vcombine.low %v288_v44, %v292_v45  ;;  %v140_v16 = vld [vmem:[#allocation5 + $0x78] sm:$0xff] }
 0x1e0   :  { %v7923_v36 = vpop.f32.mrf.mxu1  ;;  %3840 = vmatprep.subr.bf16.mxu1 %v6463_v19  ;;  %v3489_v41 = vpop.f32.mrf.mxu0  ;;  %v264_v17 = vld [vmem:[#allocation5 + $0x458] sm:$0xff]  ;;  %v6295_v26 = vcombine.high %v136_v11, %v140_v16 }
 0x1e1   :  { %v3490_v48 = vadd.f32 %v3489_v41, %v650_v10  ;;  %3798 = vmatpush1.bf16.msra.mxu0 %v6334_v31  ;;  %v6431_v10 = vcombine.high %v272_v3, %v276_v5  ;;  %v268_v19 = vld [vmem:[#allocation5 + $0x478] sm:$0xff] }
 0x1e2   :  { %v3532_v50 = vpop.f32.mrf.mxu1  ;;  %3799 = vmatprep.subr.bf16.mxu0 %v6327_v35  ;;  %v6423_v29 = vcombine.high %v264_v17, %v268_v19  ;;  %v132_v30 = vld [vmem:[#allocation5 + $0x38] sm:$0xff]  ;;  %v6422_v35 = vcombine.low %v264_v17, %v268_v19 }
 0x1e3   :  { %3841 = vmatpush1.bf16.msra.mxu1 %v6462_v34  ;;  %v7927_v53 = vadd.f32 %v3532_v50, %v3490_v48  ;;  %v256_v15 = vld [vmem:[#allocation5 + $0x418] sm:$0xff]  ;;  %v6294_v34 = vcombine.low %v136_v11, %v140_v16  ;;  %v6286_v48 = vcombine.low %v128_v55, %v132_v30 }
 0x1e4   :  { %3842 = vmatprep.subr.bf16.mxu1 %v6455_v37  ;;  %v260_v31 = vld [vmem:[#allocation5 + $0x438] sm:$0xff]  ;;  %v6287_v37 = vcombine.high %v128_v55, %v132_v30 }
 0x1e5   :  { %3800 = vmatpush1.bf16.msra.mxu0 %v6326_v49  ;;  %v6415_v38 = vcombine.high %v256_v15, %v260_v31  ;;  %v252_v41 = vld [vmem:[#allocation5 + $0x3f8] sm:$0xff]  ;;  %v6414_v49 = vcombine.low %v256_v15, %v260_v31 }
 0x1e6   :  { %3801 = vmatprep.subr.bf16.mxu0 %v6319_v52  ;;  %v376_v44 = vld [vmem:[#allocation5 + $0x7d8] sm:$0xff]  ;;  %v6407_v50 = vcombine.high %v248_v40, %v252_v41  ;;  %v6406_v58 = vcombine.low %v248_v40, %v252_v41 }
 0x1e7   :  { %3843 = vmatpush1.bf16.msra.mxu1 %v6454_v51  ;;  %v380_v45 = vld [vmem:[#allocation5 + $0x7f8] sm:$0xff] }
 0x1e8   :  { %3844 = vmatprep.subr.bf16.mxu1 %v6447_v56  ;;  %v6535_v51 = vcombine.high %v376_v44, %v380_v45  ;;  %v240_v52 = vld [vmem:[#allocation5 + $0x398] sm:$0xff]  ;;  %v6534_v24 = vcombine.low %v376_v44, %v380_v45 }
 0x1e9   :  { %3802 = vmatpush1.bf16.msra.mxu0 %v6318_v27  ;;  %v244_v56 = vld [vmem:[#allocation5 + $0x3b8] sm:$0xff] }
 0x1ea   :  { %3803 = vmatprep.subr.bf16.mxu0 %v6311_v61  ;;  %v372_v23 = vld [vmem:[#allocation5 + $0x7b8] sm:$0xff]  ;;  %v6399_v27 = vcombine.high %v240_v52, %v244_v56  ;;  %v6398_v3 = vcombine.low %v240_v52, %v244_v56 }
 0x1eb   :  { %3845 = vmatpush1.bf16.msra.mxu1 %v6446_v63  ;;  %v6527_v63 = vcombine.high %v368_v57, %v372_v23  ;;  %v232_v61 = vld [vmem:[#allocation5 + $0x358] sm:$0xff]  ;;  %v6526_v5 = vcombine.low %v368_v57, %v372_v23 }
 0x1ec   :  { %3846 = vmatprep.subr.bf16.mxu1 %v6439_v62  ;;  %v236_v62 = vld [vmem:[#allocation5 + $0x378] sm:$0xff] }
 0x1ed   :  { %3804 = vmatpush1.bf16.msra.mxu0 %v6310_v6  ;;  %v360_v1 = vld [vmem:[#allocation5 + $0x758] sm:$0xff]  ;;  %v6391_v6 = vcombine.high %v232_v61, %v236_v62  ;;  %v6390_v17 = vcombine.low %v232_v61, %v236_v62 }
 0x1ee   :  { %3805 = vmatprep.subr.bf16.mxu0 %v6303_v8  ;;  %v364_v2 = vld [vmem:[#allocation5 + $0x778] sm:$0xff] }
 0x1ef   :  { %3847 = vmatpush1.bf16.msra.mxu1 %v6438_v7  ;;  %v6519_v7 = vcombine.high %v360_v1, %v364_v2  ;;  %v224_v8 = vld [vmem:[#allocation5 + $0x318] sm:$0xff]  ;;  %v6518_v19 = vcombine.low %v360_v1, %v364_v2 }
 0x1f0   :  { %3848 = vmatprep.subr.bf16.mxu1 %v6431_v10  ;;  %v228_v10 = vld [vmem:[#allocation5 + $0x338] sm:$0xff] }
 0x1f1   :  { %3806 = vmatpush1.bf16.msra.mxu0 %v6302_v20  ;;  %v352_v11 = vld [vmem:[#allocation5 + $0x718] sm:$0xff]  ;;  %v6383_v20 = vcombine.high %v224_v8, %v228_v10  ;;  %v6382_v15 = vcombine.low %v224_v8, %v228_v10 }
 0x1f2   :  { %3807 = vmatprep.subr.bf16.mxu0 %v6295_v26  ;;  %v356_v16 = vld [vmem:[#allocation5 + $0x738] sm:$0xff] }
 0x1f3   :  { %3849 = vmatpush1.bf16.msra.mxu1 %v6430_v22  ;;  %v6511_v22 = vcombine.high %v352_v11, %v356_v16  ;;  %v216_v26 = vld [vmem:[#allocation5 + $0x2d8] sm:$0xff]  ;;  %v6510_v31 = vcombine.low %v352_v11, %v356_v16 }
 0x1f4   :  { %3850 = vmatprep.subr.bf16.mxu1 %v6423_v29  ;;  %v220_v29 = vld [vmem:[#allocation5 + $0x2f8] sm:$0xff] }
 0x1f5   :  { %3808 = vmatpush1.bf16.msra.mxu0 %v6294_v34  ;;  %v344_v55 = vld [vmem:[#allocation5 + $0x6d8] sm:$0xff]  ;;  %v6375_v34 = vcombine.high %v216_v26, %v220_v29  ;;  %v6374_v44 = vcombine.low %v216_v26, %v220_v29 }
 0x1f6   :  { %3809 = vmatprep.subr.bf16.mxu0 %v6287_v37  ;;  %v348_v30 = vld [vmem:[#allocation5 + $0x6f8] sm:$0xff] }
 0x1f7   :  { %3851 = vmatpush1.bf16.msra.mxu1 %v6422_v35  ;;  %v6503_v35 = vcombine.high %v344_v55, %v348_v30  ;;  %v208_v37 = vld [vmem:[#allocation5 + $0x298] sm:$0xff]  ;;  %v6502_v45 = vcombine.low %v344_v55, %v348_v30  ;;  %v7929_v30 = vpop.f32.mrf.mxu0 }
 0x1f8   :  { %3852 = vmatprep.subr.bf16.mxu1 %v6415_v38  ;;  %v212_v38 = vld [vmem:[#allocation5 + $0x2b8] sm:$0xff] }
 0x1f9   :  { %3810 = vmatpush1.bf16.msra.mxu0 %v6286_v48  ;;  %v336_v40 = vld [vmem:[#allocation5 + $0x698] sm:$0xff]  ;;  %v6367_v48 = vcombine.high %v208_v37, %v212_v38  ;;  %v6366_v57 = vcombine.low %v208_v37, %v212_v38 }
 0x1fa   :  { %3811 = vmatprep.subr.bf16.mxu0 %v6407_v50  ;;  %v340_v41 = vld [vmem:[#allocation5 + $0x6b8] sm:$0xff] }
 0x1fb   :  { %3853 = vmatpush1.bf16.msra.mxu1 %v6414_v49  ;;  %v6495_v49 = vcombine.high %v336_v40, %v340_v41  ;;  %v200_v50 = vld [vmem:[#allocation5 + $0x258] sm:$0xff]  ;;  %v6494_v23 = vcombine.low %v336_v40, %v340_v41 }
 0x1fc   :  { %3854 = vmatprep.subr.bf16.mxu1 %v6535_v51  ;;  %v204_v51 = vld [vmem:[#allocation5 + $0x278] sm:$0xff] }
 0x1fd   :  { %3812 = vmatpush2.bf16.msra.mxu0 %v6406_v58  ;;  %v328_v52 = vld [vmem:[#allocation5 + $0x658] sm:$0xff]  ;;  %v6359_v58 = vcombine.high %v200_v50, %v204_v51  ;;  %v6358_v1 = vcombine.low %v200_v50, %v204_v51 }
 0x1fe   :  { %3813 = vmatprep.subr.bf16.mxu0 %v6399_v27  ;;  %v332_v56 = vld [vmem:[#allocation5 + $0x678] sm:$0xff] }
 0x1ff   :  { %3855 = vmatpush2.bf16.msra.mxu1 %v6534_v24  ;;  %v6487_v24 = vcombine.high %v328_v52, %v332_v56  ;;  %v192_v27 = vld [vmem:[#allocation5 + $0x218] sm:$0xff]  ;;  %v6486_v2 = vcombine.low %v328_v52, %v332_v56 }
 0x200   :  { %3856 = vmatprep.subr.bf16.mxu1 %v6527_v63  ;;  %v196_v63 = vld [vmem:[#allocation5 + $0x238] sm:$0xff] }
 0x201   :  { %3814 = vmatpush2.bf16.msra.mxu0 %v6398_v3  ;;  %v320_v61 = vld [vmem:[#allocation5 + $0x618] sm:$0xff]  ;;  %v6351_v3 = vcombine.high %v192_v27, %v196_v63  ;;  %v6350_v11 = vcombine.low %v192_v27, %v196_v63 }
 0x202   :  { %3815 = vmatprep.subr.bf16.mxu0 %v6391_v6  ;;  %v324_v62 = vld [vmem:[#allocation5 + $0x638] sm:$0xff] }
 0x203   :  { %3857 = vmatpush2.bf16.msra.mxu1 %v6526_v5  ;;  %v6479_v5 = vcombine.high %v320_v61, %v324_v62  ;;  %v440_v6 = vld [vmem:[#allocation5 + $0x9d8] sm:$0xff]  ;;  %v6478_v16 = vcombine.low %v320_v61, %v324_v62 }
 0x204   :  { %3858 = vmatprep.subr.bf16.mxu1 %v6519_v7  ;;  %v444_v7 = vld [vmem:[#allocation5 + $0x9f8] sm:$0xff] }
 0x205   :  { %3816 = vmatpush2.bf16.msra.mxu0 %v6390_v17  ;;  %v568_v8 = vld [vmem:[#allocation5 + $0xdd8] sm:$0xff]  ;;  %v6599_v17 = vcombine.high %v440_v6, %v444_v7  ;;  %v6598_v55 = vcombine.low %v440_v6, %v444_v7 }
 0x206   :  { %3817 = vmatprep.subr.bf16.mxu0 %v6383_v20  ;;  %v572_v10 = vld [vmem:[#allocation5 + $0xdf8] sm:$0xff] }
 0x207   :  { %3859 = vmatpush2.bf16.msra.mxu1 %v6518_v19  ;;  %v6727_v19 = vcombine.high %v568_v8, %v572_v10  ;;  %v432_v20 = vld [vmem:[#allocation5 + $0x998] sm:$0xff] }
 0x208   :  { %3860 = vmatprep.subr.bf16.mxu1 %v6511_v22  ;;  %v436_v22 = vld [vmem:[#allocation5 + $0x9b8] sm:$0xff] }
 0x209   :  { %3818 = vmatpush2.bf16.msra.mxu0 %v6382_v15  ;;  %v560_v26 = vld [vmem:[#allocation5 + $0xd98] sm:$0xff]  ;;  %v6726_v15 = vcombine.low %v568_v8, %v572_v10 }
 0x20a   :  { %3819 = vmatprep.subr.bf16.mxu0 %v6375_v34  ;;  %v564_v29 = vld [vmem:[#allocation5 + $0xdb8] sm:$0xff]  ;;  %v7931_v34 = vpop.f32.mrf.mxu1 }
 0x20b   :  { %3861 = vmatpush2.bf16.msra.mxu1 %v6510_v31  ;;  %v6591_v31 = vcombine.high %v432_v20, %v436_v22  ;;  %v424_v37 = vld [vmem:[#allocation5 + $0x958] sm:$0xff]  ;;  %v6718_v51 = vcombine.low %v560_v26, %v564_v29 }
 0x20c   :  { %3862 = vmatprep.subr.bf16.mxu1 %v6503_v35  ;;  %v6719_v35 = vcombine.high %v560_v26, %v564_v29  ;;  %v428_v38 = vld [vmem:[#allocation5 + $0x978] sm:$0xff] }
 0x20d   :  { %3820 = vmatpush2.bf16.msra.mxu0 %v6374_v44  ;;  %v552_v41 = vld [vmem:[#allocation5 + $0xd58] sm:$0xff]  ;;  %v6583_v52 = vcombine.high %v424_v37, %v428_v38  ;;  %v6582_v63 = vcombine.low %v424_v37, %v428_v38 }
 0x20e   :  { %3821 = vmatprep.subr.bf16.mxu0 %v6367_v48  ;;  %v556_v44 = vld [vmem:[#allocation5 + $0xd78] sm:$0xff] }
 0x20f   :  { %3863 = vmatpush2.bf16.msra.mxu1 %v6502_v45  ;;  %v6710_v62 = vcombine.low %v552_v41, %v556_v44  ;;  %v412_v6 = vld [vmem:[#allocation5 + $0x8f8] sm:$0xff] }
 0x210   :  { %3864 = vmatprep.subr.bf16.mxu1 %v6495_v49  ;;  %v6590_v49 = vcombine.low %v432_v20, %v436_v22  ;;  %v540_v7 = vld [vmem:[#allocation5 + $0xcf8] sm:$0xff] }
 0x211   :  { %3822 = vmatpush2.bf16.msra.mxu0 %v6366_v57  ;;  %v404_v20 = vld [vmem:[#allocation5 + $0x8b8] sm:$0xff] }
 0x212   :  { %3823 = vmatprep.subr.bf16.mxu0 %v6359_v58  ;;  %v420_v58 = vld [vmem:[#allocation5 + $0x938] sm:$0xff] }
 0x213   :  { %3865 = vmatpush2.bf16.msra.mxu1 %v6494_v23  ;;  %v416_v23 = vld [vmem:[#allocation5 + $0x918] sm:$0xff] }
 0x214   :  { %3866 = vmatprep.subr.bf16.mxu1 %v6487_v24  ;;  %v544_v24 = vld [vmem:[#allocation5 + $0xd18] sm:$0xff] }
 0x215   :  { %3824 = vmatpush2.bf16.msra.mxu0 %v6358_v1  ;;  %v6575_v1 = vcombine.high %v416_v23, %v420_v58  ;;  %v528_v22 = vld [vmem:[#allocation5 + $0xc98] sm:$0xff] }
 0x216   :  { %3825 = vmatprep.subr.bf16.mxu0 %v6351_v3  ;;  %v532_v26 = vld [vmem:[#allocation5 + $0xcb8] sm:$0xff] }
 0x217   :  { %3867 = vmatpush2.bf16.msra.mxu1 %v6486_v2  ;;  %v396_v37 = vld [vmem:[#allocation5 + $0x878] sm:$0xff] }
 0x218   :  { %3868 = vmatprep.subr.bf16.mxu1 %v6479_v5  ;;  %v408_v5 = vld [vmem:[#allocation5 + $0x8d8] sm:$0xff] }
 0x219   :  { %3826 = vmatpush2.bf16.msra.mxu0 %v6350_v11  ;;  %v6567_v11 = vcombine.high %v408_v5, %v412_v6  ;;  %v6566_v29 = vcombine.low %v408_v5, %v412_v6  ;;  %v520_v38 = vld [vmem:[#allocation5 + $0xc58] sm:$0xff] }
 0x21a   :  { %3881 = vmatprep.subr.bf16.mxu0 %v6599_v17  ;;  %v500_v5 = vld [vmem:[#allocation5 + $0xbb8] sm:$0xff] }
 0x21b   :  { %3869 = vmatpush2.bf16.msra.mxu1 %v6478_v16  ;;  %v624_v6 = vld [vmem:[#allocation5 + $0xf98] sm:$0xff] }
 0x21c   :  { %3924 = vmatprep.subr.bf16.mxu1 %v6727_v19  ;;  %v3571_v40 = vpop.f32.mrf.mxu0  ;;  %3828 = vmatmul.mubr.bf16.vlgmr.msra.gmra.mxu0 %v7831_v21  ;;  %v6711_v21 = vcombine.high %v552_v41, %v556_v44  ;;  %v400_v19 = vld [vmem:[#allocation5 + $0x898] sm:$0xff]  ;;  %v6686_v44 = vcombine.low %v528_v22, %v532_v26 }
 0x21d   :  { %v3572_v45 = vadd.f32 %v3571_v40, %v7921_v42  ;;  %3882 = vmatpush1.bf16.msra.mxu0 %v6598_v55  ;;  %3913 = vmatprep.mubr.bf16.mxu0 %v7847_v32  ;;  %v536_v32 = vld [vmem:[#allocation5 + $0xcd8] sm:$0xff]  ;;  %v6558_v41 = vcombine.low %v400_v19, %v404_v20 }
 0x21e   :  { %v3614_v48 = vpop.f32.mrf.mxu1  ;;  %3871 = vmatmul.mubr.bf16.vlgmr.msra.gmra.mxu1 %v7839_v25  ;;  %v7936_v50 = vpop.f32.mrf.mxu0  ;;  %3883 = vmatprep.subr.bf16.mxu0 %v6591_v31  ;;  %v548_v25 = vld [vmem:[#allocation5 + $0xd38] sm:$0xff]  ;;  %v6695_v17 = vcombine.high %v536_v32, %v540_v7  ;;  %v6694_v55 = vcombine.low %v536_v32, %v540_v7  ;;  %v6687_v31 = vcombine.high %v528_v22, %v532_v26 }
 0x21f   :  { %3925 = vmatpush1.bf16.msra.mxu1 %v6726_v15  ;;  %v3615_v56 = vadd.f32 %v3614_v48, %v3572_v45  ;;  %3956 = vmatprep.mubr.bf16.mxu1 %v7852_v33  ;;  %v6703_v3 = vcombine.high %v544_v24, %v548_v25  ;;  %v6574_v33 = vcombine.low %v416_v23, %v420_v58  ;;  %v524_v40 = vld [vmem:[#allocation5 + $0xc78] sm:$0xff] }
 0x220   :  { %v7938_v57 = vpop.f32.mrf.mxu1  ;;  %3926 = vmatprep.subr.bf16.mxu1 %v6719_v35  ;;  %v3575_v42 = vpop.f32.mrf.mxu0  ;;  %v6559_v15 = vcombine.high %v400_v19, %v404_v20  ;;  %v392_v35 = vld [vmem:[#allocation5 + $0x858] sm:$0xff]  ;;  %v6679_v48 = vcombine.high %v520_v38, %v524_v40  ;;  %v6678_v23 = vcombine.low %v520_v38, %v524_v40 }
 0x221   :  { %v3576_v27 = vadd.f32 %v3575_v42, %v7927_v53  ;;  %3884 = vmatpush1.bf16.msra.mxu0 %v6590_v49  ;;  %v3969_v8 = vmax.f32 %v3615_v56, 0.0  ;;  %v6702_v53 = vcombine.low %v544_v24, %v548_v25  ;;  %v6551_v45 = vcombine.high %v392_v35, %v396_v37  ;;  %v384_v49 = vld [vmem:[#allocation5 + $0x818] sm:$0xff] }
 0x222   :  { %v3618_v61 = vpop.f32.mrf.mxu1  ;;  %3885 = vmatprep.subr.bf16.mxu0 %v6583_v52  ;;  %v512_v52 = vld [vmem:[#allocation5 + $0xc18] sm:$0xff] }
 0x223   :  { %3927 = vmatpush1.bf16.msra.mxu1 %v6718_v51  ;;  %v3619_v2 = vadd.f32 %v3618_v61, %v3576_v27  ;;  %v388_v51 = vld [vmem:[#allocation5 + $0x838] sm:$0xff] }
 0x224   :  { %3928 = vmatprep.subr.bf16.mxu1 %v6711_v21  ;;  %v516_v56 = vld [vmem:[#allocation5 + $0xc38] sm:$0xff]  ;;  %v6550_v21 = vcombine.low %v392_v35, %v396_v37  ;;  %v6543_v58 = vcombine.high %v384_v49, %v388_v51  ;;  %v6542_v61 = vcombine.low %v384_v49, %v388_v51 }
 0x225   :  { %v3977_v10 = vmax.f32 %v3619_v2, 0.0  ;;  %3886 = vmatpush1.bf16.msra.mxu0 %v6582_v63  ;;  %v6671_v42 = vcombine.high %v512_v52, %v516_v56  ;;  %v504_v24 = vld [vmem:[#allocation5 + $0xbd8] sm:$0xff] }
 0x226   :  { %3887 = vmatprep.subr.bf16.mxu0 %v6575_v1  ;;  %v508_v25 = vld [vmem:[#allocation5 + $0xbf8] sm:$0xff] }
 0x227   :  { %3929 = vmatpush1.bf16.msra.mxu1 %v6710_v62  ;;  %v7943_v16 = vpack.c.bf16 %v3977_v10, %v3969_v8  ;;  %v632_v27 = vld [vmem:[#allocation5 + $0xfd8] sm:$0xff]  ;;  %v6670_v62 = vcombine.low %v512_v52, %v516_v56  ;;  %v6663_v1 = vcombine.high %v504_v24, %v508_v25  ;;  %v6662_v7 = vcombine.low %v504_v24, %v508_v25  ;;  %v7947_v25 = vld [vmem:[#allocation7] sm:$0xff] }
 0x228   :  { %3930 = vmatprep.subr.bf16.mxu1 %v6703_v3  ;;  %v636_v63 = vld [vmem:[#allocation5 + $0xff8] sm:$0xff]  ;;  %v653_v52 = vsub.s32 3, %v7873_v4 }
 0x229   :  { %3888 = vmatpush1.bf16.msra.mxu0 %v6574_v33  ;;  %v6791_v2 = vcombine.high %v632_v27, %v636_v63  ;;  %v496_v3 = vld [vmem:[#allocation5 + $0xb98] sm:$0xff]  ;;  %v6790_v8 = vcombine.low %v632_v27, %v636_v63 }
 0x22a   :  { %3889 = vmatprep.subr.bf16.mxu0 %v6567_v11  ;;  %v628_v32 = vld [vmem:[#allocation5 + $0xfb8] sm:$0xff]  ;;  %v6655_v10 = vcombine.high %v496_v3, %v500_v5  ;;  %v6654_v20 = vcombine.low %v496_v3, %v500_v5 }
 0x22b   :  { %3931 = vmatpush1.bf16.msra.mxu1 %v6702_v53  ;;  %v6783_v33 = vcombine.high %v624_v6, %v628_v32  ;;  %v488_v53 = vld [vmem:[#allocation5 + $0xb58] sm:$0xff]  ;;  %v6782_v22 = vcombine.low %v624_v6, %v628_v32 }
 0x22c   :  { %3932 = vmatprep.subr.bf16.mxu1 %v6695_v17  ;;  %v492_v11 = vld [vmem:[#allocation5 + $0xb78] sm:$0xff] }
 0x22d   :  { %3890 = vmatpush1.bf16.msra.mxu0 %v6566_v29  ;;  %v616_v17 = vld [vmem:[#allocation5 + $0xf58] sm:$0xff]  ;;  %v6647_v26 = vcombine.high %v488_v53, %v492_v11  ;;  %v6646_v37 = vcombine.low %v488_v53, %v492_v11 }
 0x22e   :  { %3891 = vmatprep.subr.bf16.mxu0 %v6559_v15  ;;  %v620_v19 = vld [vmem:[#allocation5 + $0xf78] sm:$0xff] }
 0x22f   :  { %3933 = vmatpush1.bf16.msra.mxu1 %v6694_v55  ;;  %v6775_v29 = vcombine.high %v616_v17, %v620_v19  ;;  %v480_v55 = vld [vmem:[#allocation5 + $0xb18] sm:$0xff]  ;;  %v6774_v38 = vcombine.low %v616_v17, %v620_v19  ;;  %v3577_v19 = vpop.f32.mrf.mxu0 }
 0x230   :  { %3934 = vmatprep.subr.bf16.mxu1 %v6687_v31  ;;  %v484_v15 = vld [vmem:[#allocation5 + $0xb38] sm:$0xff] }
 0x231   :  { %3892 = vmatpush1.bf16.msra.mxu0 %v6558_v41  ;;  %v608_v31 = vld [vmem:[#allocation5 + $0xf18] sm:$0xff]  ;;  %v6639_v40 = vcombine.high %v480_v55, %v484_v15  ;;  %v6638_v56 = vcombine.low %v480_v55, %v484_v15 }
 0x232   :  { %3893 = vmatprep.subr.bf16.mxu0 %v6551_v45  ;;  %v612_v35 = vld [vmem:[#allocation5 + $0xf38] sm:$0xff] }
 0x233   :  { %3935 = vmatpush1.bf16.msra.mxu1 %v6686_v44  ;;  %v6767_v41 = vcombine.high %v608_v31, %v612_v35  ;;  %v472_v44 = vld [vmem:[#allocation5 + $0xad8] sm:$0xff] }
 0x234   :  { %3936 = vmatprep.subr.bf16.mxu1 %v6679_v48  ;;  %v476_v45 = vld [vmem:[#allocation5 + $0xaf8] sm:$0xff]  ;;  %v645_v48 = vsub.s32 1, %v7873_v4 }
 0x235   :  { %3894 = vmatpush1.bf16.msra.mxu0 %v6550_v21  ;;  %v600_v49 = vld [vmem:[#allocation5 + $0xed8] sm:$0xff]  ;;  %v6766_v21 = vcombine.low %v608_v31, %v612_v35 }
 0x236   :  { %3895 = vmatprep.subr.bf16.mxu0 %v6543_v58  ;;  %v604_v51 = vld [vmem:[#allocation5 + $0xef8] sm:$0xff]  ;;  %v646_v27 = vrot.slane %v7947_v25, %v645_v48 }
 0x237   :  { %3937 = vmatpush1.bf16.msra.mxu1 %v6678_v23  ;;  %v6631_v23 = vcombine.high %v472_v44, %v476_v45  ;;  %v6759_v58 = vcombine.high %v600_v49, %v604_v51  ;;  %v468_v24 = vld [vmem:[#allocation5 + $0xab8] sm:$0xff]  ;;  %v6758_v3 = vcombine.low %v600_v49, %v604_v51 }
 0x238   :  { %3938 = vmatprep.subr.bf16.mxu1 %v6671_v42  ;;  %v464_v42 = vld [vmem:[#allocation5 + $0xa98] sm:$0xff] }
 0x239   :  { %3896 = vmatpush1.bf16.msra.mxu0 %v6542_v61  ;;  %v592_v63 = vld [vmem:[#allocation5 + $0xe98] sm:$0xff]  ;;  %v6623_v5 = vcombine.high %v464_v42, %v468_v24  ;;  %v6622_v17 = vcombine.low %v464_v42, %v468_v24 }
 0x23a   :  { %3897 = vmatprep.subr.bf16.mxu0 %v6663_v1  ;;  %v596_v61 = vld [vmem:[#allocation5 + $0xeb8] sm:$0xff]  ;;  %v6630_v1 = vcombine.low %v472_v44, %v476_v45 }
 0x23b   :  { %3939 = vmatpush1.bf16.msra.mxu1 %v6670_v62  ;;  %v654_v62 = vrot.slane %v7947_v25, %v653_v52  ;;  %v6751_v32 = vcombine.high %v592_v63, %v596_v61  ;;  %v588_v53 = vld [vmem:[#allocation5 + $0xe78] sm:$0xff] }
 0x23c   :  { %3940 = vmatprep.subr.bf16.mxu1 %v6791_v2  ;;  %v3320_v2 = vadd.f32 %v7893_v9, %v646_v27  ;;  %v452_v55 = vld [vmem:[#allocation5 + $0xa38] sm:$0xff] }
 0x23d   :  { %3898 = vmatpush2.bf16.msra.mxu0 %v6662_v7  ;;  %v3492_v6 = vadd.f32 %v7929_v30, %v654_v62  ;;  %v456_v7 = vld [vmem:[#allocation5 + $0xa58] sm:$0xff]  ;;  %v3488_v11 = vadd.f32 %v7919_v60, %v654_v62 }
 0x23e   :  { %3899 = vmatprep.subr.bf16.mxu0 %v6655_v10  ;;  %v3316_v10 = vadd.f32 %v7883_v39, %v646_v27  ;;  %v3363_v9 = vadd.f32 %v7895_v12, %v3320_v2  ;;  %v576_v60 = vld [vmem:[#allocation5 + $0xe18] sm:$0xff] }
 0x23f   :  { %3941 = vmatpush2.bf16.msra.mxu1 %v6790_v8  ;;  %v460_v8 = vld [vmem:[#allocation5 + $0xa78] sm:$0xff]  ;;  %v3535_v30 = vadd.f32 %v7931_v34, %v3492_v6  ;;  %v3531_v35 = vadd.f32 %v7923_v36, %v3488_v11 }
 0x240   :  { %3942 = vmatprep.subr.bf16.mxu1 %v6783_v33  ;;  %v584_v33 = vld [vmem:[#allocation5 + $0xe58] sm:$0xff]  ;;  %v3359_v39 = vadd.f32 %v7887_v43, %v3316_v10  ;;  %v3406_v15 = vadd.f32 %v7913_v14, %v3363_v9  ;;  %v3620_v14 = vpop.f32.mrf.mxu1 }
 0x241   :  { %3900 = vmatpush2.bf16.msra.mxu0 %v6654_v20  ;;  %v6750_v20 = vcombine.low %v592_v63, %v596_v61  ;;  %v580_v31 = vld [vmem:[#allocation5 + $0xe38] sm:$0xff]  ;;  %v3578_v12 = vadd.f32 %v3577_v19, %v3535_v30  ;;  %v6742_v34 = vcombine.low %v584_v33, %v588_v53 }
 0x242   :  { %3901 = vmatprep.subr.bf16.mxu0 %v6647_v26  ;;  %v6743_v26 = vcombine.high %v584_v33, %v588_v53  ;;  %v6735_v44 = vcombine.high %v576_v60, %v580_v31  ;;  %v3449_v43 = vadd.f32 %v7915_v18, %v3406_v15  ;;  %v6734_v51 = vcombine.low %v576_v60, %v580_v31  ;;  %v7144_v18 = vld [vmem:[#allocation8 + $0x2e0] ss:$16 sps:$4 sm:$0xff]   ;;  %v7149_v27 = vld [vmem:[#allocation8 + $0xc4] ss:$16 sps:$4 sm:$0xff]  }
 0x243   :  { %3943 = vmatpush2.bf16.msra.mxu1 %v6782_v22  ;;  %v6615_v22 = vcombine.high %v456_v7, %v460_v8  ;;  %v3621_v45 = vadd.f32 %v3620_v14, %v3578_v12  ;;  %v7152_v63 = vld [vmem:[#allocation8 + $0x2c4] ss:$16 sps:$4 sm:$0xff]   ;;  %v7150_v62 = vld [vmem:[#allocation8 + $0x2c0] ss:$16 sps:$4 sm:$0xff]  }
 0x244   :  { %3944 = vmatprep.subr.bf16.mxu1 %v6775_v29  ;;  %v448_v29 = vld [vmem:[#allocation5 + $0xa18] sm:$0xff] }
 0x245   :  { %3902 = vmatpush2.bf16.msra.mxu0 %v6646_v37  ;;  %v6614_v37 = vcombine.low %v456_v7, %v460_v8  ;;  %v6606_v49 = vcombine.low %v448_v29, %v452_v55  ;;  %v7158_v2 = vld [vmem:[#allocation8 + $0x2a4] ss:$16 sps:$4 sm:$0xff]   ;;  %v7159_v6 = vld [vmem:[#allocation8 + $0x80] ss:$16 sps:$4 sm:$0xff]  }
 0x246   :  { %3903 = vmatprep.subr.bf16.mxu0 %v6639_v40  ;;  %v6607_v40 = vcombine.high %v448_v29, %v452_v55  ;;  %v7167_v7 = vld [vmem:[#allocation8 + $0x64] ss:$16 sps:$4 sm:$0xff]   ;;  %v7165_v10 = vld [vmem:[#allocation8 + $0x60] ss:$16 sps:$4 sm:$0xff]  }
 0x247   :  { %3945 = vmatpush2.bf16.msra.mxu1 %v6774_v38  ;;  %v3402_v38 = vadd.f32 %v7900_v54, %v3359_v39  ;;  %v7143_v54 = vld [vmem:[#allocation8 + $0xe4] ss:$16 sps:$4 sm:$0xff]   ;;  %v7168_v33 = vld [vmem:[#allocation8 + $0x260] ss:$16 sps:$4 sm:$0xff]  }
 0x248   :  { %3946 = vmatprep.subr.bf16.mxu1 %v6767_v41  ;;  %v3574_v41 = vadd.f32 %v7936_v50, %v3531_v35  ;;  %v3978_v50 = vmax.f32 %v3621_v45, 0.0  ;;  %v7170_v8 = vld [vmem:[#allocation8 + $0x264] ss:$16 sps:$4 sm:$0xff]   ;;  %v7174_v9 = vld [vmem:[#allocation8 + $0x240] ss:$16 sps:$4 sm:$0xff]  }
 0x249   :  { %3904 = vmatpush2.bf16.msra.mxu0 %v6638_v56  ;;  %v3445_v36 = vadd.f32 %v7902_v59, %v3402_v38  ;;  %v7173_v53 = vld [vmem:[#allocation8 + $0x44] ss:$16 sps:$4 sm:$0xff]   ;;  %v7180_v30 = vld [vmem:[#allocation8 + $0x220] ss:$16 sps:$4 sm:$0xff]  }
 0x24a   :  { %3905 = vmatprep.subr.bf16.mxu0 %v6631_v23  ;;  %v3617_v56 = vadd.f32 %v7938_v57, %v3574_v41  ;;  %v3976_v23 = vmax.f32 %v3449_v43, 0.0  ;;  %v7147_v57 = vld [vmem:[#allocation8 + $0xc0] ss:$16 sps:$4 sm:$0xff]   ;;  %v7176_v11 = vld [vmem:[#allocation8 + $0x244] ss:$16 sps:$4 sm:$0xff]  }
 0x24b   :  { %3947 = vmatpush2.bf16.msra.mxu1 %v6766_v21  ;;  %v7146_v21 = vld [vmem:[#allocation8 + $0x2e4] ss:$16 sps:$4 sm:$0xff]   ;;  %v3968_v42 = vmax.f32 %v3445_v36, 0.0  ;;  %v7183_v55 = vld [vmem:[#allocation8] ss:$16 sps:$4 sm:$0xff]  }
 0x24c   :  { %3948 = vmatprep.subr.bf16.mxu1 %v6759_v58  ;;  %v7141_v58 = vld [vmem:[#allocation8 + $0xe0] ss:$16 sps:$4 sm:$0xff]   ;;  %v3970_v24 = vmax.f32 %v3617_v56, 0.0  ;;  %v7179_v19 = vld [vmem:[#allocation8 + $0x24] ss:$16 sps:$4 sm:$0xff]  }
 0x24d   :  { %3906 = vmatpush2.bf16.msra.mxu0 %v6630_v1  ;;  %v7969_v59 = vpack.c.bf16 %v3976_v23, %v3968_v42  ;;  %v7155_v1 = vld [vmem:[#allocation8 + $0xa4] ss:$16 sps:$4 sm:$0xff]   ;;  %v7186_v39 = vld [vmem:[#allocation8 + $0x200] ss:$16 sps:$4 sm:$0xff]  }
 0x24e   :  { %3907 = vmatprep.subr.bf16.mxu0 %v6623_v5  ;;  %v7972_v61 = vpack.c.bf16 %v3978_v50, %v3970_v24  ;;  %v7161_v5 = vld [vmem:[#allocation8 + $0x84] ss:$16 sps:$4 sm:$0xff]   ;;  %v7189_v31 = vld [vmem:[#allocation8 + $0x1e0] ss:$16 sps:$4 sm:$0xff]  }
 0x24f   :  { %3949 = vmatpush2.bf16.msra.mxu1 %v6758_v3  ;;  %v7153_v3 = vld [vmem:[#allocation8 + $0xa0] ss:$16 sps:$4 sm:$0xff]   ;;  %v7188_v29 = vld [vmem:[#allocation8 + $0x204] ss:$16 sps:$4 sm:$0xff]  }
 0x250   :  { %3950 = vmatprep.subr.bf16.mxu1 %v6751_v32  ;;  %v7162_v32 = vld [vmem:[#allocation8 + $0x280] ss:$16 sps:$4 sm:$0xff]   ;;  %v7191_v15 = vld [vmem:[#allocation8 + $0x1e4] ss:$16 sps:$4 sm:$0xff]  }
 0x251   :  { %3908 = vmatpush2.bf16.msra.mxu0 %v6622_v17  ;;  %v7171_v17 = vld [vmem:[#allocation8 + $0x40] ss:$16 sps:$4 sm:$0xff]   ;;  %v7194_v60 = vld [vmem:[#allocation8 + $0x3e4] ss:$16 sps:$4 sm:$0xff]  }
 0x252   :  { %3909 = vmatprep.subr.bf16.mxu0 %v6615_v22  ;;  %v7177_v22 = vld [vmem:[#allocation8 + $0x20] ss:$16 sps:$4 sm:$0xff]   ;;  %v7197_v12 = vld [vmem:[#allocation8 + $0x1c4] ss:$16 sps:$4 sm:$0xff]  }
 0x253   :  { %3951 = vmatpush2.bf16.msra.mxu1 %v6750_v20  ;;  %v7182_v20 = vld [vmem:[#allocation8 + $0x224] ss:$16 sps:$4 sm:$0xff]   ;;  %v7192_v35 = vld [vmem:[#allocation8 + $0x3e0] ss:$16 sps:$4 sm:$0xff]  }
 0x254   :  { %3952 = vmatprep.subr.bf16.mxu1 %v6743_v26  ;;  %v7185_v26 = vld [vmem:[#allocation8 + $0x4] ss:$16 sps:$4 sm:$0xff]   ;;  %v7195_v38 = vld [vmem:[#allocation8 + $0x1c0] ss:$16 sps:$4 sm:$0xff]  }
 0x255   :  { %3910 = vmatpush2.bf16.msra.mxu0 %v6614_v37  ;;  %v7200_v37 = vld [vmem:[#allocation8 + $0x3c4] ss:$16 sps:$4 sm:$0xff]   ;;  %v7204_v43 = vld [vmem:[#allocation8 + $0x3a0] ss:$16 sps:$4 sm:$0xff]  }
 0x256   :  { %3911 = vmatprep.subr.bf16.mxu0 %v6607_v40  ;;  %v7203_v40 = vld [vmem:[#allocation8 + $0x1a4] ss:$16 sps:$4 sm:$0xff]   ;;  %v7210_v36 = vld [vmem:[#allocation8 + $0x380] ss:$16 sps:$4 sm:$0xff]  }
 0x257   :  { %3953 = vmatpush2.bf16.msra.mxu1 %v6742_v34  ;;  %v7198_v34 = vld [vmem:[#allocation8 + $0x3c0] ss:$16 sps:$4 sm:$0xff]   ;;  %v7206_v41 = vld [vmem:[#allocation8 + $0x3a4] ss:$16 sps:$4 sm:$0xff]  }
 0x258   :  { %3954 = vmatprep.subr.bf16.mxu1 %v6735_v44  ;;  %v7201_v44 = vld [vmem:[#allocation8 + $0x1a0] ss:$16 sps:$4 sm:$0xff]   ;;  %v7209_v14 = vld [vmem:[#allocation8 + $0x184] ss:$16 sps:$4 sm:$0xff]  }
 0x259   :  { %3912 = vmatpush2.bf16.msra.mxu0 %v6606_v49  ;;  %v7212_v45 = vld [vmem:[#allocation8 + $0x384] ss:$16 sps:$4 sm:$0xff]   ;;  %v7207_v49 = vld [vmem:[#allocation8 + $0x180] ss:$16 sps:$4 sm:$0xff]  }
 0x25a   :  { %5549 = vmatprep.subr.bf16.mxu0 %v7143_v54  ;;  %v7218_v54 = vld [vmem:[#allocation8 + $0x364] ss:$16 sps:$4 sm:$0xff]   ;;  %v7213_v56 = vld [vmem:[#allocation8 + $0x160] ss:$16 sps:$4 sm:$0xff]  }
 0x25b   :  { %3955 = vmatpush2.bf16.msra.mxu1 %v6734_v51  ;;  %v7215_v51 = vld [vmem:[#allocation8 + $0x164] ss:$16 sps:$4 sm:$0xff]  }
 0x25c   :  { %5592 = vmatprep.subr.bf16.mxu1 %v7146_v21  ;;  %3914 = vmatmul.mubr.bf16.vlgmr.msra.gmra.mxu0 %v7859_v46  ;;  %v7156_v46 = vld [vmem:[#allocation8 + $0x2a0] ss:$16 sps:$4 sm:$0xff]   ;;  %v7221_v23 = vld [vmem:[#allocation8 + $0x144] ss:$16 sps:$4 sm:$0xff]   ;;  %v7977_v42 = vpop.f32.mrf.mxu0 }
 0x25d   :  { %5550 = vmatpush1.bf16.msra.mxu0 %v7141_v58  ;;  %5581 = vmatprep.mubr.bf16.mxu0 %v7969_v59  ;;  %v7216_v21 = vld [vmem:[#allocation8 + $0x360] ss:$16 sps:$4 sm:$0xff]   ;;  %v7224_v50 = vld [vmem:[#allocation8 + $0x344] ss:$16 sps:$4 sm:$0xff]  }
 0x25e   :  { %3957 = vmatmul.mubr.bf16.vlgmr.msra.gmra.mxu1 %v7863_v47  ;;  %5551 = vmatprep.subr.bf16.mxu0 %v7149_v27  ;;  %v7164_v47 = vld [vmem:[#allocation8 + $0x284] ss:$16 sps:$4 sm:$0xff]   ;;  %v7219_v58 = vld [vmem:[#allocation8 + $0x140] ss:$16 sps:$4 sm:$0xff]   ;;  %v7979_v27 = vpop.f32.mrf.mxu1 }
 0x25f   :  { %5593 = vmatpush1.bf16.msra.mxu1 %v7144_v18  ;;  %5624 = vmatprep.mubr.bf16.mxu1 %v7972_v61  ;;  %v7222_v18 = vld [vmem:[#allocation8 + $0x340] ss:$16 sps:$4 sm:$0xff]   ;;  %v7227_v24 = vld [vmem:[#allocation8 + $0x124] ss:$16 sps:$4 sm:$0xff]  }
 0x260   :  { %5594 = vmatprep.subr.bf16.mxu1 %v7152_v63  ;;  %v7230_v63 = vld [vmem:[#allocation8 + $0x324] ss:$16 sps:$4 sm:$0xff]  }
 0x261   :  { %5552 = vmatpush1.bf16.msra.mxu0 %v7147_v57  ;;  %v661_v57 = vsub.s32 5, %v7873_v4 }
 0x262   :  { %5553 = vmatprep.subr.bf16.mxu0 %v7155_v1  ;;  %v3659_v1 = vpop.f32.mrf.mxu0 }
 0x263   :  { %5595 = vmatpush1.bf16.msra.mxu1 %v7150_v62  ;;  %v7225_v62 = vld [vmem:[#allocation8 + $0x120] ss:$16 sps:$4 sm:$0xff]  }
 0x264   :  { %5596 = vmatprep.subr.bf16.mxu1 %v7158_v2  ;;  %v7228_v2 = vld [vmem:[#allocation8 + $0x320] ss:$16 sps:$4 sm:$0xff]  }
 0x265   :  { %5554 = vmatpush1.bf16.msra.mxu0 %v7153_v3  ;;  %v7233_v3 = vld [vmem:[#allocation8 + $0x104] ss:$16 sps:$4 sm:$0xff]  }
 0x266   :  { %5555 = vmatprep.subr.bf16.mxu0 %v7161_v5  ;;  %v7236_v5 = vld [vmem:[#allocation8 + $0x304] ss:$16 sps:$4 sm:$0xff]  }
 0x267   :  { %5597 = vmatpush1.bf16.msra.mxu1 %v7156_v46  ;;  %v3702_v46 = vpop.f32.mrf.mxu1 }
 0x268   :  { %5598 = vmatprep.subr.bf16.mxu1 %v7164_v47  ;;  %v662_v47 = vrot.slane %v7947_v25, %v661_v57  ;;  %v7254_v57 = vld [vmem:[#allocation8 + $0x444] ss:$16 sps:$4 sm:$0xff]  }
 0x269   :  { %5556 = vmatpush1.bf16.msra.mxu0 %v7159_v6  ;;  %v7231_v6 = vld [vmem:[#allocation8 + $0x100] ss:$16 sps:$4 sm:$0xff]  }
 0x26a   :  { %5557 = vmatprep.subr.bf16.mxu0 %v7167_v7  ;;  %v7234_v7 = vld [vmem:[#allocation8 + $0x300] ss:$16 sps:$4 sm:$0xff]  }
 0x26b   :  { %5599 = vmatpush1.bf16.msra.mxu1 %v7162_v32  ;;  %v7983_v32 = vpop.f32.mrf.mxu0 }
 0x26c   :  { %5600 = vmatprep.subr.bf16.mxu1 %v7170_v8  ;;  %v7239_v8 = vld [vmem:[#allocation8 + $0x4e4] ss:$16 sps:$4 sm:$0xff]  }
 0x26d   :  { %5558 = vmatpush1.bf16.msra.mxu0 %v7165_v10  ;;  %v7985_v10 = vpop.f32.mrf.mxu1 }
 0x26e   :  { %5559 = vmatprep.subr.bf16.mxu0 %v7173_v53  ;;  %v3660_v53 = vadd.f32 %v3659_v1, %v662_v47  ;;  %v7329_v1 = vld [vmem:[#allocation8 + $0x644] ss:$16 sps:$4 sm:$0xff]  }
 0x26f   :  { %5601 = vmatpush1.bf16.msra.mxu1 %v7168_v33  ;;  %v7299_v33 = vld [vmem:[#allocation8 + $0x6e4] ss:$16 sps:$4 sm:$0xff]  }
 0x270   :  { %5602 = vmatprep.subr.bf16.mxu1 %v7176_v11  ;;  %v7237_v11 = vld [vmem:[#allocation8 + $0x4e0] ss:$16 sps:$4 sm:$0xff]  }
 0x271   :  { %5560 = vmatpush1.bf16.msra.mxu0 %v7171_v17  ;;  %v3663_v17 = vpop.f32.mrf.mxu0 }
 0x272   :  { %5561 = vmatprep.subr.bf16.mxu0 %v7179_v19  ;;  %v7297_v19 = vld [vmem:[#allocation8 + $0x6e0] ss:$16 sps:$4 sm:$0xff]  }
 0x273   :  { %5603 = vmatpush1.bf16.msra.mxu1 %v7174_v9  ;;  %v7242_v9 = vld [vmem:[#allocation8 + $0x4c4] ss:$16 sps:$4 sm:$0xff]  }
 0x274   :  { %5604 = vmatprep.subr.bf16.mxu1 %v7182_v20  ;;  %v3706_v20 = vpop.f32.mrf.mxu1 }
 0x275   :  { %5562 = vmatpush1.bf16.msra.mxu0 %v7177_v22  ;;  %v7305_v22 = vld [vmem:[#allocation8 + $0x6c4] ss:$16 sps:$4 sm:$0xff]  }
 0x276   :  { %5563 = vmatprep.subr.bf16.mxu0 %v7185_v26  ;;  %v3703_v26 = vadd.f32 %v3702_v46, %v3660_v53  ;;  %v7327_v46 = vld [vmem:[#allocation8 + $0x640] ss:$16 sps:$4 sm:$0xff]   ;;  %v7263_v53 = vld [vmem:[#allocation8 + $0x5e4] ss:$16 sps:$4 sm:$0xff]  }
 0x277   :  { %5605 = vmatpush1.bf16.msra.mxu1 %v7180_v30 }
 0x278   :  { %5606 = vmatprep.subr.bf16.mxu1 %v7188_v29  ;;  %v3664_v29 = vadd.f32 %v3663_v17, %v662_v47  ;;  %v7255_v47 = vld [vmem:[#allocation8 + $0x420] ss:$16 sps:$4 sm:$0xff]   ;;  %v7347_v17 = vld [vmem:[#allocation8 + $0x7e4] ss:$16 sps:$4 sm:$0xff]  }
 0x279   :  { %5564 = vmatpush1.bf16.msra.mxu0 %v7183_v55 }
 0x27a   :  { %5565 = vmatprep.subr.bf16.mxu0 %v7191_v15 }
 0x27b   :  { %5607 = vmatpush1.bf16.msra.mxu1 %v7186_v39  ;;  %v7240_v39 = vld [vmem:[#allocation8 + $0x4c0] ss:$16 sps:$4 sm:$0xff]  }
 0x27c   :  { %5608 = vmatprep.subr.bf16.mxu1 %v7194_v60  ;;  %v7245_v60 = vld [vmem:[#allocation8 + $0x4a4] ss:$16 sps:$4 sm:$0xff]  }
 0x27d   :  { %5566 = vmatpush2.bf16.msra.mxu0 %v7189_v31  ;;  %v7303_v31 = vld [vmem:[#allocation8 + $0x6c0] ss:$16 sps:$4 sm:$0xff]  }
 0x27e   :  { %5567 = vmatprep.subr.bf16.mxu0 %v7197_v12 }
 0x27f   :  { %5609 = vmatpush2.bf16.msra.mxu1 %v7192_v35 }
 0x280   :  { %5610 = vmatprep.subr.bf16.mxu1 %v7200_v37  ;;  %v7311_v37 = vld [vmem:[#allocation8 + $0x6a4] ss:$16 sps:$4 sm:$0xff]  }
 0x281   :  { %5568 = vmatpush2.bf16.msra.mxu0 %v7195_v38 }
 0x282   :  { %5569 = vmatprep.subr.bf16.mxu0 %v7203_v40 }
 0x283   :  { %5611 = vmatpush2.bf16.msra.mxu1 %v7198_v34  ;;  %v3707_v34 = vadd.f32 %v3706_v20, %v3664_v29  ;;  %v7345_v20 = vld [vmem:[#allocation8 + $0x7e0] ss:$16 sps:$4 sm:$0xff]   ;;  %v7269_v29 = vld [vmem:[#allocation8 + $0x5a4] ss:$16 sps:$4 sm:$0xff]  }
 0x284   :  { %5612 = vmatprep.subr.bf16.mxu1 %v7206_v41  ;;  %v7243_v41 = vld [vmem:[#allocation8 + $0x4a0] ss:$16 sps:$4 sm:$0xff]  }
 0x285   :  { %5570 = vmatpush2.bf16.msra.mxu0 %v7201_v44 }
 0x286   :  { %5571 = vmatprep.subr.bf16.mxu0 %v7209_v14  ;;  %v7309_v14 = vld [vmem:[#allocation8 + $0x6a0] ss:$16 sps:$4 sm:$0xff]  }
 0x287   :  { %5613 = vmatpush2.bf16.msra.mxu1 %v7204_v43  ;;  %v7248_v43 = vld [vmem:[#allocation8 + $0x484] ss:$16 sps:$4 sm:$0xff]  }
 0x288   :  { %5614 = vmatprep.subr.bf16.mxu1 %v7212_v45 }
 0x289   :  { %5572 = vmatpush2.bf16.msra.mxu0 %v7207_v49 }
 0x28a   :  { %5573 = vmatprep.subr.bf16.mxu0 %v7215_v51 }
 0x28b   :  { %5615 = vmatpush2.bf16.msra.mxu1 %v7210_v36  ;;  %v7317_v36 = vld [vmem:[#allocation8 + $0x684] ss:$16 sps:$4 sm:$0xff]  }
 0x28c   :  { %5616 = vmatprep.subr.bf16.mxu1 %v7218_v54 }
 0x28d   :  { %5574 = vmatpush2.bf16.msra.mxu0 %v7213_v56  ;;  %v7246_v56 = vld [vmem:[#allocation8 + $0x480] ss:$16 sps:$4 sm:$0xff]  }
 0x28e   :  { %5575 = vmatprep.subr.bf16.mxu0 %v7221_v23  ;;  %v7315_v23 = vld [vmem:[#allocation8 + $0x680] ss:$16 sps:$4 sm:$0xff]  }
 0x28f   :  { %5617 = vmatpush2.bf16.msra.mxu1 %v7216_v21  ;;  %v7251_v21 = vld [vmem:[#allocation8 + $0x464] ss:$16 sps:$4 sm:$0xff]  }
 0x290   :  { %5618 = vmatprep.subr.bf16.mxu1 %v7224_v50 }
 0x291   :  { %5576 = vmatpush2.bf16.msra.mxu0 %v7219_v58 }
 0x292   :  { %5577 = vmatprep.subr.bf16.mxu0 %v7227_v24 }
 0x293   :  { %5619 = vmatpush2.bf16.msra.mxu1 %v7222_v18  ;;  %v7323_v18 = vld [vmem:[#allocation8 + $0x664] ss:$16 sps:$4 sm:$0xff]  }
 0x294   :  { %5620 = vmatprep.subr.bf16.mxu1 %v7230_v63  ;;  %v7249_v63 = vld [vmem:[#allocation8 + $0x460] ss:$16 sps:$4 sm:$0xff]  }
 0x295   :  { %5578 = vmatpush2.bf16.msra.mxu0 %v7225_v62  ;;  %v7321_v62 = vld [vmem:[#allocation8 + $0x660] ss:$16 sps:$4 sm:$0xff]  }
 0x296   :  { %5579 = vmatprep.subr.bf16.mxu0 %v7233_v3  ;;  %v7257_v3 = vld [vmem:[#allocation8 + $0x424] ss:$16 sps:$4 sm:$0xff]  }
 0x297   :  { %5621 = vmatpush2.bf16.msra.mxu1 %v7228_v2  ;;  %v7252_v2 = vld [vmem:[#allocation8 + $0x440] ss:$16 sps:$4 sm:$0xff]  }
 0x298   :  { %5622 = vmatprep.subr.bf16.mxu1 %v7236_v5  ;;  %v7335_v5 = vld [vmem:[#allocation8 + $0x624] ss:$16 sps:$4 sm:$0xff]  }
 0x299   :  { %5580 = vmatpush2.bf16.msra.mxu0 %v7231_v6  ;;  %v7260_v6 = vld [vmem:[#allocation8 + $0x404] ss:$16 sps:$4 sm:$0xff]  }
 0x29a   :  { %5635 = vmatprep.subr.bf16.mxu0 %v7239_v8  ;;  %v7341_v8 = vld [vmem:[#allocation8 + $0x604] ss:$16 sps:$4 sm:$0xff]  }
 0x29b   :  { %5623 = vmatpush2.bf16.msra.mxu1 %v7234_v7  ;;  %v7333_v7 = vld [vmem:[#allocation8 + $0x620] ss:$16 sps:$4 sm:$0xff]  }
 0x29c   :  { %5678 = vmatprep.subr.bf16.mxu1 %v7299_v33  ;;  %v7987_v30 = vpop.f32.mrf.mxu0  ;;  %5582 = vmatmul.mubr.bf16.vlgmr.msra.gmra.mxu0 %v7907_v28  ;;  %v7258_v33 = vld [vmem:[#allocation8 + $0x400] ss:$16 sps:$4 sm:$0xff]  }
 0x29d   :  { %5636 = vmatpush1.bf16.msra.mxu0 %v7237_v11  ;;  %v7339_v11 = vld [vmem:[#allocation8 + $0x600] ss:$16 sps:$4 sm:$0xff]  }
 0x29e   :  { %v7990_v55 = vpop.f32.mrf.mxu1  ;;  %5625 = vmatmul.mubr.bf16.vlgmr.msra.gmra.mxu1 %v7943_v16  ;;  %v3745_v15 = vpop.f32.mrf.mxu0  ;;  %5637 = vmatprep.subr.bf16.mxu0 %v7242_v9  ;;  %v7261_v9 = vld [vmem:[#allocation8 + $0x5e0] ss:$16 sps:$4 sm:$0xff]  }
 0x29f   :  { %5679 = vmatpush1.bf16.msra.mxu1 %v7297_v19  ;;  %v3746_v35 = vadd.f32 %v3745_v15, %v3703_v26  ;;  %v7266_v19 = vld [vmem:[#allocation8 + $0x5c4] ss:$16 sps:$4 sm:$0xff]   ;;  %v7264_v26 = vld [vmem:[#allocation8 + $0x5c0] ss:$16 sps:$4 sm:$0xff]  }
 0x2a0   :  { %v3788_v12 = vpop.f32.mrf.mxu1  ;;  %5680 = vmatprep.subr.bf16.mxu1 %v7305_v22  ;;  %v7993_v38 = vpop.f32.mrf.mxu0  ;;  %v7353_v22 = vld [vmem:[#allocation8 + $0x7c4] ss:$16 sps:$4 sm:$0xff]  }
 0x2a1   :  { %5638 = vmatpush1.bf16.msra.mxu0 %v7240_v39  ;;  %v3789_v45 = vadd.f32 %v3788_v12, %v3746_v35  ;;  %v7351_v39 = vld [vmem:[#allocation8 + $0x7c0] ss:$16 sps:$4 sm:$0xff]   ;;  %v7359_v15 = vld [vmem:[#allocation8 + $0x7a4] ss:$16 sps:$4 sm:$0xff]  }
 0x2a2   :  { %v7995_v40 = vpop.f32.mrf.mxu1  ;;  %v3749_v44 = vpop.f32.mrf.mxu0  ;;  %5639 = vmatprep.subr.bf16.mxu0 %v7245_v60  ;;  %v7267_v60 = vld [vmem:[#allocation8 + $0x5a0] ss:$16 sps:$4 sm:$0xff]   ;;  %v7272_v35 = vld [vmem:[#allocation8 + $0x584] ss:$16 sps:$4 sm:$0xff]  }
 0x2a3   :  { %5681 = vmatpush1.bf16.msra.mxu1 %v7303_v31  ;;  %v3750_v49 = vadd.f32 %v3749_v44, %v3707_v34  ;;  %v3972_v50 = vmax.f32 %v3789_v45, 0.0  ;;  %v657_v31 = vsub.s32 4, %v7873_v4  ;;  %v7357_v12 = vld [vmem:[#allocation8 + $0x7a0] ss:$16 sps:$4 sm:$0xff]   ;;  %v7275_v44 = vld [vmem:[#allocation8 + $0x564] ss:$16 sps:$4 sm:$0xff]  }
 0x2a4   :  { %5682 = vmatprep.subr.bf16.mxu1 %v7311_v37  ;;  %v3792_v51 = vpop.f32.mrf.mxu1  ;;  %v7365_v37 = vld [vmem:[#allocation8 + $0x784] ss:$16 sps:$4 sm:$0xff]   ;;  %v7270_v34 = vld [vmem:[#allocation8 + $0x580] ss:$16 sps:$4 sm:$0xff]  }
 0x2a5   :  { %v3793_v54 = vadd.f32 %v3792_v51, %v3750_v49  ;;  %5640 = vmatpush1.bf16.msra.mxu0 %v7243_v41  ;;  %v658_v41 = vrot.slane %v7947_v25, %v657_v31  ;;  %v7273_v49 = vld [vmem:[#allocation8 + $0x560] ss:$16 sps:$4 sm:$0xff]   ;;  %v7278_v51 = vld [vmem:[#allocation8 + $0x544] ss:$16 sps:$4 sm:$0xff]   ;;  %v7330_v31 = vld [vmem:[#allocation8 + $0x1c8] ss:$16 sps:$4 sm:$0xff]  }
 0x2a6   :  { %5641 = vmatprep.subr.bf16.mxu0 %v7248_v43  ;;  %v7363_v43 = vld [vmem:[#allocation8 + $0x780] ss:$16 sps:$4 sm:$0xff]  }
 0x2a7   :  { %5683 = vmatpush1.bf16.msra.mxu1 %v7309_v14  ;;  %v3980_v58 = vmax.f32 %v3793_v54, 0.0  ;;  %v7371_v14 = vld [vmem:[#allocation8 + $0x764] ss:$16 sps:$4 sm:$0xff]   ;;  %v3662_v45 = vadd.f32 %v7983_v32, %v658_v41  ;;  %v7369_v54 = vld [vmem:[#allocation8 + $0x760] ss:$16 sps:$4 sm:$0xff]  }
 0x2a8   :  { %5684 = vmatprep.subr.bf16.mxu1 %v7317_v36  ;;  %v3658_v36 = vadd.f32 %v7977_v42, %v658_v41  ;;  %v7281_v32 = vld [vmem:[#allocation8 + $0x524] ss:$16 sps:$4 sm:$0xff]   ;;  %v7350_v41 = vld [vmem:[#allocation8 + $0x16c] ss:$16 sps:$4 sm:$0xff]  }
 0x2a9   :  { %v7997_v24 = vpack.c.bf16 %v3980_v58, %v3972_v50  ;;  %5642 = vmatpush1.bf16.msra.mxu0 %v7246_v56  ;;  %v7377_v56 = vld [vmem:[#allocation8 + $0x744] ss:$16 sps:$4 sm:$0xff]  }
 0x2aa   :  { %5643 = vmatprep.subr.bf16.mxu0 %v7251_v21  ;;  %v3705_v21 = vadd.f32 %v7985_v10, %v3662_v45  ;;  %v3701_v50 = vadd.f32 %v7979_v27, %v3658_v36  ;;  %v7383_v42 = vld [vmem:[#allocation8 + $0x724] ss:$16 sps:$4 sm:$0xff]  }
 0x2ab   :  { %5685 = vmatpush1.bf16.msra.mxu1 %v7315_v23  ;;  %5667 = vmatprep.mubr.bf16.mxu0 %v7997_v24  ;;  %v7276_v23 = vld [vmem:[#allocation8 + $0x540] ss:$16 sps:$4 sm:$0xff]   ;;  %v7284_v10 = vld [vmem:[#allocation8 + $0x504] ss:$16 sps:$4 sm:$0xff]  }
 0x2ac   :  { %5686 = vmatprep.subr.bf16.mxu1 %v7323_v18  ;;  %v3748_v58 = vadd.f32 %v7993_v38, %v3705_v21  ;;  %v7375_v18 = vld [vmem:[#allocation8 + $0x740] ss:$16 sps:$4 sm:$0xff]   ;;  %v7389_v27 = vld [vmem:[#allocation8 + $0x704] ss:$16 sps:$4 sm:$0xff]  }
 0x2ad   :  { %5644 = vmatpush1.bf16.msra.mxu0 %v7249_v63  ;;  %v3744_v63 = vadd.f32 %v7987_v30, %v3701_v50  ;;  %v7395_v30 = vld [vmem:[#allocation8 + $0x2ec] ss:$16 sps:$4 sm:$0xff]  }
 0x2ae   :  { %5645 = vmatprep.subr.bf16.mxu0 %v7254_v57  ;;  %v7279_v57 = vld [vmem:[#allocation8 + $0x520] ss:$16 sps:$4 sm:$0xff]  }
 0x2af   :  { %5687 = vmatpush1.bf16.msra.mxu1 %v7321_v62  ;;  %v3791_v62 = vadd.f32 %v7995_v40, %v3748_v58  ;;  %v3787_v38 = vadd.f32 %v7990_v55, %v3744_v63  ;;  %v7285_v40 = vld [vmem:[#allocation8 + $0xe8] ss:$16 sps:$4 sm:$0xff]   ;;  %v7374_v63 = vld [vmem:[#allocation8 + $0x4ec] ss:$16 sps:$4 sm:$0xff]  }
 0x2b0   :  { %5688 = vmatprep.subr.bf16.mxu1 %v7329_v1  ;;  %v7381_v1 = vld [vmem:[#allocation8 + $0x720] ss:$16 sps:$4 sm:$0xff]   ;;  %v7288_v55 = vld [vmem:[#allocation8 + $0xc8] ss:$16 sps:$4 sm:$0xff]  }
 0x2b1   :  { %5646 = vmatpush1.bf16.msra.mxu0 %v7252_v2  ;;  %v7282_v2 = vld [vmem:[#allocation8 + $0x500] ss:$16 sps:$4 sm:$0xff]  }
 0x2b2   :  { %5647 = vmatprep.subr.bf16.mxu0 %v7257_v3  ;;  %v3979_v3 = vmax.f32 %v3791_v62, 0.0 }
 0x2b3   :  { %5689 = vmatpush1.bf16.msra.mxu1 %v7327_v46  ;;  %v7287_v46 = vld [vmem:[#allocation8 + $0xec] ss:$16 sps:$4 sm:$0xff]  }
 0x2b4   :  { %5690 = vmatprep.subr.bf16.mxu1 %v7335_v5  ;;  %v7387_v5 = vld [vmem:[#allocation8 + $0x700] ss:$16 sps:$4 sm:$0xff]  }
 0x2b5   :  { %5648 = vmatpush1.bf16.msra.mxu0 %v7255_v47  ;;  %v3971_v47 = vmax.f32 %v3787_v38, 0.0  ;;  %v7380_v38 = vld [vmem:[#allocation8 + $0x4cc] ss:$16 sps:$4 sm:$0xff]  }
 0x2b6   :  { %5649 = vmatprep.subr.bf16.mxu0 %v7260_v6 }
 0x2b7   :  { %5691 = vmatpush1.bf16.msra.mxu1 %v7333_v7  ;;  %v8010_v6 = vpack.c.bf16 %v3979_v3, %v3971_v47  ;;  %v7290_v7 = vld [vmem:[#allocation8 + $0xcc] ss:$16 sps:$4 sm:$0xff]  }
 0x2b8   :  { %5692 = vmatprep.subr.bf16.mxu1 %v7341_v8  ;;  %v7293_v8 = vld [vmem:[#allocation8 + $0xac] ss:$16 sps:$4 sm:$0xff]  }
 0x2b9   :  { %5650 = vmatpush1.bf16.msra.mxu0 %v7258_v33  ;;  %v7291_v33 = vld [vmem:[#allocation8 + $0xa8] ss:$16 sps:$4 sm:$0xff]  }
 0x2ba   :  { %5651 = vmatprep.subr.bf16.mxu0 %v7263_v53  ;;  %v7296_v53 = vld [vmem:[#allocation8 + $0x8c] ss:$16 sps:$4 sm:$0xff]  }
 0x2bb   :  { %5693 = vmatpush1.bf16.msra.mxu1 %v7339_v11  ;;  %v7294_v11 = vld [vmem:[#allocation8 + $0x88] ss:$16 sps:$4 sm:$0xff]  }
 0x2bc   :  { %5694 = vmatprep.subr.bf16.mxu1 %v7347_v17  ;;  %v7302_v17 = vld [vmem:[#allocation8 + $0x6c] ss:$16 sps:$4 sm:$0xff]  }
 0x2bd   :  { %5652 = vmatpush2.bf16.msra.mxu0 %v7261_v9  ;;  %v7300_v9 = vld [vmem:[#allocation8 + $0x68] ss:$16 sps:$4 sm:$0xff]  }
 0x2be   :  { %5653 = vmatprep.subr.bf16.mxu0 %v7266_v19  ;;  %v7308_v19 = vld [vmem:[#allocation8 + $0x4c] ss:$16 sps:$4 sm:$0xff]  }
 0x2bf   :  { %5695 = vmatpush2.bf16.msra.mxu1 %v7345_v20  ;;  %v7306_v20 = vld [vmem:[#allocation8 + $0x48] ss:$16 sps:$4 sm:$0xff]  }
 0x2c0   :  { %5696 = vmatprep.subr.bf16.mxu1 %v7353_v22  ;;  %v7314_v22 = vld [vmem:[#allocation8 + $0x2c] ss:$16 sps:$4 sm:$0xff]  }
 0x2c1   :  { %5654 = vmatpush2.bf16.msra.mxu0 %v7264_v26  ;;  %v7320_v26 = vld [vmem:[#allocation8 + $0xc] ss:$16 sps:$4 sm:$0xff]  }
 0x2c2   :  { %5655 = vmatprep.subr.bf16.mxu0 %v7269_v29  ;;  %v7318_v29 = vld [vmem:[#allocation8 + $0x8] ss:$16 sps:$4 sm:$0xff]  }
 0x2c3   :  { %5697 = vmatpush2.bf16.msra.mxu1 %v7351_v39  ;;  %v7326_v39 = vld [vmem:[#allocation8 + $0x1ec] ss:$16 sps:$4 sm:$0xff]  }
 0x2c4   :  { %5698 = vmatprep.subr.bf16.mxu1 %v7359_v15  ;;  %v7324_v15 = vld [vmem:[#allocation8 + $0x1e8] ss:$16 sps:$4 sm:$0xff]  }
 0x2c5   :  { %5656 = vmatpush2.bf16.msra.mxu0 %v7267_v60  ;;  %v7332_v60 = vld [vmem:[#allocation8 + $0x1cc] ss:$16 sps:$4 sm:$0xff]  }
 0x2c6   :  { %5657 = vmatprep.subr.bf16.mxu0 %v7272_v35  ;;  %v7338_v35 = vld [vmem:[#allocation8 + $0x1ac] ss:$16 sps:$4 sm:$0xff]  }
 0x2c7   :  { %5699 = vmatpush2.bf16.msra.mxu1 %v7357_v12  ;;  %v7336_v12 = vld [vmem:[#allocation8 + $0x1a8] ss:$16 sps:$4 sm:$0xff]  }
 0x2c8   :  { %5700 = vmatprep.subr.bf16.mxu1 %v7365_v37  ;;  %v7344_v37 = vld [vmem:[#allocation8 + $0x18c] ss:$16 sps:$4 sm:$0xff]  }
 0x2c9   :  { %5658 = vmatpush2.bf16.msra.mxu0 %v7270_v34  ;;  %v7342_v34 = vld [vmem:[#allocation8 + $0x188] ss:$16 sps:$4 sm:$0xff]  }
 0x2ca   :  { %5659 = vmatprep.subr.bf16.mxu0 %v7275_v44  ;;  %v7348_v44 = vld [vmem:[#allocation8 + $0x168] ss:$16 sps:$4 sm:$0xff]  }
 0x2cb   :  { %5701 = vmatpush2.bf16.msra.mxu1 %v7363_v43  ;;  %v7356_v43 = vld [vmem:[#allocation8 + $0x14c] ss:$16 sps:$4 sm:$0xff]  }
 0x2cc   :  { %5702 = vmatprep.subr.bf16.mxu1 %v7371_v14  ;;  %v7354_v14 = vld [vmem:[#allocation8 + $0x148] ss:$16 sps:$4 sm:$0xff]  }
 0x2cd   :  { %5660 = vmatpush2.bf16.msra.mxu0 %v7273_v49  ;;  %v7362_v49 = vld [vmem:[#allocation8 + $0x12c] ss:$16 sps:$4 sm:$0xff]  }
 0x2ce   :  { %5661 = vmatprep.subr.bf16.mxu0 %v7278_v51  ;;  %v669_v51 = vsub.s32 7, %v7873_v4 }
 0x2cf   :  { %5703 = vmatpush2.bf16.msra.mxu1 %v7369_v54  ;;  %v7360_v54 = vld [vmem:[#allocation8 + $0x128] ss:$16 sps:$4 sm:$0xff]  }
 0x2d0   :  { %5704 = vmatprep.subr.bf16.mxu1 %v7377_v56  ;;  %v665_v56 = vsub.s32 6, %v7873_v4  ;;  %v670_v58 = vrot.slane %v7947_v25, %v669_v51  ;;  %v7399_v51 = vld [vmem:[#allocation8 + $0x2c8] ss:$16 sps:$4 sm:$0xff]  }
 0x2d1   :  { %5662 = vmatpush2.bf16.msra.mxu0 %v7276_v23  ;;  %v7368_v23 = vld [vmem:[#allocation8 + $0x10c] ss:$16 sps:$4 sm:$0xff]  }
 0x2d2   :  { %5663 = vmatprep.subr.bf16.mxu0 %v7281_v32  ;;  %v7366_v32 = vld [vmem:[#allocation8 + $0x108] ss:$16 sps:$4 sm:$0xff]  }
 0x2d3   :  { %5705 = vmatpush2.bf16.msra.mxu1 %v7375_v18  ;;  %v666_v18 = vrot.slane %v7947_v25, %v665_v56  ;;  %v7378_v25 = vld [vmem:[#allocation8 + $0x4c8] ss:$16 sps:$4 sm:$0xff]   ;;  %v7407_v56 = vld [vmem:[#allocation8 + $0x2ac] ss:$16 sps:$4 sm:$0xff]  }
 0x2d4   :  { %5706 = vmatprep.subr.bf16.mxu1 %v7383_v42 }
 0x2d5   :  { %5664 = vmatpush2.bf16.msra.mxu0 %v7279_v57 }
 0x2d6   :  { %5665 = vmatprep.subr.bf16.mxu0 %v7284_v10  ;;  %v7372_v10 = vld [vmem:[#allocation8 + $0x4e8] ss:$16 sps:$4 sm:$0xff]  }
 0x2d7   :  { %5707 = vmatpush2.bf16.msra.mxu1 %v7381_v1 }
 0x2d8   :  { %5708 = vmatprep.subr.bf16.mxu1 %v7389_v27 }
 0x2d9   :  { %5666 = vmatpush2.bf16.msra.mxu0 %v7282_v2 }
 0x2da   :  { %5721 = vmatprep.subr.bf16.mxu0 %v7287_v46 }
 0x2db   :  { %5709 = vmatpush2.bf16.msra.mxu1 %v7387_v5 }
 0x2dc   :  { %5764 = vmatprep.subr.bf16.mxu1 %v7395_v30  ;;  %5668 = vmatmul.mubr.bf16.vlgmr.msra.gmra.mxu0 %v8010_v6  ;;  %v3829_v45 = vpop.f32.mrf.mxu0 }
 0x2dd   :  { %5722 = vmatpush1.bf16.msra.mxu0 %v7285_v40  ;;  %5753 = vmatprep.mubr.bf16.mxu0 %v7969_v59  ;;  %v7312_v59 = vld [vmem:[#allocation8 + $0x28] ss:$16 sps:$4 sm:$0xff]   ;;  %v3830_v1 = vadd.f32 %v3829_v45, %v666_v18 }
 0x2de   :  { %5723 = vmatprep.subr.bf16.mxu0 %v7290_v7  ;;  %v3872_v36 = vpop.f32.mrf.mxu1  ;;  %v3831_v21 = vpop.f32.mrf.mxu0  ;;  %v7396_v45 = vld [vmem:[#allocation8 + $0x468] ss:$16 sps:$4 sm:$0xff]  }
 0x2df   :  { %v3832_v62 = vadd.f32 %v3831_v21, %v670_v58  ;;  %v3873_v40 = vadd.f32 %v3872_v36, %v3830_v1  ;;  %v7404_v36 = vld [vmem:[#allocation8 + $0x44c] ss:$16 sps:$4 sm:$0xff]  }
 0x2e0   :  { %v3874_v50 = vpop.f32.mrf.mxu1  ;;  %v3833_v42 = vpop.f32.mrf.mxu0  ;;  %v7410_v21 = vld [vmem:[#allocation8 + $0x42c] ss:$16 sps:$4 sm:$0xff]  }
 0x2e1   :  { %5724 = vmatpush1.bf16.msra.mxu0 %v7288_v55  ;;  %v3834_v2 = vadd.f32 %v3833_v42, %v666_v18  ;;  %v3875_v5 = vadd.f32 %v3874_v50, %v3832_v62  ;;  %v7386_v55 = vld [vmem:[#allocation8 + $0x4ac] ss:$16 sps:$4 sm:$0xff]   ;;  %v7408_v50 = vld [vmem:[#allocation8 + $0x428] ss:$16 sps:$4 sm:$0xff]  }
 0x2e2   :  { %5725 = vmatprep.subr.bf16.mxu0 %v7293_v8  ;;  %v3876_v57 = vpop.f32.mrf.mxu1  ;;  %v3835_v27 = vpop.f32.mrf.mxu0  ;;  %v7411_v18 = vld [vmem:[#allocation8 + $0x288] ss:$16 sps:$4 sm:$0xff]   ;;  %v7419_v42 = vld [vmem:[#allocation8 + $0x26c] ss:$16 sps:$4 sm:$0xff]  }
 0x2e3   :  { %v3836_v30 = vadd.f32 %v3835_v27, %v670_v58  ;;  %v3877_v8 = vadd.f32 %v3876_v57, %v3834_v2  ;;  %v7413_v58 = vld [vmem:[#allocation8 + $0x28c] ss:$16 sps:$4 sm:$0xff]   ;;  %v7417_v57 = vld [vmem:[#allocation8 + $0x268] ss:$16 sps:$4 sm:$0xff]  }
 0x2e4   :  { %v3878_v3 = vpop.f32.mrf.mxu1  ;;  %v7420_v62 = vld [vmem:[#allocation8 + $0x5e8] ss:$16 sps:$4 sm:$0xff]   ;;  %v7428_v1 = vld [vmem:[#allocation8 + $0x5cc] ss:$16 sps:$4 sm:$0xff]  }
 0x2e5   :  { %5726 = vmatpush1.bf16.msra.mxu0 %v7291_v33  ;;  %v7423_v27 = vld [vmem:[#allocation8 + $0x248] ss:$16 sps:$4 sm:$0xff]   ;;  %v7431_v2 = vld [vmem:[#allocation8 + $0x22c] ss:$16 sps:$4 sm:$0xff]  }
 0x2e6   :  { %5727 = vmatprep.subr.bf16.mxu0 %v7296_v53 }
 0x2e9   :  { %5728 = vmatpush1.bf16.msra.mxu0 %v7294_v11 }
 0x2ea   :  { %5729 = vmatprep.subr.bf16.mxu0 %v7302_v17 }
 0x2ed   :  { %5730 = vmatpush1.bf16.msra.mxu0 %v7300_v9  ;;  %v3879_v9 = vadd.f32 %v3878_v3, %v3836_v30  ;;  %v7434_v3 = vld [vmem:[#allocation8 + $0x5ac] ss:$16 sps:$4 sm:$0xff]  }
 0x2ee   :  { %5731 = vmatprep.subr.bf16.mxu0 %v7308_v19  ;;  %v7437_v30 = vld [vmem:[#allocation8 + $0x20c] ss:$16 sps:$4 sm:$0xff]  }
 0x2f1   :  { %5732 = vmatpush1.bf16.msra.mxu0 %v7306_v20 }
 0x2f2   :  { %5733 = vmatprep.subr.bf16.mxu0 %v7314_v22 }
 0x2f5   :  { %5734 = vmatpush1.bf16.msra.mxu0 %v7312_v59  ;;  %v7392_v59 = vld [vmem:[#allocation8 + $0x48c] ss:$16 sps:$4 sm:$0xff]  }
 0x2f6   :  { %5735 = vmatprep.subr.bf16.mxu0 %v7320_v26 }
 0x2f9   :  { %5736 = vmatpush1.bf16.msra.mxu0 %v7318_v29 }
 0x2fa   :  { %5737 = vmatprep.subr.bf16.mxu0 %v7326_v39 }
 0x2fd   :  { %5738 = vmatpush2.bf16.msra.mxu0 %v7324_v15 }
 0x2fe   :  { %5739 = vmatprep.subr.bf16.mxu0 %v7332_v60 }
 0x301   :  { %5740 = vmatpush2.bf16.msra.mxu0 %v7330_v31  ;;  %v7390_v31 = vld [vmem:[#allocation8 + $0x488] ss:$16 sps:$4 sm:$0xff]  }
 0x302   :  { %5741 = vmatprep.subr.bf16.mxu0 %v7338_v35 }
 0x305   :  { %5742 = vmatpush2.bf16.msra.mxu0 %v7336_v12  ;;  %v7398_v12 = vld [vmem:[#allocation8 + $0x46c] ss:$16 sps:$4 sm:$0xff]  }
 0x306   :  { %5743 = vmatprep.subr.bf16.mxu0 %v7344_v37 }
 0x309   :  { %5744 = vmatpush2.bf16.msra.mxu0 %v7342_v34 }
 0x30a   :  { %5745 = vmatprep.subr.bf16.mxu0 %v7350_v41 }
 0x30d   :  { %5746 = vmatpush2.bf16.msra.mxu0 %v7348_v44 }
 0x30e   :  { %5747 = vmatprep.subr.bf16.mxu0 %v7356_v43  ;;  %v7393_v43 = vld [vmem:[#allocation8 + $0x2e8] ss:$16 sps:$4 sm:$0xff]  }
 0x311   :  { %5748 = vmatpush2.bf16.msra.mxu0 %v7354_v14 }
 0x312   :  { %5749 = vmatprep.subr.bf16.mxu0 %v7362_v49  ;;  %v7401_v49 = vld [vmem:[#allocation8 + $0x2cc] ss:$16 sps:$4 sm:$0xff]  }
 0x315   :  { %5750 = vmatpush2.bf16.msra.mxu0 %v7360_v54  ;;  %v7402_v54 = vld [vmem:[#allocation8 + $0x448] ss:$16 sps:$4 sm:$0xff]  }
 0x316   :  { %5751 = vmatprep.subr.bf16.mxu0 %v7368_v23  ;;  %v7405_v23 = vld [vmem:[#allocation8 + $0x2a8] ss:$16 sps:$4 sm:$0xff]  }
 0x319   :  { %5752 = vmatpush2.bf16.msra.mxu0 %v7366_v32  ;;  %v7416_v32 = vld [vmem:[#allocation8 + $0x40c] ss:$16 sps:$4 sm:$0xff]  }
 0x31a   :  { %5807 = vmatprep.subr.bf16.mxu0 %v7374_v63  ;;  %v7422_v63 = vld [vmem:[#allocation8 + $0x5ec] ss:$16 sps:$4 sm:$0xff]  }
 0x31c   :  { %v3915_v46 = vpop.f32.mrf.mxu0  ;;  %5754 = vmatmul.mubr.bf16.vlgmr.msra.gmra.mxu0 %v7907_v28  ;;  %v7384_v28 = vld [vmem:[#allocation8 + $0x4a8] ss:$16 sps:$4 sm:$0xff]  }
 0x31d   :  { %5808 = vmatpush1.bf16.msra.mxu0 %v7372_v10  ;;  %5839 = vmatprep.mubr.bf16.mxu0 %v7997_v24  ;;  %v3916_v11 = vadd.f32 %v3915_v46, %v3873_v40  ;;  %v7425_v10 = vld [vmem:[#allocation8 + $0x24c] ss:$16 sps:$4 sm:$0xff]   ;;  %v7429_v46 = vld [vmem:[#allocation8 + $0x228] ss:$16 sps:$4 sm:$0xff]  }
 0x31e   :  { %v3958_v47 = vpop.f32.mrf.mxu1  ;;  %v3917_v7 = vpop.f32.mrf.mxu0  ;;  %5809 = vmatprep.subr.bf16.mxu0 %v7380_v38  ;;  %v7426_v38 = vld [vmem:[#allocation8 + $0x5c8] ss:$16 sps:$4 sm:$0xff]  }
 0x31f   :  { %v3918_v33 = vadd.f32 %v3917_v7, %v3875_v5  ;;  %v3959_v39 = vadd.f32 %v3958_v47, %v3916_v11  ;;  %v7432_v5 = vld [vmem:[#allocation8 + $0x5a8] ss:$16 sps:$4 sm:$0xff]   ;;  %v7440_v47 = vld [vmem:[#allocation8 + $0x58c] ss:$16 sps:$4 sm:$0xff]  }
 0x320   :  { %v3960_v53 = vpop.f32.mrf.mxu1  ;;  %v3919_v17 = vpop.f32.mrf.mxu0  ;;  %v7438_v40 = vld [vmem:[#allocation8 + $0x588] ss:$16 sps:$4 sm:$0xff]   ;;  %v7443_v7 = vld [vmem:[#allocation8 + $0x3ec] ss:$16 sps:$4 sm:$0xff]  }
 0x321   :  { %v3920_v19 = vadd.f32 %v3919_v17, %v3877_v8  ;;  %5810 = vmatpush1.bf16.msra.mxu0 %v7378_v25  ;;  %v3961_v26 = vadd.f32 %v3960_v53, %v3918_v33  ;;  %v3973_v41 = vmax.f32 %v3959_v39, 0.0  ;;  %v7435_v25 = vld [vmem:[#allocation8 + $0x208] ss:$16 sps:$4 sm:$0xff]   ;;  %v7449_v53 = vld [vmem:[#allocation8 + $0x3cc] ss:$16 sps:$4 sm:$0xff]  }
 0x322   :  { %v3962_v20 = vpop.f32.mrf.mxu1  ;;  %v3921_v22 = vpop.f32.mrf.mxu0  ;;  %5811 = vmatprep.subr.bf16.mxu0 %v7386_v55  ;;  %v7446_v55 = vld [vmem:[#allocation8 + $0x56c] ss:$16 sps:$4 sm:$0xff]   ;;  %v7441_v8 = vld [vmem:[#allocation8 + $0x3e8] ss:$16 sps:$4 sm:$0xff]  }
 0x323   :  { %v3963_v24 = vadd.f32 %v3962_v20, %v3920_v19  ;;  %v3922_v29 = vadd.f32 %v3921_v22, %v3879_v9  ;;  %v3974_v37 = vmax.f32 %v3961_v26, 0.0  ;;  %v7444_v33 = vld [vmem:[#allocation8 + $0x568] ss:$16 sps:$4 sm:$0xff]   ;;  %v7452_v11 = vld [vmem:[#allocation8 + $0x54c] ss:$16 sps:$4 sm:$0xff]  }
 0x324   :  { %v3964_v15 = vpop.f32.mrf.mxu1  ;;  %v7447_v17 = vld [vmem:[#allocation8 + $0x3c8] ss:$16 sps:$4 sm:$0xff]   ;;  %v7455_v19 = vld [vmem:[#allocation8 + $0x3ac] ss:$16 sps:$4 sm:$0xff]  }
 0x325   :  { %v3965_v60 = vadd.f32 %v3964_v15, %v3922_v29  ;;  %5812 = vmatpush1.bf16.msra.mxu0 %v7384_v28  ;;  %v3981_v35 = vmax.f32 %v3963_v24, 0.0  ;;  %v7450_v9 = vld [vmem:[#allocation8 + $0x548] ss:$16 sps:$4 sm:$0xff]   ;;  %v7458_v20 = vld [vmem:[#allocation8 + $0x52c] ss:$16 sps:$4 sm:$0xff]  }
 0x326   :  { %5813 = vmatprep.subr.bf16.mxu0 %v7392_v59  ;;  %v7453_v28 = vld [vmem:[#allocation8 + $0x3a8] ss:$16 sps:$4 sm:$0xff]   ;;  %v7461_v59 = vld [vmem:[#allocation8 + $0x38c] ss:$16 sps:$4 sm:$0xff]  }
 0x327   :  { %v3982_v34 = vmax.f32 %v3965_v60, 0.0  ;;  %v8022_v14 = vpack.c.bf16 %v3981_v35, %v3973_v41  ;;  %v7456_v22 = vld [vmem:[#allocation8 + $0x528] ss:$16 sps:$4 sm:$0xff]   ;;  %v7464_v26 = vld [vmem:[#allocation8 + $0x50c] ss:$16 sps:$4 sm:$0xff]  }
 0x328   :  { %v7459_v24 = vld [vmem:[#allocation8 + $0x388] ss:$16 sps:$4 sm:$0xff]   ;;  %v7467_v39 = vld [vmem:[#allocation8 + $0x36c] ss:$16 sps:$4 sm:$0xff]  }
 0x329   :  { %v8020_v44 = vpack.c.bf16 %v3982_v34, %v3974_v37  ;;  %5814 = vmatpush1.bf16.msra.mxu0 %v7390_v31  ;;  %v7462_v29 = vld [vmem:[#allocation8 + $0x508] ss:$16 sps:$4 sm:$0xff]   ;;  %v7525_v15 = vld [vmem:[#allocation11 + $0x78] sm:$0xff]  }
 0x32a   :  { %5815 = vmatprep.subr.bf16.mxu0 %v7398_v12  ;;  %v7465_v60 = vld [vmem:[#allocation8 + $0x368] ss:$16 sps:$4 sm:$0xff]   ;;  %v7470_v31 = vld [vmem:[#allocation8 + $0x34c] ss:$16 sps:$4 sm:$0xff]  }
 0x32b   :  { %5710 = vmatprep.mubr.bf16.mxu1 %v8020_v44  ;;  %v7526_v35 = vld [vmem:[#allocation11 + $0x38] sm:$0xff]   ;;  %v7468_v12 = vld [vmem:[#allocation8 + $0x348] ss:$16 sps:$4 sm:$0xff]  }
 0x32c   :  { %5711 = vmatmul.mubr.bf16.vlgmr.msra.gmra.mxu1 %v8022_v14  ;;  %v7473_v37 = vld [vmem:[#allocation8 + $0x32c] ss:$16 sps:$4 sm:$0xff]   ;;  %v7527_v34 = vld [vmem:[#allocation11 + $0x70] sm:$0xff]  }
 0x32d   :  { %5765 = vmatpush1.bf16.msra.mxu1 %v7393_v43  ;;  %5796 = vmatprep.mubr.bf16.mxu1 %v7972_v61  ;;  %v7414_v61 = vld [vmem:[#allocation8 + $0x408] ss:$16 sps:$4 sm:$0xff]  }
 0x32e   :  { %5816 = vmatpush1.bf16.msra.mxu0 %v7396_v45  ;;  %5766 = vmatprep.subr.bf16.mxu1 %v7401_v49  ;;  %v7528_v41 = vld [vmem:[#allocation11 + $0x30] sm:$0xff]   ;;  %v7476_v45 = vld [vmem:[#allocation8 + $0x30c] ss:$16 sps:$4 sm:$0xff]  }
 0x32f   :  { %5817 = vmatprep.subr.bf16.mxu0 %v7404_v36  ;;  %v7471_v43 = vld [vmem:[#allocation8 + $0x328] ss:$16 sps:$4 sm:$0xff]   ;;  %v7529_v49 = vld [vmem:[#allocation11 + $0x68] sm:$0xff]  }
 0x330   :  { %v7530_v36 = vld [vmem:[#allocation11 + $0x28] sm:$0xff]  }
 0x331   :  { %5767 = vmatpush1.bf16.msra.mxu1 %v7399_v51  ;;  %v7531_v51 = vld [vmem:[#allocation11 + $0x60] sm:$0xff]  }
 0x332   :  { %5818 = vmatpush1.bf16.msra.mxu0 %v7402_v54  ;;  %5768 = vmatprep.subr.bf16.mxu1 %v7407_v56  ;;  %v7474_v54 = vld [vmem:[#allocation8 + $0x308] ss:$16 sps:$4 sm:$0xff]  }
 0x333   :  { %5819 = vmatprep.subr.bf16.mxu0 %v7410_v21  ;;  %v7532_v56 = vld [vmem:[#allocation11 + $0x20] sm:$0xff]   ;;  %v7533_v21 = vld [vmem:[#allocation11 + $0x58] sm:$0xff]  }
 0x335   :  { %5769 = vmatpush1.bf16.msra.mxu1 %v7405_v23  ;;  %v7477_v23 = vld [vmem:[#allocation8 + $0x6e8] ss:$16 sps:$4 sm:$0xff]  }
 0x336   :  { %5820 = vmatpush1.bf16.msra.mxu0 %v7408_v50  ;;  %5770 = vmatprep.subr.bf16.mxu1 %v7413_v58  ;;  %v7482_v50 = vld [vmem:[#allocation8 + $0x6cc] ss:$16 sps:$4 sm:$0xff]  }
 0x337   :  { %5821 = vmatprep.subr.bf16.mxu0 %v7416_v32  ;;  %v7534_v58 = vld [vmem:[#allocation11 + $0x18] sm:$0xff]   ;;  %v7480_v32 = vld [vmem:[#allocation8 + $0x6c8] ss:$16 sps:$4 sm:$0xff]  }
 0x339   :  { %5771 = vmatpush1.bf16.msra.mxu1 %v7411_v18  ;;  %v7485_v18 = vld [vmem:[#allocation8 + $0x6ac] ss:$16 sps:$4 sm:$0xff]  }
 0x33a   :  { %5822 = vmatpush1.bf16.msra.mxu0 %v7414_v61  ;;  %5772 = vmatprep.subr.bf16.mxu1 %v7419_v42  ;;  %v7535_v61 = vld [vmem:[#allocation11 + $0x50] sm:$0xff]  }
 0x33b   :  { %5823 = vmatprep.subr.bf16.mxu0 %v7422_v63  ;;  %v7536_v42 = vld [vmem:[#allocation11 + $0x10] sm:$0xff]  }
 0x33c   :  { %v7483_v63 = vld [vmem:[#allocation8 + $0x6a8] ss:$16 sps:$4 sm:$0xff]  }
 0x33d   :  { %5773 = vmatpush1.bf16.msra.mxu1 %v7417_v57  ;;  %v7488_v57 = vld [vmem:[#allocation8 + $0x68c] ss:$16 sps:$4 sm:$0xff]  }
 0x33e   :  { %5824 = vmatpush2.bf16.msra.mxu0 %v7420_v62  ;;  %5774 = vmatprep.subr.bf16.mxu1 %v7425_v10  ;;  %v7537_v62 = vld [vmem:[#allocation11 + $0x48] sm:$0xff]  }
 0x33f   :  { %5825 = vmatprep.subr.bf16.mxu0 %v7428_v1  ;;  %v7538_v10 = vld [vmem:[#allocation11 + $0x8] sm:$0xff]  }
 0x340   :  { %v7491_v1 = vld [vmem:[#allocation8 + $0x66c] ss:$16 sps:$4 sm:$0xff]  }
 0x341   :  { %5775 = vmatpush1.bf16.msra.mxu1 %v7423_v27  ;;  %v7540_v27 = vld [vmem:[#allocation11] sm:$0xff]  }
 0x342   :  { %5826 = vmatpush2.bf16.msra.mxu0 %v7426_v38  ;;  %5776 = vmatprep.subr.bf16.mxu1 %v7431_v2  ;;  %v7489_v38 = vld [vmem:[#allocation8 + $0x668] ss:$16 sps:$4 sm:$0xff]   ;;  %v7494_v2 = vld [vmem:[#allocation8 + $0x64c] ss:$16 sps:$4 sm:$0xff]  }
 0x343   :  { %5827 = vmatprep.subr.bf16.mxu0 %v7434_v3  ;;  %v7492_v3 = vld [vmem:[#allocation8 + $0x648] ss:$16 sps:$4 sm:$0xff]  }
 0x345   :  { %5777 = vmatpush1.bf16.msra.mxu1 %v7429_v46  ;;  %v7497_v46 = vld [vmem:[#allocation8 + $0x62c] ss:$16 sps:$4 sm:$0xff]  }
 0x346   :  { %5828 = vmatpush2.bf16.msra.mxu0 %v7432_v5  ;;  %5778 = vmatprep.subr.bf16.mxu1 %v7437_v30  ;;  %v7495_v5 = vld [vmem:[#allocation8 + $0x628] ss:$16 sps:$4 sm:$0xff]   ;;  %v7500_v30 = vld [vmem:[#allocation8 + $0x60c] ss:$16 sps:$4 sm:$0xff]  }
 0x347   :  { %5829 = vmatprep.subr.bf16.mxu0 %v7440_v47  ;;  %v7498_v47 = vld [vmem:[#allocation8 + $0x608] ss:$16 sps:$4 sm:$0xff]  }
 0x349   :  { %5779 = vmatpush1.bf16.msra.mxu1 %v7435_v25  ;;  %v7503_v25 = vld [vmem:[#allocation8 + $0x7ec] ss:$16 sps:$4 sm:$0xff]  }
 0x34a   :  { %5830 = vmatpush2.bf16.msra.mxu0 %v7438_v40  ;;  %5780 = vmatprep.subr.bf16.mxu1 %v7443_v7  ;;  %v7501_v40 = vld [vmem:[#allocation8 + $0x7e8] ss:$16 sps:$4 sm:$0xff]   ;;  %v7506_v7 = vld [vmem:[#allocation8 + $0x7cc] ss:$16 sps:$4 sm:$0xff]  }
 0x34b   :  { %5831 = vmatprep.subr.bf16.mxu0 %v7446_v55  ;;  %v7504_v55 = vld [vmem:[#allocation8 + $0x7c8] ss:$16 sps:$4 sm:$0xff]  }
 0x34d   :  { %5781 = vmatpush2.bf16.msra.mxu1 %v7441_v8  ;;  %v7509_v8 = vld [vmem:[#allocation8 + $0x7ac] ss:$16 sps:$4 sm:$0xff]  }
 0x34e   :  { %5832 = vmatpush2.bf16.msra.mxu0 %v7444_v33  ;;  %5782 = vmatprep.subr.bf16.mxu1 %v7449_v53  ;;  %v7507_v33 = vld [vmem:[#allocation8 + $0x7a8] ss:$16 sps:$4 sm:$0xff]   ;;  %v7512_v53 = vld [vmem:[#allocation8 + $0x78c] ss:$16 sps:$4 sm:$0xff]  }
 0x34f   :  { %5833 = vmatprep.subr.bf16.mxu0 %v7452_v11  ;;  %v7510_v11 = vld [vmem:[#allocation8 + $0x788] ss:$16 sps:$4 sm:$0xff]  }
 0x351   :  { %5783 = vmatpush2.bf16.msra.mxu1 %v7447_v17  ;;  %v7515_v17 = vld [vmem:[#allocation8 + $0x76c] ss:$16 sps:$4 sm:$0xff]  }
 0x352   :  { %5834 = vmatpush2.bf16.msra.mxu0 %v7450_v9  ;;  %5784 = vmatprep.subr.bf16.mxu1 %v7455_v19  ;;  %v7513_v9 = vld [vmem:[#allocation8 + $0x768] ss:$16 sps:$4 sm:$0xff]   ;;  %v7518_v19 = vld [vmem:[#allocation8 + $0x74c] ss:$16 sps:$4 sm:$0xff]  }
 0x353   :  { %5835 = vmatprep.subr.bf16.mxu0 %v7458_v20  ;;  %v7516_v20 = vld [vmem:[#allocation8 + $0x748] ss:$16 sps:$4 sm:$0xff]  }
 0x355   :  { %5785 = vmatpush2.bf16.msra.mxu1 %v7453_v28  ;;  %v7521_v28 = vld [vmem:[#allocation8 + $0x72c] ss:$16 sps:$4 sm:$0xff]  }
 0x356   :  { %5836 = vmatpush2.bf16.msra.mxu0 %v7456_v22  ;;  %5786 = vmatprep.subr.bf16.mxu1 %v7461_v59  ;;  %v7519_v22 = vld [vmem:[#allocation8 + $0x728] ss:$16 sps:$4 sm:$0xff]   ;;  %v7524_v59 = vld [vmem:[#allocation8 + $0x70c] ss:$16 sps:$4 sm:$0xff]  }
 0x357   :  { %5837 = vmatprep.subr.bf16.mxu0 %v7464_v26  ;;  %v7522_v26 = vld [vmem:[#allocation8 + $0x708] ss:$16 sps:$4 sm:$0xff]  }
 0x359   :  { %5787 = vmatpush2.bf16.msra.mxu1 %v7459_v24  ;;  %v7541_v24 = vld [vmem:[#allocation11 + $0xf8] sm:$0xff]  }
 0x35a   :  { %5838 = vmatpush2.bf16.msra.mxu0 %v7462_v29  ;;  %5788 = vmatprep.subr.bf16.mxu1 %v7467_v39  ;;  %v7542_v29 = vld [vmem:[#allocation11 + $0xb8] sm:$0xff]   ;;  %v7543_v39 = vld [vmem:[#allocation11 + $0xf0] sm:$0xff]  }
 0x35b   :  { %7081 = vmatprep.subr.bf16.mxu0 %v7525_v15  ;;  %v7544_v15 = vld [vmem:[#allocation11 + $0xb0] sm:$0xff]  }
 0x35d   :  { %5789 = vmatpush2.bf16.msra.mxu1 %v7465_v60  ;;  %5840 = vmatmul.mubr.bf16.vlgmr.msra.gmra.mxu0 %v8010_v6  ;;  %v7479_v6 = vld [vmem:[#allocation8 + $0x6ec] ss:$16 sps:$4 sm:$0xff]  }
 0x35e   :  { %5790 = vmatprep.subr.bf16.mxu1 %v7470_v31  ;;  %7082 = vmatpush3.bf16.msra.mxu0 %v7526_v35  ;;  %v7545_v60 = vld [vmem:[#allocation11 + $0xe8] sm:$0xff]   ;;  %v7547_v35 = vld [vmem:[#allocation11 + $0xe0] sm:$0xff]  }
 0x35f   :  { %7083 = vmatprep.subr.bf16.mxu0 %v7527_v34  ;;  %v7546_v31 = vld [vmem:[#allocation11 + $0xa8] sm:$0xff]   ;;  %v7550_v34 = vld [vmem:[#allocation11 + $0x98] sm:$0xff]  }
 0x361   :  { %5791 = vmatpush2.bf16.msra.mxu1 %v7468_v12  ;;  %v7548_v12 = vld [vmem:[#allocation11 + $0xa0] sm:$0xff]  }
 0x362   :  { %5792 = vmatprep.subr.bf16.mxu1 %v7473_v37  ;;  %7084 = vmatpush3.bf16.msra.mxu0 %v7528_v41  ;;  %v7549_v37 = vld [vmem:[#allocation11 + $0xd8] sm:$0xff]  }
 0x363   :  { %7085 = vmatprep.subr.bf16.mxu0 %v7529_v49 }
 0x365   :  { %5793 = vmatpush2.bf16.msra.mxu1 %v7471_v43 }
 0x366   :  { %5794 = vmatprep.subr.bf16.mxu1 %v7476_v45  ;;  %7086 = vmatpush3.bf16.msra.mxu0 %v7530_v36  ;;  %v5626_v45 = vpop.f32.mrf.mxu1 }
 0x367   :  { %7087 = vmatprep.subr.bf16.mxu0 %v7531_v51 }
 0x368   :  { %v5628_v36 = vpop.f32.mrf.mxu1 }
 0x369   :  { %5795 = vmatpush2.bf16.msra.mxu1 %v7474_v54  ;;  %v4247_v54 = vld [vmem:[#allocation10] sm:$0xf] }
 0x36a   :  { %5850 = vmatprep.subr.bf16.mxu1 %v7479_v6  ;;  %7088 = vmatpush3.bf16.msra.mxu0 %v7532_v56  ;;  %v4256_v6 = vrot.slane %v4247_v54, %v645_v48  ;;  %v4252_v56 = vrot.slane %v4247_v54, %v641_v13 }
 0x36b   :  { %7089 = vmatprep.subr.bf16.mxu0 %v7533_v21  ;;  %v5630_v21 = vpop.f32.mrf.mxu1 }
 0x36c   :  { %5797 = vmatmul.mubr.bf16.vlgmr.msra.gmra.mxu1 %v7943_v16  ;;  %v7486_v16 = vld [vmem:[#allocation8 + $0x688] ss:$16 sps:$4 sm:$0xff]  }
 0x36d   :  { %5851 = vmatpush1.bf16.msra.mxu1 %v7477_v23  ;;  %5882 = vmatprep.mubr.bf16.mxu1 %v8020_v44  ;;  %v7539_v44 = vld [vmem:[#allocation11 + $0x40] sm:$0xff]  }
 0x36e   :  { %5852 = vmatprep.subr.bf16.mxu1 %v7482_v50  ;;  %7090 = vmatpush3.bf16.msra.mxu0 %v7534_v58 }
 0x36f   :  { %7091 = vmatprep.subr.bf16.mxu0 %v7535_v61 }
 0x371   :  { %5853 = vmatpush1.bf16.msra.mxu1 %v7480_v32 }
 0x372   :  { %5854 = vmatprep.subr.bf16.mxu1 %v7485_v18  ;;  %7092 = vmatpush3.bf16.msra.mxu0 %v7536_v42  ;;  %v5632_v18 = vpop.f32.mrf.mxu1 }
 0x373   :  { %7093 = vmatprep.subr.bf16.mxu0 %v7537_v62 }
 0x375   :  { %5855 = vmatpush1.bf16.msra.mxu1 %v7483_v63 }
 0x376   :  { %5856 = vmatprep.subr.bf16.mxu1 %v7488_v57  ;;  %7094 = vmatpush3.bf16.msra.mxu0 %v7538_v10  ;;  %v7551_v10 = vld [vmem:[#allocation11 + $0xd0] sm:$0xff]  }
 0x377   :  { %7095 = vmatprep.subr.bf16.mxu0 %v7539_v44 }
 0x379   :  { %5857 = vmatpush1.bf16.msra.mxu1 %v7486_v16 }
 0x37a   :  { %5858 = vmatprep.subr.bf16.mxu1 %v7491_v1  ;;  %7096 = vmatpush3.bf16.msra.mxu0 %v7540_v27  ;;  %v7552_v27 = vld [vmem:[#allocation11 + $0x90] sm:$0xff]  }
 0x37d   :  { %5859 = vmatpush1.bf16.msra.mxu1 %v7489_v38 }
 0x37e   :  { %5860 = vmatprep.subr.bf16.mxu1 %v7494_v2 }
 0x381   :  { %5861 = vmatpush1.bf16.msra.mxu1 %v7492_v3 }
 0x382   :  { %5862 = vmatprep.subr.bf16.mxu1 %v7497_v46 }
 0x385   :  { %5863 = vmatpush1.bf16.msra.mxu1 %v7495_v5 }
 0x386   :  { %5864 = vmatprep.subr.bf16.mxu1 %v7500_v30 }
 0x389   :  { %5865 = vmatpush1.bf16.msra.mxu1 %v7498_v47  ;;  %v7553_v47 = vld [vmem:[#allocation11 + $0xc8] sm:$0xff]  }
 0x38a   :  { %5866 = vmatprep.subr.bf16.mxu1 %v7503_v25 }
 0x38d   :  { %5867 = vmatpush2.bf16.msra.mxu1 %v7501_v40 }
 0x38e   :  { %5868 = vmatprep.subr.bf16.mxu1 %v7506_v7  ;;  %v7554_v7 = vld [vmem:[#allocation11 + $0x88] sm:$0xff]  }
 0x391   :  { %5869 = vmatpush2.bf16.msra.mxu1 %v7504_v55 }
 0x392   :  { %5870 = vmatprep.subr.bf16.mxu1 %v7509_v8 }
 0x395   :  { %5871 = vmatpush2.bf16.msra.mxu1 %v7507_v33 }
 0x396   :  { %5872 = vmatprep.subr.bf16.mxu1 %v7512_v53 }
 0x399   :  { %5873 = vmatpush2.bf16.msra.mxu1 %v7510_v11  ;;  %v7555_v11 = vld [vmem:[#allocation11 + $0xc0] sm:$0xff]  }
 0x39a   :  { %5874 = vmatprep.subr.bf16.mxu1 %v7515_v17 }
 0x39d   :  { %5875 = vmatpush2.bf16.msra.mxu1 %v7513_v9  ;;  %v7556_v9 = vld [vmem:[#allocation11 + $0x80] sm:$0xff]  }
 0x39e   :  { %5876 = vmatprep.subr.bf16.mxu1 %v7518_v19 }
 0x3a1   :  { %5877 = vmatpush2.bf16.msra.mxu1 %v7516_v20 }
 0x3a2   :  { %5878 = vmatprep.subr.bf16.mxu1 %v7521_v28 }
 0x3a5   :  { %5879 = vmatpush2.bf16.msra.mxu1 %v7519_v22 }
 0x3a6   :  { %5880 = vmatprep.subr.bf16.mxu1 %v7524_v59 }
 0x3a9   :  { %5881 = vmatpush2.bf16.msra.mxu1 %v7522_v26 }
 0x3aa   :  { %7103 = vmatprep.subr.bf16.mxu1 %v7541_v24 }
 0x3ac   :  { %5883 = vmatmul.mubr.bf16.vlgmr.msra.gmra.mxu1 %v8022_v14  ;;  %v5583_v14 = vpop.f32.mrf.mxu0 }
 0x3ad   :  { %7104 = vmatpush3.bf16.msra.mxu1 %v7542_v29  ;;  %v5584_v32 = vadd.f32 %v5583_v14, %v4252_v56 }
 0x3ae   :  { %7105 = vmatprep.subr.bf16.mxu1 %v7543_v39  ;;  %v5585_v41 = vpop.f32.mrf.mxu0 }
 0x3af   :  { %v5586_v50 = vadd.f32 %v5585_v41, %v4256_v6  ;;  %v5627_v16 = vadd.f32 %v5626_v45, %v5584_v32 }
 0x3b0   :  { %v5587_v43 = vpop.f32.mrf.mxu0 }
 0x3b1   :  { %7106 = vmatpush3.bf16.msra.mxu1 %v7544_v15  ;;  %v5588_v58 = vadd.f32 %v5587_v43, %v4252_v56  ;;  %v5629_v57 = vadd.f32 %v5628_v36, %v5586_v50  ;;  %v4264_v15 = vrot.slane %v4247_v54, %v653_v52 }
 0x3b2   :  { %7107 = vmatprep.subr.bf16.mxu1 %v7545_v60  ;;  %v5589_v49 = vpop.f32.mrf.mxu0  ;;  %v4260_v60 = vrot.slane %v4247_v54, %v649_v0 }
 0x3b3   :  { %v5590_v42 = vadd.f32 %v5589_v49, %v4256_v6  ;;  %v5631_v62 = vadd.f32 %v5630_v21, %v5588_v58 }
 0x3b4   :  { %v5669_v51 = vpop.f32.mrf.mxu0 }
 0x3b5   :  { %7108 = vmatpush3.bf16.msra.mxu1 %v7546_v31  ;;  %v5633_v48 = vadd.f32 %v5632_v18, %v5590_v42  ;;  %v5670_v13 = vadd.f32 %v5669_v51, %v5627_v16 }
 0x3b6   :  { %7109 = vmatprep.subr.bf16.mxu1 %v7547_v35  ;;  %v5671_v23 = vpop.f32.mrf.mxu0 }
 0x3b7   :  { %v5672_v38 = vadd.f32 %v5671_v23, %v5629_v57 }
 0x3b8   :  { %v5673_v61 = vpop.f32.mrf.mxu0 }
 0x3b9   :  { %7110 = vmatpush3.bf16.msra.mxu1 %v7548_v12  ;;  %v5674_v2 = vadd.f32 %v5673_v61, %v5631_v62 }
 0x3ba   :  { %7111 = vmatprep.subr.bf16.mxu1 %v7549_v37  ;;  %v5675_v1 = vpop.f32.mrf.mxu0 }
 0x3bb   :  { %v5676_v46 = vadd.f32 %v5675_v1, %v5633_v48 }
 0x3bd   :  { %7112 = vmatpush3.bf16.msra.mxu1 %v7550_v34 }
 0x3be   :  { %7113 = vmatprep.subr.bf16.mxu1 %v7551_v10 }
 0x3c1   :  { %7114 = vmatpush3.bf16.msra.mxu1 %v7552_v27 }
 0x3c2   :  { %7115 = vmatprep.subr.bf16.mxu1 %v7553_v47 }
 0x3c5   :  { %7116 = vmatpush3.bf16.msra.mxu1 %v7554_v7 }
 0x3c6   :  { %7117 = vmatprep.subr.bf16.mxu1 %v7555_v11 }
 0x3c9   :  { %7118 = vmatpush3.bf16.msra.mxu1 %v7556_v9 }
 0x3dc   :  { %v5755_v28 = vpop.f32.mrf.mxu0 }
 0x3dd   :  { %v5756_v34 = vadd.f32 %v5755_v28, %v4260_v60 }
 0x3de   :  { %v5757_v22 = vpop.f32.mrf.mxu0 }
 0x3df   :  { %v5758_v12 = vadd.f32 %v5757_v22, %v4264_v15 }
 0x3e0   :  { %v5759_v59 = vpop.f32.mrf.mxu0 }
 0x3e1   :  { %v5760_v37 = vadd.f32 %v5759_v59, %v4260_v60 }
 0x3e2   :  { %v5761_v24 = vpop.f32.mrf.mxu0 }
 0x3e3   :  { %v5762_v41 = vadd.f32 %v5761_v24, %v4264_v15 }
 0x3ec   :  { %v5712_v63 = vpop.f32.mrf.mxu1 }
 0x3ed   :  { %v5713_v25 = vadd.f32 %v5712_v63, %v5670_v13 }
 0x3ee   :  { %v5714_v44 = vpop.f32.mrf.mxu1 }
 0x3ef   :  { %v5715_v5 = vadd.f32 %v5714_v44, %v5672_v38  ;;  %v5893_v17 = vmax.f32 %v5713_v25, 0.0  ;;  %v7048_v38 = vld [vmem:[#allocation13] ss:$0 sm:$0xff] }
 0x3f0   :  { %v5716_v3 = vpop.f32.mrf.mxu1 }
 0x3f1   :  { %v5717_v30 = vadd.f32 %v5716_v3, %v5674_v2  ;;  %v5894_v33 = vmax.f32 %v5715_v5, 0.0 }
 0x3f2   :  { %v5718_v40 = vpop.f32.mrf.mxu1 }
 0x3f3   :  { %v5719_v55 = vadd.f32 %v5718_v40, %v5676_v46  ;;  %v5897_v8 = vmax.f32 %v5717_v30, 0.0 }
 0x3f5   :  { %v5898_v53 = vmax.f32 %v5719_v55, 0.0  ;;  %v5901_v20 = vpack.c.bf16 %v5897_v8, %v5893_v17 }
 0x3f7   :  { %v5902_v19 = vpack.c.bf16 %v5898_v53, %v5894_v33 }
 0x3f9   :  { %6200 = vmatprep.mubr.bf16.mxu0 %v5902_v19 }
 0x3fa   :  { %6201 = vmatmul.mubr.bf16.vlgmr.msra.gmra.mxu0 %v5901_v20 }
 0x41d   :  { %v5841_v39 = vpop.f32.mrf.mxu0 }
 0x41f   :  { %v5843_v35 = vpop.f32.mrf.mxu0 }
 0x421   :  { %v5845_v49 = vpop.f32.mrf.mxu0 }
 0x423   :  { %v5847_v52 = vpop.f32.mrf.mxu0 }
 0x42c   :  { %v5798_v26 = vpop.f32.mrf.mxu1 }
 0x42d   :  { %v5799_v36 = vadd.f32 %v5798_v26, %v5756_v34 }
 0x42e   :  { %v5800_v29 = vpop.f32.mrf.mxu1 }
 0x42f   :  { %v5801_v43 = vadd.f32 %v5800_v29, %v5758_v12  ;;  %v5842_v50 = vadd.f32 %v5841_v39, %v5799_v36 }
 0x430   :  { %v5802_v31 = vpop.f32.mrf.mxu1 }
 0x431   :  { %v5803_v45 = vadd.f32 %v5802_v31, %v5760_v37  ;;  %v5844_v21 = vadd.f32 %v5843_v35, %v5801_v43 }
 0x432   :  { %v5804_v14 = vpop.f32.mrf.mxu1 }
 0x433   :  { %v5805_v6 = vadd.f32 %v5804_v14, %v5762_v41  ;;  %v5846_v23 = vadd.f32 %v5845_v49, %v5803_v45 }
 0x435   :  { %v5848_v58 = vadd.f32 %v5847_v52, %v5805_v6 }
 0x46c   :  { %v5884_v51 = vpop.f32.mrf.mxu1 }
 0x46d   :  { %v5885_v32 = vadd.f32 %v5884_v51, %v5842_v50 }
 0x46e   :  { %v5886_v56 = vpop.f32.mrf.mxu1 }
 0x46f   :  { %v5887_v0 = vadd.f32 %v5886_v56, %v5844_v21  ;;  %v5895_v62 = vmax.f32 %v5885_v32, 0.0 }
 0x470   :  { %v5888_v4 = vpop.f32.mrf.mxu1 }
 0x471   :  { %v5889_v54 = vadd.f32 %v5888_v4, %v5846_v23  ;;  %v5896_v63 = vmax.f32 %v5887_v0, 0.0 }
 0x472   :  { %v5890_v18 = vpop.f32.mrf.mxu1 }
 0x473   :  { %v5891_v61 = vadd.f32 %v5890_v18, %v5848_v58  ;;  %v5899_v42 = vmax.f32 %v5889_v54, 0.0 }
 0x475   :  { %v5900_v57 = vmax.f32 %v5891_v61, 0.0  ;;  %v5903_v16 = vpack.c.bf16 %v5899_v42, %v5895_v62 }
 0x477   :  { %v5904_v10 = vpack.c.bf16 %v5900_v57, %v5896_v63 }
 0x479   :  { %6241 = vmatprep.mubr.bf16.mxu1 %v5904_v10 }
 0x47a   :  { %6242 = vmatmul.mubr.bf16.vlgmr.msra.gmra.mxu1 %v5903_v16 }
 0x4ba   :  { %v7097_v1 = vpop.f32.mrf.mxu0 }
 0x4bc   :  { %v7098_v44 = vpop.f32.mrf.mxu0 }
 0x4bd   :  { %v7099_v48 = vadd.f32 %v7098_v44, %v7097_v1 }
 0x4be   :  { %v7100_v27 = vpop.f32.mrf.mxu0 }
 0x4bf   :  { %v6203_v46 = vadd.f32 %v7099_v48, %v7048_v38 }
 0x4c0   :  { %v7101_v2 = vpop.f32.mrf.mxu0 }
 0x4c1   :  { %v7102_v5 = vadd.f32 %v7101_v2, %v7100_v27 }
 0x4c3   :  { %v6206_v7 = vadd.f32 %v7102_v5, %v7048_v38 }
 0x53a   :  { %v7119_v13 = vpop.f32.mrf.mxu1 }
 0x53c   :  { %v7120_v3 = vpop.f32.mrf.mxu1 }
 0x53d   :  { %v7121_v30 = vadd.f32 %v7120_v3, %v7119_v13 }
 0x53e   :  { %v7122_v47 = vpop.f32.mrf.mxu1 }
 0x53f   :  { %v6244_v25 = vadd.f32 %v7121_v30, %v6203_v46 }
 0x540   :  { %v7123_v40 = vpop.f32.mrf.mxu1 }
 0x541   :  { %6250 = vst [vmem:[#allocation14] sm:$0xff] %v6244_v25  ;;  %v7124_v55 = vadd.f32 %v7123_v40, %v7122_v47 }
 0x543   :  { %v6247_v8 = vadd.f32 %v7124_v55, %v6206_v7 }
 0x545   :  { %6251 = vst [vmem:[#allocation14 + $0x8] sm:$0xff] %v6247_v8 }
 0x546   :  { %7709 = shalt.err (!%p7706_p11)
}
 0x547   :  { %s7742_s16 = smov 128   ;;  %s7743_s17 = smov 8  }
 0x548   :  { %6263 = dma.vmem_to_hbm [thread:$0]  %s6258_s6, 256, %s8049_s7, [#allocation4], %s7742_s16, %s7742_s16, %s7743_s17  }
 0x549   :  { %7726 = dma.done.wait [#allocation4], 256  }
 0x54a   :  { %7727 = vsyncadd [#allocation4], 4294967040 }
 0x54b   :  { %6267 = vsyncpa [#allocation3], 1 }
 0x54c   :  { %6268 = vsyncpa [#allocation6], 1 }
 0x54d   :  { %6269 = vsyncpa [#allocation9], 1 }
 0x54e   :  { %6270 = vsyncpa [#allocation12], 1 }
 0x54f   :  { %6271 = vsyncpa [#allocation4], 1 }

</bundles_post_ra>
